<compile_context>
chip_gen: v7x
topology: tpu7x:2x2x1
jax: 0.10.0
libtpu: 0.0.40
codegen_flags: <defaults>
</compile_context>

<pallas_src>
import functools

import jax
import jax.numpy as jnp
from jax.experimental import pallas as pl
from jax.experimental.pallas import tpu as pltpu

DILATIONS = (1, 2, 3, 4, 3, 2, 1)
PMAX = max(DILATIONS)  # 4: spatial pad of the resident frame (covers every layer)


def _round_up(x, m):
    return (x + m - 1) // m * m


def _geometry(h, w):
    """Padded-frame geometry; every lane extent used in-kernel is 128-aligned."""
    # Correctness invariant: the pad ring must cover every dilation so that
    # taps of valid pixels never wrap rows / reach the flat margins.
    assert all(d <= PMAX for d in DILATIONS)
    hp, wp = h + 2 * PMAX, w + 2 * PMAX
    hpwp = hp * wp
    hpwp_pad = _round_up(hpwp, 128)          # lane-dense working width
    reach = PMAX * wp + PMAX                 # max |flat tap offset| (=100 here)
    margin = _round_up(reach, 128)           # lane-aligned left margin
    mt = _round_up(margin + hpwp_pad + reach, 128)   # total flat width
    return hp, wp, hpwp, hpwp_pad, margin, mt


# ------------------------------ Pallas kernel -------------------------------


def _lircnn_kernel(x_ref, w_ref, b_ref, mask_ref, o_ref, a_ref, *,
                   dilations, wp, margin):
    # x_ref:    (CP, MT)        f32 channel-padded input in the padded flat frame
    # w_ref:    (L, 9, CP, CP)  bf16 weights, [layer, tap = ky*3+kx, cout, cin]
    # b_ref:    (L, CP, 1)      f32 biases
    # mask_ref: (1, HPWP_PAD)   f32, 1.0 on valid (non-pad) frame pixels
    # o_ref:    (CP, HPWP_PAD)  f32 fused output  x * (x - conv_stack(x))
    # a_ref:    (CP, MT)        f32 VMEM-resident activation frame
    cp, mt = a_ref.shape
    hpwp_pad = mask_ref.shape[1]
    last = len(dilations) - 1

    # Zero only the tap-reachable margins of the scratch; the frame interior is
    # fully overwritten by the layer-0 store before it is ever read.  The
    # margins must be finite zeros so the mask multiply below yields exact
    # zeros on the pad ring every layer (load-bearing, not cosmetic).
    a_ref[:, pl.ds(0, margin)] = jnp.zeros((cp, margin), jnp.float32)
    a_ref[:, pl.ds(margin + hpwp_pad, mt - margin - hpwp_pad)] = jnp.zeros(
        (cp, mt - margin - hpwp_pad), jnp.float32)

    # Hoisted (1, HPWP_PAD) -> (CP, HPWP_PAD) broadcast (JAX does not CSE it).
    mask_b = jnp.broadcast_to(mask_ref[...], (cp, hpwp_pad))

    for l, d in enumerate(dilations):        # static unroll over the 7 layers
        src = x_ref if l == 0 else a_ref     # layer 0 reads the input directly
        # 9 accumulating K=CP dots; each RHS is a static lane-offset slice of
        # the resident frame, cast to bf16 on the fly.  f32 accumulation.
        z = None
        for t in range(9):
            ky, kx = t // 3, t % 3
            off = margin + (ky - 1) * d * wp + (kx - 1) * d      # static offset
            tap = src[:, pl.ds(off, hpwp_pad)].astype(jnp.bfloat16)
            part = jnp.dot(w_ref[l, t], tap,
                           preferred_element_type=jnp.float32)
            z = part if z is None else z + part
        z = z + b_ref[l]                     # (CP, HPWP_PAD) + (CP, 1)

        if l != last:
            # ReLU, re-zero the pad ring (PyTorch zero-pads every conv input),
            # and write the next layer's input into the resident frame.
            # Aligned, 128-multiple lane width -> unmasked stores.
            a_ref[:, pl.ds(margin, hpwp_pad)] = jnp.maximum(z, 0.0) * mask_b
        else:
            # Final conv (no ReLU) fused with the IRCNN residual and the
            # LIRCNN multiplicative gate:  out = x * (x - conv_stack(x)).
            x0 = x_ref[:, pl.ds(margin, hpwp_pad)]
            o_ref[...] = x0 * (x0 - z)


# ------------------------------ host wrapper --------------------------------


def lircnn_forward(x_nchw, params, *, nc=16):
    n, in_nc, h, w = x_nchw.shape
    out_nc = params[-1][1].shape[0]
    cp = _round_up(max(nc, in_nc, out_nc), 8)       # uniform padded channels
    hp, wp, hpwp, hpwp_pad, margin, mt = _geometry(h, w)

    # Host-side layout only (no compute): pad channels once, pad spatially by
    # PMAX, flatten the Hp x Wp frame, and add lane-aligned flat margins.
    xpad = jnp.pad(x_nchw.astype(jnp.float32),
                   ((0, 0), (0, cp - in_nc), (PMAX, PMAX), (PMAX, PMAX)))
    xflat = jnp.pad(xpad.reshape(n, cp, hpwp),
                    ((0, 0), (0, 0), (margin, mt - margin - hpwp)))

    # Weights -> (L, 9, CP, CP) bf16 (MXU-native operands); biases -> f32.
    # Padded channel slots get zero weights / zero bias.
    ws, bs = [], []
    for wgt, bias in params:
        cout, cin = wgt.shape[0], wgt.shape[1]
        wpad = jnp.pad(wgt, ((0, cp - cout), (0, cp - cin), (0, 0), (0, 0)))
        ws.append(jnp.transpose(wpad, (2, 3, 0, 1)).reshape(9, cp, cp))
        bs.append(jnp.pad(bias, (0, cp - cout)).reshape(cp, 1))
    w_all = jnp.stack(ws).astype(jnp.bfloat16)       # (7, 9, CP, CP)
    b_all = jnp.stack(bs).astype(jnp.float32)        # (7, CP, 1)

    # Valid-pixel mask of the working frame (lane-padded to HPWP_PAD).
    mask = jnp.zeros((hp, wp), jnp.float32)
    mask = mask.at[PMAX:PMAX + h, PMAX:PMAX + w].set(1.0)
    mask = jnp.pad(mask.reshape(1, hpwp), ((0, 0), (0, hpwp_pad - hpwp)))

    kern = functools.partial(_lircnn_kernel, dilations=DILATIONS, wp=wp,
                             margin=margin)

    out_flat = pl.pallas_call(
        kern,
        out_shape=jax.ShapeDtypeStruct((n, cp, hpwp_pad), jnp.float32),
        grid_spec=pltpu.PrefetchScalarGridSpec(
            num_scalar_prefetch=0,
            grid=(n,),                                  # >=2 parallel items (v7x TCs)
            in_specs=[
                pl.BlockSpec((None, cp, mt), lambda i: (i, 0, 0)),    # input frame
                pl.BlockSpec(w_all.shape, lambda i: (0, 0, 0, 0)),    # all weights
                pl.BlockSpec(b_all.shape, lambda i: (0, 0, 0)),       # all biases
                pl.BlockSpec((1, hpwp_pad), lambda i: (0, 0)),        # valid mask
            ],
            out_specs=pl.BlockSpec((None, cp, hpwp_pad), lambda i: (i, 0, 0)),
            scratch_shapes=[pltpu.VMEM((cp, mt), jnp.float32)],       # resident act
        ),
        compiler_params=pltpu.CompilerParams(
            dimension_semantics=("parallel",)),
    )(xflat, w_all, b_all, mask)

    # Host-side glue: drop lane padding, unflatten, drop pad ring + channels.
    out = out_flat[:, :, :hpwp].reshape(n, cp, hp, wp)
    return out[:, :out_nc, PMAX:PMAX + h, PMAX:PMAX + w]   # NCHW, like PyTorch


# ------------------------------ params / reference --------------------------


def init_params(key, in_nc=3, out_nc=3, nc=16):
    """Deterministic synthetic parameters in PyTorch Conv2d layout."""
    chans = [(in_nc, nc)] + [(nc, nc)] * 5 + [(nc, out_nc)]
    params = []
    for cin, cout in chans:
        key, kw, kb = jax.random.split(key, 3)
        fan_in = float(cin * 9)
        wgt = jax.random.normal(kw, (cout, cin, 3, 3), jnp.float32) / jnp.sqrt(fan_in)
        bias = jax.random.normal(kb, (cout,), jnp.float32) * 0.01
        params.append((wgt, bias))
    return params


def _ref_forward(x_nchw, params, *, operand_dtype=jnp.float32):
    """Pure-JAX reference (lax.conv).  operand_dtype=bfloat16 mirrors the
    kernel's MXU-operand precision (f32 accumulation either way)."""
    x = jnp.transpose(x_nchw, (0, 2, 3, 1)).astype(jnp.float32)
    h = x
    last = len(DILATIONS) - 1
    for i, d in enumerate(DILATIONS):
        wgt, bias = params[i]
        w_hwio = jnp.transpose(wgt, (2, 3, 1, 0))
        h = jax.lax.conv_general_dilated(
            h.astype(operand_dtype), w_hwio.astype(operand_dtype),
            window_strides=(1, 1), padding=((d, d), (d, d)), rhs_dilation=(d, d),
            dimension_numbers=("NHWC", "HWIO", "NHWC"),
            preferred_element_type=jnp.float32) + bias
        if i != last:
            h = jax.nn.relu(h)
    n = x - h                                  # IRCNN residual
    return jnp.transpose(x * n, (0, 3, 1, 2))  # LIRCNN gate, back to NCHW


# --------------------------------- main --------------------------------------

if __name__ == "__main__":
    key = jax.random.PRNGKey(0)
    batch, in_nc, height, width = 2, 3, 16, 16
    nc, out_nc = 16, 3

    kx, kp = jax.random.split(key)
    x = jax.random.normal(kx, (batch, in_nc, height, width), jnp.float32)
    params = init_params(kp, in_nc=in_nc, out_nc=out_nc, nc=nc)

    fwd = jax.jit(lircnn_forward)
    y = fwd(x, params)
    jax.block_until_ready(y)
    assert y.shape == (batch, out_nc, height, width)

    # Check 1: against a reference that mirrors the kernel's bf16 MXU operands
    # with f32 accumulation (small slack for bf16-ulp rounding of the f32
    # intermediate activations and f32 summation-order differences).
    y_bf16ref = _ref_forward(x, params, operand_dtype=jnp.bfloat16)
    assert jnp.allclose(y, y_bf16ref, rtol=1e-2, atol=1e-2), \
        "mismatch vs bf16-operand JAX reference"

    # Check 2: against the exact f32 PyTorch semantics; tolerance deliberately
    # widened (review note) since the only deviation is bf16 rounding of the
    # MXU operands across the 7-layer stack.
    y_f32ref = _ref_forward(x, params, operand_dtype=jnp.float32)
    assert jnp.allclose(y, y_f32ref, rtol=1e-1, atol=1e-1), \
        "mismatch vs f32 JAX reference"

    print("KERNEL_OK")
</pallas_src>

<mosaic_0001>
module attributes {stable_mosaic.version = 11 : i64} {
  func.func @_lircnn_kernel(%arg0: i32, %arg1: memref<1x16x896xf32, #tpu.memory_space<vmem>>, %arg2: memref<7x9x16x16xbf16, #tpu.memory_space<vmem>>, %arg3: memref<7x16x1xf32, #tpu.memory_space<vmem>>, %arg4: memref<1x640xf32, #tpu.memory_space<vmem>>, %arg5: memref<1x16x640xf32, #tpu.memory_space<vmem>>, %arg6: memref<16x896xf32, #tpu.memory_space<vmem>>) attributes {dimension_semantics = [#tpu.dimension_semantics<parallel>], iteration_bounds = array<i64: 2>, scalar_prefetch = 0 : i64, scratch_operands = 1 : i64, tpu.core_type = #tpu.core_type<tc>, window_params = [{transform_indices = @transform_0, window_bounds = array<i64: 1, 16, 896>}, {pipeline_mode = #tpu.pipeline_mode<synchronous>, transform_indices = @transform_1, window_bounds = array<i64: 7, 9, 16, 16>}, {pipeline_mode = #tpu.pipeline_mode<synchronous>, transform_indices = @transform_2, window_bounds = array<i64: 7, 16, 1>}, {pipeline_mode = #tpu.pipeline_mode<synchronous>, transform_indices = @transform_3, window_bounds = array<i64: 1, 640>}, {transform_indices = @transform_4, window_bounds = array<i64: 1, 16, 640>}]} {
    %cst = arith.constant 0.000000e+00 : f32
    %0 = vector.broadcast %cst : f32 to vector<16x128xf32>
    %c0 = arith.constant 0 : index
    %c0_0 = arith.constant 0 : index
    %1 = vector.load %arg6[%c0, %c0_0] : memref<16x896xf32, #tpu.memory_space<vmem>>, vector<16x128xf32>
    tpu.vector_store %arg6[%c0, %c0_0], %0 {strides = array<i32>} : memref<16x896xf32, #tpu.memory_space<vmem>>, vector<16x128xf32>,
    %cst_1 = arith.constant 0.000000e+00 : f32
    %2 = vector.broadcast %cst_1 : f32 to vector<16x128xf32>
    %c0_2 = arith.constant 0 : index
    %c768 = arith.constant 768 : index
    %3 = vector.load %arg6[%c0_2, %c768] : memref<16x896xf32, #tpu.memory_space<vmem>>, vector<16x128xf32>
    tpu.vector_store %arg6[%c0_2, %c768], %2 {strides = array<i32>} : memref<16x896xf32, #tpu.memory_space<vmem>>, vector<16x128xf32>,
    %c0_3 = arith.constant 0 : index
    %c0_4 = arith.constant 0 : index
    %4 = vector.load %arg4[%c0_3, %c0_4] : memref<1x640xf32, #tpu.memory_space<vmem>>, vector<1x640xf32>
    %5 = vector.shape_cast %4 : vector<1x640xf32> to vector<1x640xf32>
    %6 = vector.broadcast %5 : vector<1x640xf32> to vector<16x640xf32>
    %c0_5 = arith.constant 0 : index
    %c0_6 = arith.constant 0 : index
    %c103 = arith.constant 103 : index
    %7 = vector.load %arg1[%c0_5, %c0_6, %c103] : memref<1x16x896xf32, #tpu.memory_space<vmem>>, vector<1x16x640xf32>
    %8 = vector.shape_cast %7 : vector<1x16x640xf32> to vector<16x640xf32>
    %9 = arith.truncf %8 : vector<16x640xf32> to vector<16x640xbf16>
    %c0_7 = arith.constant 0 : index
    %c0_8 = arith.constant 0 : index
    %c0_9 = arith.constant 0 : index
    %c0_10 = arith.constant 0 : index
    %10 = vector.load %arg2[%c0_7, %c0_8, %c0_9, %c0_10] : memref<7x9x16x16xbf16, #tpu.memory_space<vmem>>, vector<1x1x16x16xbf16>
    %11 = vector.shape_cast %10 : vector<1x1x16x16xbf16> to vector<16x16xbf16>
    %cst_11 = arith.constant dense<0.000000e+00> : vector<16x640xf32>
    %12 = tpu.matmul %11, %9, %cst_11 {dimension_numbers = #tpu.dot_dimension_numbers<[1], [0], [0], [1], [0, 0, 1, 1], [], []>} : vector<16x16xbf16>, vector<16x640xbf16>, vector<16x640xf32> -> vector<16x640xf32>
    %c0_12 = arith.constant 0 : index
    %c0_13 = arith.constant 0 : index
    %c104 = arith.constant 104 : index
    %13 = vector.load %arg1[%c0_12, %c0_13, %c104] : memref<1x16x896xf32, #tpu.memory_space<vmem>>, vector<1x16x640xf32>
    %14 = vector.shape_cast %13 : vector<1x16x640xf32> to vector<16x640xf32>
    %15 = arith.truncf %14 : vector<16x640xf32> to vector<16x640xbf16>
    %c0_14 = arith.constant 0 : index
    %c1 = arith.constant 1 : index
    %c0_15 = arith.constant 0 : index
    %c0_16 = arith.constant 0 : index
    %16 = vector.load %arg2[%c0_14, %c1, %c0_15, %c0_16] : memref<7x9x16x16xbf16, #tpu.memory_space<vmem>>, vector<1x1x16x16xbf16>
    %17 = vector.shape_cast %16 : vector<1x1x16x16xbf16> to vector<16x16xbf16>
    %cst_17 = arith.constant dense<0.000000e+00> : vector<16x640xf32>
    %18 = tpu.matmul %17, %15, %cst_17 {dimension_numbers = #tpu.dot_dimension_numbers<[1], [0], [0], [1], [0, 0, 1, 1], [], []>} : vector<16x16xbf16>, vector<16x640xbf16>, vector<16x640xf32> -> vector<16x640xf32>
    %19 = arith.addf %12, %18 : vector<16x640xf32>
    %c0_18 = arith.constant 0 : index
    %c0_19 = arith.constant 0 : index
    %c105 = arith.constant 105 : index
    %20 = vector.load %arg1[%c0_18, %c0_19, %c105] : memref<1x16x896xf32, #tpu.memory_space<vmem>>, vector<1x16x640xf32>
    %21 = vector.shape_cast %20 : vector<1x16x640xf32> to vector<16x640xf32>
    %22 = arith.truncf %21 : vector<16x640xf32> to vector<16x640xbf16>
    %c0_20 = arith.constant 0 : index
    %c2 = arith.constant 2 : index
    %c0_21 = arith.constant 0 : index
    %c0_22 = arith.constant 0 : index
    %23 = vector.load %arg2[%c0_20, %c2, %c0_21, %c0_22] : memref<7x9x16x16xbf16, #tpu.memory_space<vmem>>, vector<1x1x16x16xbf16>
    %24 = vector.shape_cast %23 : vector<1x1x16x16xbf16> to vector<16x16xbf16>
    %cst_23 = arith.constant dense<0.000000e+00> : vector<16x640xf32>
    %25 = tpu.matmul %24, %22, %cst_23 {dimension_numbers = #tpu.dot_dimension_numbers<[1], [0], [0], [1], [0, 0, 1, 1], [], []>} : vector<16x16xbf16>, vector<16x640xbf16>, vector<16x640xf32> -> vector<16x640xf32>
    %26 = arith.addf %19, %25 : vector<16x640xf32>
    %c0_24 = arith.constant 0 : index
    %c0_25 = arith.constant 0 : index
    %c127 = arith.constant 127 : index
    %27 = vector.load %arg1[%c0_24, %c0_25, %c127] : memref<1x16x896xf32, #tpu.memory_space<vmem>>, vector<1x16x640xf32>
    %28 = vector.shape_cast %27 : vector<1x16x640xf32> to vector<16x640xf32>
    %29 = arith.truncf %28 : vector<16x640xf32> to vector<16x640xbf16>
    %c0_26 = arith.constant 0 : index
    %c3 = arith.constant 3 : index
    %c0_27 = arith.constant 0 : index
    %c0_28 = arith.constant 0 : index
    %30 = vector.load %arg2[%c0_26, %c3, %c0_27, %c0_28] : memref<7x9x16x16xbf16, #tpu.memory_space<vmem>>, vector<1x1x16x16xbf16>
    %31 = vector.shape_cast %30 : vector<1x1x16x16xbf16> to vector<16x16xbf16>
    %cst_29 = arith.constant dense<0.000000e+00> : vector<16x640xf32>
    %32 = tpu.matmul %31, %29, %cst_29 {dimension_numbers = #tpu.dot_dimension_numbers<[1], [0], [0], [1], [0, 0, 1, 1], [], []>} : vector<16x16xbf16>, vector<16x640xbf16>, vector<16x640xf32> -> vector<16x640xf32>
    %33 = arith.addf %26, %32 : vector<16x640xf32>
    %c0_30 = arith.constant 0 : index
    %c0_31 = arith.constant 0 : index
    %c128 = arith.constant 128 : index
    %34 = vector.load %arg1[%c0_30, %c0_31, %c128] : memref<1x16x896xf32, #tpu.memory_space<vmem>>, vector<1x16x640xf32>
    %35 = vector.shape_cast %34 : vector<1x16x640xf32> to vector<16x640xf32>
    %36 = arith.truncf %35 : vector<16x640xf32> to vector<16x640xbf16>
    %c0_32 = arith.constant 0 : index
    %c4 = arith.constant 4 : index
    %c0_33 = arith.constant 0 : index
    %c0_34 = arith.constant 0 : index
    %37 = vector.load %arg2[%c0_32, %c4, %c0_33, %c0_34] : memref<7x9x16x16xbf16, #tpu.memory_space<vmem>>, vector<1x1x16x16xbf16>
    %38 = vector.shape_cast %37 : vector<1x1x16x16xbf16> to vector<16x16xbf16>
    %cst_35 = arith.constant dense<0.000000e+00> : vector<16x640xf32>
    %39 = tpu.matmul %38, %36, %cst_35 {dimension_numbers = #tpu.dot_dimension_numbers<[1], [0], [0], [1], [0, 0, 1, 1], [], []>} : vector<16x16xbf16>, vector<16x640xbf16>, vector<16x640xf32> -> vector<16x640xf32>
    %40 = arith.addf %33, %39 : vector<16x640xf32>
    %c0_36 = arith.constant 0 : index
    %c0_37 = arith.constant 0 : index
    %c129 = arith.constant 129 : index
    %41 = vector.load %arg1[%c0_36, %c0_37, %c129] : memref<1x16x896xf32, #tpu.memory_space<vmem>>, vector<1x16x640xf32>
    %42 = vector.shape_cast %41 : vector<1x16x640xf32> to vector<16x640xf32>
    %43 = arith.truncf %42 : vector<16x640xf32> to vector<16x640xbf16>
    %c0_38 = arith.constant 0 : index
    %c5 = arith.constant 5 : index
    %c0_39 = arith.constant 0 : index
    %c0_40 = arith.constant 0 : index
    %44 = vector.load %arg2[%c0_38, %c5, %c0_39, %c0_40] : memref<7x9x16x16xbf16, #tpu.memory_space<vmem>>, vector<1x1x16x16xbf16>
    %45 = vector.shape_cast %44 : vector<1x1x16x16xbf16> to vector<16x16xbf16>
    %cst_41 = arith.constant dense<0.000000e+00> : vector<16x640xf32>
    %46 = tpu.matmul %45, %43, %cst_41 {dimension_numbers = #tpu.dot_dimension_numbers<[1], [0], [0], [1], [0, 0, 1, 1], [], []>} : vector<16x16xbf16>, vector<16x640xbf16>, vector<16x640xf32> -> vector<16x640xf32>
    %47 = arith.addf %40, %46 : vector<16x640xf32>
    %c0_42 = arith.constant 0 : index
    %c0_43 = arith.constant 0 : index
    %c151 = arith.constant 151 : index
    %48 = vector.load %arg1[%c0_42, %c0_43, %c151] : memref<1x16x896xf32, #tpu.memory_space<vmem>>, vector<1x16x640xf32>
    %49 = vector.shape_cast %48 : vector<1x16x640xf32> to vector<16x640xf32>
    %50 = arith.truncf %49 : vector<16x640xf32> to vector<16x640xbf16>
    %c0_44 = arith.constant 0 : index
    %c6 = arith.constant 6 : index
    %c0_45 = arith.constant 0 : index
    %c0_46 = arith.constant 0 : index
    %51 = vector.load %arg2[%c0_44, %c6, %c0_45, %c0_46] : memref<7x9x16x16xbf16, #tpu.memory_space<vmem>>, vector<1x1x16x16xbf16>
    %52 = vector.shape_cast %51 : vector<1x1x16x16xbf16> to vector<16x16xbf16>
    %cst_47 = arith.constant dense<0.000000e+00> : vector<16x640xf32>
    %53 = tpu.matmul %52, %50, %cst_47 {dimension_numbers = #tpu.dot_dimension_numbers<[1], [0], [0], [1], [0, 0, 1, 1], [], []>} : vector<16x16xbf16>, vector<16x640xbf16>, vector<16x640xf32> -> vector<16x640xf32>
    %54 = arith.addf %47, %53 : vector<16x640xf32>
    %c0_48 = arith.constant 0 : index
    %c0_49 = arith.constant 0 : index
    %c152 = arith.constant 152 : index
    %55 = vector.load %arg1[%c0_48, %c0_49, %c152] : memref<1x16x896xf32, #tpu.memory_space<vmem>>, vector<1x16x640xf32>
    %56 = vector.shape_cast %55 : vector<1x16x640xf32> to vector<16x640xf32>
    %57 = arith.truncf %56 : vector<16x640xf32> to vector<16x640xbf16>
    %c0_50 = arith.constant 0 : index
    %c7 = arith.constant 7 : index
    %c0_51 = arith.constant 0 : index
    %c0_52 = arith.constant 0 : index
    %58 = vector.load %arg2[%c0_50, %c7, %c0_51, %c0_52] : memref<7x9x16x16xbf16, #tpu.memory_space<vmem>>, vector<1x1x16x16xbf16>
    %59 = vector.shape_cast %58 : vector<1x1x16x16xbf16> to vector<16x16xbf16>
    %cst_53 = arith.constant dense<0.000000e+00> : vector<16x640xf32>
    %60 = tpu.matmul %59, %57, %cst_53 {dimension_numbers = #tpu.dot_dimension_numbers<[1], [0], [0], [1], [0, 0, 1, 1], [], []>} : vector<16x16xbf16>, vector<16x640xbf16>, vector<16x640xf32> -> vector<16x640xf32>
    %61 = arith.addf %54, %60 : vector<16x640xf32>
    %c0_54 = arith.constant 0 : index
    %c0_55 = arith.constant 0 : index
    %c153 = arith.constant 153 : index
    %62 = vector.load %arg1[%c0_54, %c0_55, %c153] : memref<1x16x896xf32, #tpu.memory_space<vmem>>, vector<1x16x640xf32>
    %63 = vector.shape_cast %62 : vector<1x16x640xf32> to vector<16x640xf32>
    %64 = arith.truncf %63 : vector<16x640xf32> to vector<16x640xbf16>
    %c0_56 = arith.constant 0 : index
    %c8 = arith.constant 8 : index
    %c0_57 = arith.constant 0 : index
    %c0_58 = arith.constant 0 : index
    %65 = vector.load %arg2[%c0_56, %c8, %c0_57, %c0_58] : memref<7x9x16x16xbf16, #tpu.memory_space<vmem>>, vector<1x1x16x16xbf16>
    %66 = vector.shape_cast %65 : vector<1x1x16x16xbf16> to vector<16x16xbf16>
    %cst_59 = arith.constant dense<0.000000e+00> : vector<16x640xf32>
    %67 = tpu.matmul %66, %64, %cst_59 {dimension_numbers = #tpu.dot_dimension_numbers<[1], [0], [0], [1], [0, 0, 1, 1], [], []>} : vector<16x16xbf16>, vector<16x640xbf16>, vector<16x640xf32> -> vector<16x640xf32>
    %68 = arith.addf %61, %67 : vector<16x640xf32>
    %c0_60 = arith.constant 0 : index
    %c0_61 = arith.constant 0 : index
    %c0_62 = arith.constant 0 : index
    %69 = vector.load %arg3[%c0_60, %c0_61, %c0_62] : memref<7x16x1xf32, #tpu.memory_space<vmem>>, vector<1x16x1xf32>
    %70 = vector.shape_cast %69 : vector<1x16x1xf32> to vector<16x1xf32>
    %71 = vector.broadcast %70 : vector<16x1xf32> to vector<16x640xf32>
    %72 = arith.addf %68, %71 : vector<16x640xf32>
    %cst_63 = arith.constant 0.000000e+00 : f32
    %73 = vector.broadcast %cst_63 : f32 to vector<16x640xf32>
    %74 = arith.maximumf %72, %73 : vector<16x640xf32>
    %75 = arith.mulf %74, %6 : vector<16x640xf32>
    %c0_64 = arith.constant 0 : index
    %c128_65 = arith.constant 128 : index
    %76 = vector.load %arg6[%c0_64, %c128_65] : memref<16x896xf32, #tpu.memory_space<vmem>>, vector<16x640xf32>
    tpu.vector_store %arg6[%c0_64, %c128_65], %75 {strides = array<i32>} : memref<16x896xf32, #tpu.memory_space<vmem>>, vector<16x640xf32>,
    %c0_66 = arith.constant 0 : index
    %c78 = arith.constant 78 : index
    %77 = vector.load %arg6[%c0_66, %c78] : memref<16x896xf32, #tpu.memory_space<vmem>>, vector<16x640xf32>
    %78 = arith.truncf %77 : vector<16x640xf32> to vector<16x640xbf16>
    %c1_67 = arith.constant 1 : index
    %c0_68 = arith.constant 0 : index
    %c0_69 = arith.constant 0 : index
    %c0_70 = arith.constant 0 : index
    %79 = vector.load %arg2[%c1_67, %c0_68, %c0_69, %c0_70] : memref<7x9x16x16xbf16, #tpu.memory_space<vmem>>, vector<1x1x16x16xbf16>
    %80 = vector.shape_cast %79 : vector<1x1x16x16xbf16> to vector<16x16xbf16>
    %cst_71 = arith.constant dense<0.000000e+00> : vector<16x640xf32>
    %81 = tpu.matmul %80, %78, %cst_71 {dimension_numbers = #tpu.dot_dimension_numbers<[1], [0], [0], [1], [0, 0, 1, 1], [], []>} : vector<16x16xbf16>, vector<16x640xbf16>, vector<16x640xf32> -> vector<16x640xf32>
    %c0_72 = arith.constant 0 : index
    %c80 = arith.constant 80 : index
    %82 = vector.load %arg6[%c0_72, %c80] : memref<16x896xf32, #tpu.memory_space<vmem>>, vector<16x640xf32>
    %83 = arith.truncf %82 : vector<16x640xf32> to vector<16x640xbf16>
    %c1_73 = arith.constant 1 : index
    %c1_74 = arith.constant 1 : index
    %c0_75 = arith.constant 0 : index
    %c0_76 = arith.constant 0 : index
    %84 = vector.load %arg2[%c1_73, %c1_74, %c0_75, %c0_76] : memref<7x9x16x16xbf16, #tpu.memory_space<vmem>>, vector<1x1x16x16xbf16>
    %85 = vector.shape_cast %84 : vector<1x1x16x16xbf16> to vector<16x16xbf16>
    %cst_77 = arith.constant dense<0.000000e+00> : vector<16x640xf32>
    %86 = tpu.matmul %85, %83, %cst_77 {dimension_numbers = #tpu.dot_dimension_numbers<[1], [0], [0], [1], [0, 0, 1, 1], [], []>} : vector<16x16xbf16>, vector<16x640xbf16>, vector<16x640xf32> -> vector<16x640xf32>
    %87 = arith.addf %81, %86 : vector<16x640xf32>
    %c0_78 = arith.constant 0 : index
    %c82 = arith.constant 82 : index
    %88 = vector.load %arg6[%c0_78, %c82] : memref<16x896xf32, #tpu.memory_space<vmem>>, vector<16x640xf32>
    %89 = arith.truncf %88 : vector<16x640xf32> to vector<16x640xbf16>
    %c1_79 = arith.constant 1 : index
    %c2_80 = arith.constant 2 : index
    %c0_81 = arith.constant 0 : index
    %c0_82 = arith.constant 0 : index
    %90 = vector.load %arg2[%c1_79, %c2_80, %c0_81, %c0_82] : memref<7x9x16x16xbf16, #tpu.memory_space<vmem>>, vector<1x1x16x16xbf16>
    %91 = vector.shape_cast %90 : vector<1x1x16x16xbf16> to vector<16x16xbf16>
    %cst_83 = arith.constant dense<0.000000e+00> : vector<16x640xf32>
    %92 = tpu.matmul %91, %89, %cst_83 {dimension_numbers = #tpu.dot_dimension_numbers<[1], [0], [0], [1], [0, 0, 1, 1], [], []>} : vector<16x16xbf16>, vector<16x640xbf16>, vector<16x640xf32> -> vector<16x640xf32>
    %93 = arith.addf %87, %92 : vector<16x640xf32>
    %c0_84 = arith.constant 0 : index
    %c126 = arith.constant 126 : index
    %94 = vector.load %arg6[%c0_84, %c126] : memref<16x896xf32, #tpu.memory_space<vmem>>, vector<16x640xf32>
    %95 = arith.truncf %94 : vector<16x640xf32> to vector<16x640xbf16>
    %c1_85 = arith.constant 1 : index
    %c3_86 = arith.constant 3 : index
    %c0_87 = arith.constant 0 : index
    %c0_88 = arith.constant 0 : index
    %96 = vector.load %arg2[%c1_85, %c3_86, %c0_87, %c0_88] : memref<7x9x16x16xbf16, #tpu.memory_space<vmem>>, vector<1x1x16x16xbf16>
    %97 = vector.shape_cast %96 : vector<1x1x16x16xbf16> to vector<16x16xbf16>
    %cst_89 = arith.constant dense<0.000000e+00> : vector<16x640xf32>
    %98 = tpu.matmul %97, %95, %cst_89 {dimension_numbers = #tpu.dot_dimension_numbers<[1], [0], [0], [1], [0, 0, 1, 1], [], []>} : vector<16x16xbf16>, vector<16x640xbf16>, vector<16x640xf32> -> vector<16x640xf32>
    %99 = arith.addf %93, %98 : vector<16x640xf32>
    %c0_90 = arith.constant 0 : index
    %c128_91 = arith.constant 128 : index
    %100 = vector.load %arg6[%c0_90, %c128_91] : memref<16x896xf32, #tpu.memory_space<vmem>>, vector<16x640xf32>
    %101 = arith.truncf %100 : vector<16x640xf32> to vector<16x640xbf16>
    %c1_92 = arith.constant 1 : index
    %c4_93 = arith.constant 4 : index
    %c0_94 = arith.constant 0 : index
    %c0_95 = arith.constant 0 : index
    %102 = vector.load %arg2[%c1_92, %c4_93, %c0_94, %c0_95] : memref<7x9x16x16xbf16, #tpu.memory_space<vmem>>, vector<1x1x16x16xbf16>
    %103 = vector.shape_cast %102 : vector<1x1x16x16xbf16> to vector<16x16xbf16>
    %cst_96 = arith.constant dense<0.000000e+00> : vector<16x640xf32>
    %104 = tpu.matmul %103, %101, %cst_96 {dimension_numbers = #tpu.dot_dimension_numbers<[1], [0], [0], [1], [0, 0, 1, 1], [], []>} : vector<16x16xbf16>, vector<16x640xbf16>, vector<16x640xf32> -> vector<16x640xf32>
    %105 = arith.addf %99, %104 : vector<16x640xf32>
    %c0_97 = arith.constant 0 : index
    %c130 = arith.constant 130 : index
    %106 = vector.load %arg6[%c0_97, %c130] : memref<16x896xf32, #tpu.memory_space<vmem>>, vector<16x640xf32>
    %107 = arith.truncf %106 : vector<16x640xf32> to vector<16x640xbf16>
    %c1_98 = arith.constant 1 : index
    %c5_99 = arith.constant 5 : index
    %c0_100 = arith.constant 0 : index
    %c0_101 = arith.constant 0 : index
    %108 = vector.load %arg2[%c1_98, %c5_99, %c0_100, %c0_101] : memref<7x9x16x16xbf16, #tpu.memory_space<vmem>>, vector<1x1x16x16xbf16>
    %109 = vector.shape_cast %108 : vector<1x1x16x16xbf16> to vector<16x16xbf16>
    %cst_102 = arith.constant dense<0.000000e+00> : vector<16x640xf32>
    %110 = tpu.matmul %109, %107, %cst_102 {dimension_numbers = #tpu.dot_dimension_numbers<[1], [0], [0], [1], [0, 0, 1, 1], [], []>} : vector<16x16xbf16>, vector<16x640xbf16>, vector<16x640xf32> -> vector<16x640xf32>
    %111 = arith.addf %105, %110 : vector<16x640xf32>
    %c0_103 = arith.constant 0 : index
    %c174 = arith.constant 174 : index
    %112 = vector.load %arg6[%c0_103, %c174] : memref<16x896xf32, #tpu.memory_space<vmem>>, vector<16x640xf32>
    %113 = arith.truncf %112 : vector<16x640xf32> to vector<16x640xbf16>
    %c1_104 = arith.constant 1 : index
    %c6_105 = arith.constant 6 : index
    %c0_106 = arith.constant 0 : index
    %c0_107 = arith.constant 0 : index
    %114 = vector.load %arg2[%c1_104, %c6_105, %c0_106, %c0_107] : memref<7x9x16x16xbf16, #tpu.memory_space<vmem>>, vector<1x1x16x16xbf16>
    %115 = vector.shape_cast %114 : vector<1x1x16x16xbf16> to vector<16x16xbf16>
    %cst_108 = arith.constant dense<0.000000e+00> : vector<16x640xf32>
    %116 = tpu.matmul %115, %113, %cst_108 {dimension_numbers = #tpu.dot_dimension_numbers<[1], [0], [0], [1], [0, 0, 1, 1], [], []>} : vector<16x16xbf16>, vector<16x640xbf16>, vector<16x640xf32> -> vector<16x640xf32>
    %117 = arith.addf %111, %116 : vector<16x640xf32>
    %c0_109 = arith.constant 0 : index
    %c176 = arith.constant 176 : index
    %118 = vector.load %arg6[%c0_109, %c176] : memref<16x896xf32, #tpu.memory_space<vmem>>, vector<16x640xf32>
    %119 = arith.truncf %118 : vector<16x640xf32> to vector<16x640xbf16>
    %c1_110 = arith.constant 1 : index
    %c7_111 = arith.constant 7 : index
    %c0_112 = arith.constant 0 : index
    %c0_113 = arith.constant 0 : index
    %120 = vector.load %arg2[%c1_110, %c7_111, %c0_112, %c0_113] : memref<7x9x16x16xbf16, #tpu.memory_space<vmem>>, vector<1x1x16x16xbf16>
    %121 = vector.shape_cast %120 : vector<1x1x16x16xbf16> to vector<16x16xbf16>
    %cst_114 = arith.constant dense<0.000000e+00> : vector<16x640xf32>
    %122 = tpu.matmul %121, %119, %cst_114 {dimension_numbers = #tpu.dot_dimension_numbers<[1], [0], [0], [1], [0, 0, 1, 1], [], []>} : vector<16x16xbf16>, vector<16x640xbf16>, vector<16x640xf32> -> vector<16x640xf32>
    %123 = arith.addf %117, %122 : vector<16x640xf32>
    %c0_115 = arith.constant 0 : index
    %c178 = arith.constant 178 : index
    %124 = vector.load %arg6[%c0_115, %c178] : memref<16x896xf32, #tpu.memory_space<vmem>>, vector<16x640xf32>
    %125 = arith.truncf %124 : vector<16x640xf32> to vector<16x640xbf16>
    %c1_116 = arith.constant 1 : index
    %c8_117 = arith.constant 8 : index
    %c0_118 = arith.constant 0 : index
    %c0_119 = arith.constant 0 : index
    %126 = vector.load %arg2[%c1_116, %c8_117, %c0_118, %c0_119] : memref<7x9x16x16xbf16, #tpu.memory_space<vmem>>, vector<1x1x16x16xbf16>
    %127 = vector.shape_cast %126 : vector<1x1x16x16xbf16> to vector<16x16xbf16>
    %cst_120 = arith.constant dense<0.000000e+00> : vector<16x640xf32>
    %128 = tpu.matmul %127, %125, %cst_120 {dimension_numbers = #tpu.dot_dimension_numbers<[1], [0], [0], [1], [0, 0, 1, 1], [], []>} : vector<16x16xbf16>, vector<16x640xbf16>, vector<16x640xf32> -> vector<16x640xf32>
    %129 = arith.addf %123, %128 : vector<16x640xf32>
    %c1_121 = arith.constant 1 : index
    %c0_122 = arith.constant 0 : index
    %c0_123 = arith.constant 0 : index
    %130 = vector.load %arg3[%c1_121, %c0_122, %c0_123] : memref<7x16x1xf32, #tpu.memory_space<vmem>>, vector<1x16x1xf32>
    %131 = vector.shape_cast %130 : vector<1x16x1xf32> to vector<16x1xf32>
    %132 = vector.broadcast %131 : vector<16x1xf32> to vector<16x640xf32>
    %133 = arith.addf %129, %132 : vector<16x640xf32>
    %cst_124 = arith.constant 0.000000e+00 : f32
    %134 = vector.broadcast %cst_124 : f32 to vector<16x640xf32>
    %135 = arith.maximumf %133, %134 : vector<16x640xf32>
    %136 = arith.mulf %135, %6 : vector<16x640xf32>
    %c0_125 = arith.constant 0 : index
    %c128_126 = arith.constant 128 : index
    %137 = vector.load %arg6[%c0_125, %c128_126] : memref<16x896xf32, #tpu.memory_space<vmem>>, vector<16x640xf32>
    tpu.vector_store %arg6[%c0_125, %c128_126], %136 {strides = array<i32>} : memref<16x896xf32, #tpu.memory_space<vmem>>, vector<16x640xf32>,
    %c0_127 = arith.constant 0 : index
    %c53 = arith.constant 53 : index
    %138 = vector.load %arg6[%c0_127, %c53] : memref<16x896xf32, #tpu.memory_space<vmem>>, vector<16x640xf32>
    %139 = arith.truncf %138 : vector<16x640xf32> to vector<16x640xbf16>
    %c2_128 = arith.constant 2 : index
    %c0_129 = arith.constant 0 : index
    %c0_130 = arith.constant 0 : index
    %c0_131 = arith.constant 0 : index
    %140 = vector.load %arg2[%c2_128, %c0_129, %c0_130, %c0_131] : memref<7x9x16x16xbf16, #tpu.memory_space<vmem>>, vector<1x1x16x16xbf16>
    %141 = vector.shape_cast %140 : vector<1x1x16x16xbf16> to vector<16x16xbf16>
    %cst_132 = arith.constant dense<0.000000e+00> : vector<16x640xf32>
    %142 = tpu.matmul %141, %139, %cst_132 {dimension_numbers = #tpu.dot_dimension_numbers<[1], [0], [0], [1], [0, 0, 1, 1], [], []>} : vector<16x16xbf16>, vector<16x640xbf16>, vector<16x640xf32> -> vector<16x640xf32>
    %c0_133 = arith.constant 0 : index
    %c56 = arith.constant 56 : index
    %143 = vector.load %arg6[%c0_133, %c56] : memref<16x896xf32, #tpu.memory_space<vmem>>, vector<16x640xf32>
    %144 = arith.truncf %143 : vector<16x640xf32> to vector<16x640xbf16>
    %c2_134 = arith.constant 2 : index
    %c1_135 = arith.constant 1 : index
    %c0_136 = arith.constant 0 : index
    %c0_137 = arith.constant 0 : index
    %145 = vector.load %arg2[%c2_134, %c1_135, %c0_136, %c0_137] : memref<7x9x16x16xbf16, #tpu.memory_space<vmem>>, vector<1x1x16x16xbf16>
    %146 = vector.shape_cast %145 : vector<1x1x16x16xbf16> to vector<16x16xbf16>
    %cst_138 = arith.constant dense<0.000000e+00> : vector<16x640xf32>
    %147 = tpu.matmul %146, %144, %cst_138 {dimension_numbers = #tpu.dot_dimension_numbers<[1], [0], [0], [1], [0, 0, 1, 1], [], []>} : vector<16x16xbf16>, vector<16x640xbf16>, vector<16x640xf32> -> vector<16x640xf32>
    %148 = arith.addf %142, %147 : vector<16x640xf32>
    %c0_139 = arith.constant 0 : index
    %c59 = arith.constant 59 : index
    %149 = vector.load %arg6[%c0_139, %c59] : memref<16x896xf32, #tpu.memory_space<vmem>>, vector<16x640xf32>
    %150 = arith.truncf %149 : vector<16x640xf32> to vector<16x640xbf16>
    %c2_140 = arith.constant 2 : index
    %c2_141 = arith.constant 2 : index
    %c0_142 = arith.constant 0 : index
    %c0_143 = arith.constant 0 : index
    %151 = vector.load %arg2[%c2_140, %c2_141, %c0_142, %c0_143] : memref<7x9x16x16xbf16, #tpu.memory_space<vmem>>, vector<1x1x16x16xbf16>
    %152 = vector.shape_cast %151 : vector<1x1x16x16xbf16> to vector<16x16xbf16>
    %cst_144 = arith.constant dense<0.000000e+00> : vector<16x640xf32>
    %153 = tpu.matmul %152, %150, %cst_144 {dimension_numbers = #tpu.dot_dimension_numbers<[1], [0], [0], [1], [0, 0, 1, 1], [], []>} : vector<16x16xbf16>, vector<16x640xbf16>, vector<16x640xf32> -> vector<16x640xf32>
    %154 = arith.addf %148, %153 : vector<16x640xf32>
    %c0_145 = arith.constant 0 : index
    %c125 = arith.constant 125 : index
    %155 = vector.load %arg6[%c0_145, %c125] : memref<16x896xf32, #tpu.memory_space<vmem>>, vector<16x640xf32>
    %156 = arith.truncf %155 : vector<16x640xf32> to vector<16x640xbf16>
    %c2_146 = arith.constant 2 : index
    %c3_147 = arith.constant 3 : index
    %c0_148 = arith.constant 0 : index
    %c0_149 = arith.constant 0 : index
    %157 = vector.load %arg2[%c2_146, %c3_147, %c0_148, %c0_149] : memref<7x9x16x16xbf16, #tpu.memory_space<vmem>>, vector<1x1x16x16xbf16>
    %158 = vector.shape_cast %157 : vector<1x1x16x16xbf16> to vector<16x16xbf16>
    %cst_150 = arith.constant dense<0.000000e+00> : vector<16x640xf32>
    %159 = tpu.matmul %158, %156, %cst_150 {dimension_numbers = #tpu.dot_dimension_numbers<[1], [0], [0], [1], [0, 0, 1, 1], [], []>} : vector<16x16xbf16>, vector<16x640xbf16>, vector<16x640xf32> -> vector<16x640xf32>
    %160 = arith.addf %154, %159 : vector<16x640xf32>
    %c0_151 = arith.constant 0 : index
    %c128_152 = arith.constant 128 : index
    %161 = vector.load %arg6[%c0_151, %c128_152] : memref<16x896xf32, #tpu.memory_space<vmem>>, vector<16x640xf32>
    %162 = arith.truncf %161 : vector<16x640xf32> to vector<16x640xbf16>
    %c2_153 = arith.constant 2 : index
    %c4_154 = arith.constant 4 : index
    %c0_155 = arith.constant 0 : index
    %c0_156 = arith.constant 0 : index
    %163 = vector.load %arg2[%c2_153, %c4_154, %c0_155, %c0_156] : memref<7x9x16x16xbf16, #tpu.memory_space<vmem>>, vector<1x1x16x16xbf16>
    %164 = vector.shape_cast %163 : vector<1x1x16x16xbf16> to vector<16x16xbf16>
    %cst_157 = arith.constant dense<0.000000e+00> : vector<16x640xf32>
    %165 = tpu.matmul %164, %162, %cst_157 {dimension_numbers = #tpu.dot_dimension_numbers<[1], [0], [0], [1], [0, 0, 1, 1], [], []>} : vector<16x16xbf16>, vector<16x640xbf16>, vector<16x640xf32> -> vector<16x640xf32>
    %166 = arith.addf %160, %165 : vector<16x640xf32>
    %c0_158 = arith.constant 0 : index
    %c131 = arith.constant 131 : index
    %167 = vector.load %arg6[%c0_158, %c131] : memref<16x896xf32, #tpu.memory_space<vmem>>, vector<16x640xf32>
    %168 = arith.truncf %167 : vector<16x640xf32> to vector<16x640xbf16>
    %c2_159 = arith.constant 2 : index
    %c5_160 = arith.constant 5 : index
    %c0_161 = arith.constant 0 : index
    %c0_162 = arith.constant 0 : index
    %169 = vector.load %arg2[%c2_159, %c5_160, %c0_161, %c0_162] : memref<7x9x16x16xbf16, #tpu.memory_space<vmem>>, vector<1x1x16x16xbf16>
    %170 = vector.shape_cast %169 : vector<1x1x16x16xbf16> to vector<16x16xbf16>
    %cst_163 = arith.constant dense<0.000000e+00> : vector<16x640xf32>
    %171 = tpu.matmul %170, %168, %cst_163 {dimension_numbers = #tpu.dot_dimension_numbers<[1], [0], [0], [1], [0, 0, 1, 1], [], []>} : vector<16x16xbf16>, vector<16x640xbf16>, vector<16x640xf32> -> vector<16x640xf32>
    %172 = arith.addf %166, %171 : vector<16x640xf32>
    %c0_164 = arith.constant 0 : index
    %c197 = arith.constant 197 : index
    %173 = vector.load %arg6[%c0_164, %c197] : memref<16x896xf32, #tpu.memory_space<vmem>>, vector<16x640xf32>
    %174 = arith.truncf %173 : vector<16x640xf32> to vector<16x640xbf16>
    %c2_165 = arith.constant 2 : index
    %c6_166 = arith.constant 6 : index
    %c0_167 = arith.constant 0 : index
    %c0_168 = arith.constant 0 : index
    %175 = vector.load %arg2[%c2_165, %c6_166, %c0_167, %c0_168] : memref<7x9x16x16xbf16, #tpu.memory_space<vmem>>, vector<1x1x16x16xbf16>
    %176 = vector.shape_cast %175 : vector<1x1x16x16xbf16> to vector<16x16xbf16>
    %cst_169 = arith.constant dense<0.000000e+00> : vector<16x640xf32>
    %177 = tpu.matmul %176, %174, %cst_169 {dimension_numbers = #tpu.dot_dimension_numbers<[1], [0], [0], [1], [0, 0, 1, 1], [], []>} : vector<16x16xbf16>, vector<16x640xbf16>, vector<16x640xf32> -> vector<16x640xf32>
    %178 = arith.addf %172, %177 : vector<16x640xf32>
    %c0_170 = arith.constant 0 : index
    %c200 = arith.constant 200 : index
    %179 = vector.load %arg6[%c0_170, %c200] : memref<16x896xf32, #tpu.memory_space<vmem>>, vector<16x640xf32>
    %180 = arith.truncf %179 : vector<16x640xf32> to vector<16x640xbf16>
    %c2_171 = arith.constant 2 : index
    %c7_172 = arith.constant 7 : index
    %c0_173 = arith.constant 0 : index
    %c0_174 = arith.constant 0 : index
    %181 = vector.load %arg2[%c2_171, %c7_172, %c0_173, %c0_174] : memref<7x9x16x16xbf16, #tpu.memory_space<vmem>>, vector<1x1x16x16xbf16>
    %182 = vector.shape_cast %181 : vector<1x1x16x16xbf16> to vector<16x16xbf16>
    %cst_175 = arith.constant dense<0.000000e+00> : vector<16x640xf32>
    %183 = tpu.matmul %182, %180, %cst_175 {dimension_numbers = #tpu.dot_dimension_numbers<[1], [0], [0], [1], [0, 0, 1, 1], [], []>} : vector<16x16xbf16>, vector<16x640xbf16>, vector<16x640xf32> -> vector<16x640xf32>
    %184 = arith.addf %178, %183 : vector<16x640xf32>
    %c0_176 = arith.constant 0 : index
    %c203 = arith.constant 203 : index
    %185 = vector.load %arg6[%c0_176, %c203] : memref<16x896xf32, #tpu.memory_space<vmem>>, vector<16x640xf32>
    %186 = arith.truncf %185 : vector<16x640xf32> to vector<16x640xbf16>
    %c2_177 = arith.constant 2 : index
    %c8_178 = arith.constant 8 : index
    %c0_179 = arith.constant 0 : index
    %c0_180 = arith.constant 0 : index
    %187 = vector.load %arg2[%c2_177, %c8_178, %c0_179, %c0_180] : memref<7x9x16x16xbf16, #tpu.memory_space<vmem>>, vector<1x1x16x16xbf16>
    %188 = vector.shape_cast %187 : vector<1x1x16x16xbf16> to vector<16x16xbf16>
    %cst_181 = arith.constant dense<0.000000e+00> : vector<16x640xf32>
    %189 = tpu.matmul %188, %186, %cst_181 {dimension_numbers = #tpu.dot_dimension_numbers<[1], [0], [0], [1], [0, 0, 1, 1], [], []>} : vector<16x16xbf16>, vector<16x640xbf16>, vector<16x640xf32> -> vector<16x640xf32>
    %190 = arith.addf %184, %189 : vector<16x640xf32>
    %c2_182 = arith.constant 2 : index
    %c0_183 = arith.constant 0 : index
    %c0_184 = arith.constant 0 : index
    %191 = vector.load %arg3[%c2_182, %c0_183, %c0_184] : memref<7x16x1xf32, #tpu.memory_space<vmem>>, vector<1x16x1xf32>
    %192 = vector.shape_cast %191 : vector<1x16x1xf32> to vector<16x1xf32>
    %193 = vector.broadcast %192 : vector<16x1xf32> to vector<16x640xf32>
    %194 = arith.addf %190, %193 : vector<16x640xf32>
    %cst_185 = arith.constant 0.000000e+00 : f32
    %195 = vector.broadcast %cst_185 : f32 to vector<16x640xf32>
    %196 = arith.maximumf %194, %195 : vector<16x640xf32>
    %197 = arith.mulf %196, %6 : vector<16x640xf32>
    %c0_186 = arith.constant 0 : index
    %c128_187 = arith.constant 128 : index
    %198 = vector.load %arg6[%c0_186, %c128_187] : memref<16x896xf32, #tpu.memory_space<vmem>>, vector<16x640xf32>
    tpu.vector_store %arg6[%c0_186, %c128_187], %197 {strides = array<i32>} : memref<16x896xf32, #tpu.memory_space<vmem>>, vector<16x640xf32>,
    %c0_188 = arith.constant 0 : index
    %c28 = arith.constant 28 : index
    %199 = vector.load %arg6[%c0_188, %c28] : memref<16x896xf32, #tpu.memory_space<vmem>>, vector<16x640xf32>
    %200 = arith.truncf %199 : vector<16x640xf32> to vector<16x640xbf16>
    %c3_189 = arith.constant 3 : index
    %c0_190 = arith.constant 0 : index
    %c0_191 = arith.constant 0 : index
    %c0_192 = arith.constant 0 : index
    %201 = vector.load %arg2[%c3_189, %c0_190, %c0_191, %c0_192] : memref<7x9x16x16xbf16, #tpu.memory_space<vmem>>, vector<1x1x16x16xbf16>
    %202 = vector.shape_cast %201 : vector<1x1x16x16xbf16> to vector<16x16xbf16>
    %cst_193 = arith.constant dense<0.000000e+00> : vector<16x640xf32>
    %203 = tpu.matmul %202, %200, %cst_193 {dimension_numbers = #tpu.dot_dimension_numbers<[1], [0], [0], [1], [0, 0, 1, 1], [], []>} : vector<16x16xbf16>, vector<16x640xbf16>, vector<16x640xf32> -> vector<16x640xf32>
    %c0_194 = arith.constant 0 : index
    %c32 = arith.constant 32 : index
    %204 = vector.load %arg6[%c0_194, %c32] : memref<16x896xf32, #tpu.memory_space<vmem>>, vector<16x640xf32>
    %205 = arith.truncf %204 : vector<16x640xf32> to vector<16x640xbf16>
    %c3_195 = arith.constant 3 : index
    %c1_196 = arith.constant 1 : index
    %c0_197 = arith.constant 0 : index
    %c0_198 = arith.constant 0 : index
    %206 = vector.load %arg2[%c3_195, %c1_196, %c0_197, %c0_198] : memref<7x9x16x16xbf16, #tpu.memory_space<vmem>>, vector<1x1x16x16xbf16>
    %207 = vector.shape_cast %206 : vector<1x1x16x16xbf16> to vector<16x16xbf16>
    %cst_199 = arith.constant dense<0.000000e+00> : vector<16x640xf32>
    %208 = tpu.matmul %207, %205, %cst_199 {dimension_numbers = #tpu.dot_dimension_numbers<[1], [0], [0], [1], [0, 0, 1, 1], [], []>} : vector<16x16xbf16>, vector<16x640xbf16>, vector<16x640xf32> -> vector<16x640xf32>
    %209 = arith.addf %203, %208 : vector<16x640xf32>
    %c0_200 = arith.constant 0 : index
    %c36 = arith.constant 36 : index
    %210 = vector.load %arg6[%c0_200, %c36] : memref<16x896xf32, #tpu.memory_space<vmem>>, vector<16x640xf32>
    %211 = arith.truncf %210 : vector<16x640xf32> to vector<16x640xbf16>
    %c3_201 = arith.constant 3 : index
    %c2_202 = arith.constant 2 : index
    %c0_203 = arith.constant 0 : index
    %c0_204 = arith.constant 0 : index
    %212 = vector.load %arg2[%c3_201, %c2_202, %c0_203, %c0_204] : memref<7x9x16x16xbf16, #tpu.memory_space<vmem>>, vector<1x1x16x16xbf16>
    %213 = vector.shape_cast %212 : vector<1x1x16x16xbf16> to vector<16x16xbf16>
    %cst_205 = arith.constant dense<0.000000e+00> : vector<16x640xf32>
    %214 = tpu.matmul %213, %211, %cst_205 {dimension_numbers = #tpu.dot_dimension_numbers<[1], [0], [0], [1], [0, 0, 1, 1], [], []>} : vector<16x16xbf16>, vector<16x640xbf16>, vector<16x640xf32> -> vector<16x640xf32>
    %215 = arith.addf %209, %214 : vector<16x640xf32>
    %c0_206 = arith.constant 0 : index
    %c124 = arith.constant 124 : index
    %216 = vector.load %arg6[%c0_206, %c124] : memref<16x896xf32, #tpu.memory_space<vmem>>, vector<16x640xf32>
    %217 = arith.truncf %216 : vector<16x640xf32> to vector<16x640xbf16>
    %c3_207 = arith.constant 3 : index
    %c3_208 = arith.constant 3 : index
    %c0_209 = arith.constant 0 : index
    %c0_210 = arith.constant 0 : index
    %218 = vector.load %arg2[%c3_207, %c3_208, %c0_209, %c0_210] : memref<7x9x16x16xbf16, #tpu.memory_space<vmem>>, vector<1x1x16x16xbf16>
    %219 = vector.shape_cast %218 : vector<1x1x16x16xbf16> to vector<16x16xbf16>
    %cst_211 = arith.constant dense<0.000000e+00> : vector<16x640xf32>
    %220 = tpu.matmul %219, %217, %cst_211 {dimension_numbers = #tpu.dot_dimension_numbers<[1], [0], [0], [1], [0, 0, 1, 1], [], []>} : vector<16x16xbf16>, vector<16x640xbf16>, vector<16x640xf32> -> vector<16x640xf32>
    %221 = arith.addf %215, %220 : vector<16x640xf32>
    %c0_212 = arith.constant 0 : index
    %c128_213 = arith.constant 128 : index
    %222 = vector.load %arg6[%c0_212, %c128_213] : memref<16x896xf32, #tpu.memory_space<vmem>>, vector<16x640xf32>
    %223 = arith.truncf %222 : vector<16x640xf32> to vector<16x640xbf16>
    %c3_214 = arith.constant 3 : index
    %c4_215 = arith.constant 4 : index
    %c0_216 = arith.constant 0 : index
    %c0_217 = arith.constant 0 : index
    %224 = vector.load %arg2[%c3_214, %c4_215, %c0_216, %c0_217] : memref<7x9x16x16xbf16, #tpu.memory_space<vmem>>, vector<1x1x16x16xbf16>
    %225 = vector.shape_cast %224 : vector<1x1x16x16xbf16> to vector<16x16xbf16>
    %cst_218 = arith.constant dense<0.000000e+00> : vector<16x640xf32>
    %226 = tpu.matmul %225, %223, %cst_218 {dimension_numbers = #tpu.dot_dimension_numbers<[1], [0], [0], [1], [0, 0, 1, 1], [], []>} : vector<16x16xbf16>, vector<16x640xbf16>, vector<16x640xf32> -> vector<16x640xf32>
    %227 = arith.addf %221, %226 : vector<16x640xf32>
    %c0_219 = arith.constant 0 : index
    %c132 = arith.constant 132 : index
    %228 = vector.load %arg6[%c0_219, %c132] : memref<16x896xf32, #tpu.memory_space<vmem>>, vector<16x640xf32>
    %229 = arith.truncf %228 : vector<16x640xf32> to vector<16x640xbf16>
    %c3_220 = arith.constant 3 : index
    %c5_221 = arith.constant 5 : index
    %c0_222 = arith.constant 0 : index
    %c0_223 = arith.constant 0 : index
    %230 = vector.load %arg2[%c3_220, %c5_221, %c0_222, %c0_223] : memref<7x9x16x16xbf16, #tpu.memory_space<vmem>>, vector<1x1x16x16xbf16>
    %231 = vector.shape_cast %230 : vector<1x1x16x16xbf16> to vector<16x16xbf16>
    %cst_224 = arith.constant dense<0.000000e+00> : vector<16x640xf32>
    %232 = tpu.matmul %231, %229, %cst_224 {dimension_numbers = #tpu.dot_dimension_numbers<[1], [0], [0], [1], [0, 0, 1, 1], [], []>} : vector<16x16xbf16>, vector<16x640xbf16>, vector<16x640xf32> -> vector<16x640xf32>
    %233 = arith.addf %227, %232 : vector<16x640xf32>
    %c0_225 = arith.constant 0 : index
    %c220 = arith.constant 220 : index
    %234 = vector.load %arg6[%c0_225, %c220] : memref<16x896xf32, #tpu.memory_space<vmem>>, vector<16x640xf32>
    %235 = arith.truncf %234 : vector<16x640xf32> to vector<16x640xbf16>
    %c3_226 = arith.constant 3 : index
    %c6_227 = arith.constant 6 : index
    %c0_228 = arith.constant 0 : index
    %c0_229 = arith.constant 0 : index
    %236 = vector.load %arg2[%c3_226, %c6_227, %c0_228, %c0_229] : memref<7x9x16x16xbf16, #tpu.memory_space<vmem>>, vector<1x1x16x16xbf16>
    %237 = vector.shape_cast %236 : vector<1x1x16x16xbf16> to vector<16x16xbf16>
    %cst_230 = arith.constant dense<0.000000e+00> : vector<16x640xf32>
    %238 = tpu.matmul %237, %235, %cst_230 {dimension_numbers = #tpu.dot_dimension_numbers<[1], [0], [0], [1], [0, 0, 1, 1], [], []>} : vector<16x16xbf16>, vector<16x640xbf16>, vector<16x640xf32> -> vector<16x640xf32>
    %239 = arith.addf %233, %238 : vector<16x640xf32>
    %c0_231 = arith.constant 0 : index
    %c224 = arith.constant 224 : index
    %240 = vector.load %arg6[%c0_231, %c224] : memref<16x896xf32, #tpu.memory_space<vmem>>, vector<16x640xf32>
    %241 = arith.truncf %240 : vector<16x640xf32> to vector<16x640xbf16>
    %c3_232 = arith.constant 3 : index
    %c7_233 = arith.constant 7 : index
    %c0_234 = arith.constant 0 : index
    %c0_235 = arith.constant 0 : index
    %242 = vector.load %arg2[%c3_232, %c7_233, %c0_234, %c0_235] : memref<7x9x16x16xbf16, #tpu.memory_space<vmem>>, vector<1x1x16x16xbf16>
    %243 = vector.shape_cast %242 : vector<1x1x16x16xbf16> to vector<16x16xbf16>
    %cst_236 = arith.constant dense<0.000000e+00> : vector<16x640xf32>
    %244 = tpu.matmul %243, %241, %cst_236 {dimension_numbers = #tpu.dot_dimension_numbers<[1], [0], [0], [1], [0, 0, 1, 1], [], []>} : vector<16x16xbf16>, vector<16x640xbf16>, vector<16x640xf32> -> vector<16x640xf32>
    %245 = arith.addf %239, %244 : vector<16x640xf32>
    %c0_237 = arith.constant 0 : index
    %c228 = arith.constant 228 : index
    %246 = vector.load %arg6[%c0_237, %c228] : memref<16x896xf32, #tpu.memory_space<vmem>>, vector<16x640xf32>
    %247 = arith.truncf %246 : vector<16x640xf32> to vector<16x640xbf16>
    %c3_238 = arith.constant 3 : index
    %c8_239 = arith.constant 8 : index
    %c0_240 = arith.constant 0 : index
    %c0_241 = arith.constant 0 : index
    %248 = vector.load %arg2[%c3_238, %c8_239, %c0_240, %c0_241] : memref<7x9x16x16xbf16, #tpu.memory_space<vmem>>, vector<1x1x16x16xbf16>
    %249 = vector.shape_cast %248 : vector<1x1x16x16xbf16> to vector<16x16xbf16>
    %cst_242 = arith.constant dense<0.000000e+00> : vector<16x640xf32>
    %250 = tpu.matmul %249, %247, %cst_242 {dimension_numbers = #tpu.dot_dimension_numbers<[1], [0], [0], [1], [0, 0, 1, 1], [], []>} : vector<16x16xbf16>, vector<16x640xbf16>, vector<16x640xf32> -> vector<16x640xf32>
    %251 = arith.addf %245, %250 : vector<16x640xf32>
    %c3_243 = arith.constant 3 : index
    %c0_244 = arith.constant 0 : index
    %c0_245 = arith.constant 0 : index
    %252 = vector.load %arg3[%c3_243, %c0_244, %c0_245] : memref<7x16x1xf32, #tpu.memory_space<vmem>>, vector<1x16x1xf32>
    %253 = vector.shape_cast %252 : vector<1x16x1xf32> to vector<16x1xf32>
    %254 = vector.broadcast %253 : vector<16x1xf32> to vector<16x640xf32>
    %255 = arith.addf %251, %254 : vector<16x640xf32>
    %cst_246 = arith.constant 0.000000e+00 : f32
    %256 = vector.broadcast %cst_246 : f32 to vector<16x640xf32>
    %257 = arith.maximumf %255, %256 : vector<16x640xf32>
    %258 = arith.mulf %257, %6 : vector<16x640xf32>
    %c0_247 = arith.constant 0 : index
    %c128_248 = arith.constant 128 : index
    %259 = vector.load %arg6[%c0_247, %c128_248] : memref<16x896xf32, #tpu.memory_space<vmem>>, vector<16x640xf32>
    tpu.vector_store %arg6[%c0_247, %c128_248], %258 {strides = array<i32>} : memref<16x896xf32, #tpu.memory_space<vmem>>, vector<16x640xf32>,
    %c0_249 = arith.constant 0 : index
    %c53_250 = arith.constant 53 : index
    %260 = vector.load %arg6[%c0_249, %c53_250] : memref<16x896xf32, #tpu.memory_space<vmem>>, vector<16x640xf32>
    %261 = arith.truncf %260 : vector<16x640xf32> to vector<16x640xbf16>
    %c4_251 = arith.constant 4 : index
    %c0_252 = arith.constant 0 : index
    %c0_253 = arith.constant 0 : index
    %c0_254 = arith.constant 0 : index
    %262 = vector.load %arg2[%c4_251, %c0_252, %c0_253, %c0_254] : memref<7x9x16x16xbf16, #tpu.memory_space<vmem>>, vector<1x1x16x16xbf16>
    %263 = vector.shape_cast %262 : vector<1x1x16x16xbf16> to vector<16x16xbf16>
    %cst_255 = arith.constant dense<0.000000e+00> : vector<16x640xf32>
    %264 = tpu.matmul %263, %261, %cst_255 {dimension_numbers = #tpu.dot_dimension_numbers<[1], [0], [0], [1], [0, 0, 1, 1], [], []>} : vector<16x16xbf16>, vector<16x640xbf16>, vector<16x640xf32> -> vector<16x640xf32>
    %c0_256 = arith.constant 0 : index
    %c56_257 = arith.constant 56 : index
    %265 = vector.load %arg6[%c0_256, %c56_257] : memref<16x896xf32, #tpu.memory_space<vmem>>, vector<16x640xf32>
    %266 = arith.truncf %265 : vector<16x640xf32> to vector<16x640xbf16>
    %c4_258 = arith.constant 4 : index
    %c1_259 = arith.constant 1 : index
    %c0_260 = arith.constant 0 : index
    %c0_261 = arith.constant 0 : index
    %267 = vector.load %arg2[%c4_258, %c1_259, %c0_260, %c0_261] : memref<7x9x16x16xbf16, #tpu.memory_space<vmem>>, vector<1x1x16x16xbf16>
    %268 = vector.shape_cast %267 : vector<1x1x16x16xbf16> to vector<16x16xbf16>
    %cst_262 = arith.constant dense<0.000000e+00> : vector<16x640xf32>
    %269 = tpu.matmul %268, %266, %cst_262 {dimension_numbers = #tpu.dot_dimension_numbers<[1], [0], [0], [1], [0, 0, 1, 1], [], []>} : vector<16x16xbf16>, vector<16x640xbf16>, vector<16x640xf32> -> vector<16x640xf32>
    %270 = arith.addf %264, %269 : vector<16x640xf32>
    %c0_263 = arith.constant 0 : index
    %c59_264 = arith.constant 59 : index
    %271 = vector.load %arg6[%c0_263, %c59_264] : memref<16x896xf32, #tpu.memory_space<vmem>>, vector<16x640xf32>
    %272 = arith.truncf %271 : vector<16x640xf32> to vector<16x640xbf16>
    %c4_265 = arith.constant 4 : index
    %c2_266 = arith.constant 2 : index
    %c0_267 = arith.constant 0 : index
    %c0_268 = arith.constant 0 : index
    %273 = vector.load %arg2[%c4_265, %c2_266, %c0_267, %c0_268] : memref<7x9x16x16xbf16, #tpu.memory_space<vmem>>, vector<1x1x16x16xbf16>
    %274 = vector.shape_cast %273 : vector<1x1x16x16xbf16> to vector<16x16xbf16>
    %cst_269 = arith.constant dense<0.000000e+00> : vector<16x640xf32>
    %275 = tpu.matmul %274, %272, %cst_269 {dimension_numbers = #tpu.dot_dimension_numbers<[1], [0], [0], [1], [0, 0, 1, 1], [], []>} : vector<16x16xbf16>, vector<16x640xbf16>, vector<16x640xf32> -> vector<16x640xf32>
    %276 = arith.addf %270, %275 : vector<16x640xf32>
    %c0_270 = arith.constant 0 : index
    %c125_271 = arith.constant 125 : index
    %277 = vector.load %arg6[%c0_270, %c125_271] : memref<16x896xf32, #tpu.memory_space<vmem>>, vector<16x640xf32>
    %278 = arith.truncf %277 : vector<16x640xf32> to vector<16x640xbf16>
    %c4_272 = arith.constant 4 : index
    %c3_273 = arith.constant 3 : index
    %c0_274 = arith.constant 0 : index
    %c0_275 = arith.constant 0 : index
    %279 = vector.load %arg2[%c4_272, %c3_273, %c0_274, %c0_275] : memref<7x9x16x16xbf16, #tpu.memory_space<vmem>>, vector<1x1x16x16xbf16>
    %280 = vector.shape_cast %279 : vector<1x1x16x16xbf16> to vector<16x16xbf16>
    %cst_276 = arith.constant dense<0.000000e+00> : vector<16x640xf32>
    %281 = tpu.matmul %280, %278, %cst_276 {dimension_numbers = #tpu.dot_dimension_numbers<[1], [0], [0], [1], [0, 0, 1, 1], [], []>} : vector<16x16xbf16>, vector<16x640xbf16>, vector<16x640xf32> -> vector<16x640xf32>
    %282 = arith.addf %276, %281 : vector<16x640xf32>
    %c0_277 = arith.constant 0 : index
    %c128_278 = arith.constant 128 : index
    %283 = vector.load %arg6[%c0_277, %c128_278] : memref<16x896xf32, #tpu.memory_space<vmem>>, vector<16x640xf32>
    %284 = arith.truncf %283 : vector<16x640xf32> to vector<16x640xbf16>
    %c4_279 = arith.constant 4 : index
    %c4_280 = arith.constant 4 : index
    %c0_281 = arith.constant 0 : index
    %c0_282 = arith.constant 0 : index
    %285 = vector.load %arg2[%c4_279, %c4_280, %c0_281, %c0_282] : memref<7x9x16x16xbf16, #tpu.memory_space<vmem>>, vector<1x1x16x16xbf16>
    %286 = vector.shape_cast %285 : vector<1x1x16x16xbf16> to vector<16x16xbf16>
    %cst_283 = arith.constant dense<0.000000e+00> : vector<16x640xf32>
    %287 = tpu.matmul %286, %284, %cst_283 {dimension_numbers = #tpu.dot_dimension_numbers<[1], [0], [0], [1], [0, 0, 1, 1], [], []>} : vector<16x16xbf16>, vector<16x640xbf16>, vector<16x640xf32> -> vector<16x640xf32>
    %288 = arith.addf %282, %287 : vector<16x640xf32>
    %c0_284 = arith.constant 0 : index
    %c131_285 = arith.constant 131 : index
    %289 = vector.load %arg6[%c0_284, %c131_285] : memref<16x896xf32, #tpu.memory_space<vmem>>, vector<16x640xf32>
    %290 = arith.truncf %289 : vector<16x640xf32> to vector<16x640xbf16>
    %c4_286 = arith.constant 4 : index
    %c5_287 = arith.constant 5 : index
    %c0_288 = arith.constant 0 : index
    %c0_289 = arith.constant 0 : index
    %291 = vector.load %arg2[%c4_286, %c5_287, %c0_288, %c0_289] : memref<7x9x16x16xbf16, #tpu.memory_space<vmem>>, vector<1x1x16x16xbf16>
    %292 = vector.shape_cast %291 : vector<1x1x16x16xbf16> to vector<16x16xbf16>
    %cst_290 = arith.constant dense<0.000000e+00> : vector<16x640xf32>
    %293 = tpu.matmul %292, %290, %cst_290 {dimension_numbers = #tpu.dot_dimension_numbers<[1], [0], [0], [1], [0, 0, 1, 1], [], []>} : vector<16x16xbf16>, vector<16x640xbf16>, vector<16x640xf32> -> vector<16x640xf32>
    %294 = arith.addf %288, %293 : vector<16x640xf32>
    %c0_291 = arith.constant 0 : index
    %c197_292 = arith.constant 197 : index
    %295 = vector.load %arg6[%c0_291, %c197_292] : memref<16x896xf32, #tpu.memory_space<vmem>>, vector<16x640xf32>
    %296 = arith.truncf %295 : vector<16x640xf32> to vector<16x640xbf16>
    %c4_293 = arith.constant 4 : index
    %c6_294 = arith.constant 6 : index
    %c0_295 = arith.constant 0 : index
    %c0_296 = arith.constant 0 : index
    %297 = vector.load %arg2[%c4_293, %c6_294, %c0_295, %c0_296] : memref<7x9x16x16xbf16, #tpu.memory_space<vmem>>, vector<1x1x16x16xbf16>
    %298 = vector.shape_cast %297 : vector<1x1x16x16xbf16> to vector<16x16xbf16>
    %cst_297 = arith.constant dense<0.000000e+00> : vector<16x640xf32>
    %299 = tpu.matmul %298, %296, %cst_297 {dimension_numbers = #tpu.dot_dimension_numbers<[1], [0], [0], [1], [0, 0, 1, 1], [], []>} : vector<16x16xbf16>, vector<16x640xbf16>, vector<16x640xf32> -> vector<16x640xf32>
    %300 = arith.addf %294, %299 : vector<16x640xf32>
    %c0_298 = arith.constant 0 : index
    %c200_299 = arith.constant 200 : index
    %301 = vector.load %arg6[%c0_298, %c200_299] : memref<16x896xf32, #tpu.memory_space<vmem>>, vector<16x640xf32>
    %302 = arith.truncf %301 : vector<16x640xf32> to vector<16x640xbf16>
    %c4_300 = arith.constant 4 : index
    %c7_301 = arith.constant 7 : index
    %c0_302 = arith.constant 0 : index
    %c0_303 = arith.constant 0 : index
    %303 = vector.load %arg2[%c4_300, %c7_301, %c0_302, %c0_303] : memref<7x9x16x16xbf16, #tpu.memory_space<vmem>>, vector<1x1x16x16xbf16>
    %304 = vector.shape_cast %303 : vector<1x1x16x16xbf16> to vector<16x16xbf16>
    %cst_304 = arith.constant dense<0.000000e+00> : vector<16x640xf32>
    %305 = tpu.matmul %304, %302, %cst_304 {dimension_numbers = #tpu.dot_dimension_numbers<[1], [0], [0], [1], [0, 0, 1, 1], [], []>} : vector<16x16xbf16>, vector<16x640xbf16>, vector<16x640xf32> -> vector<16x640xf32>
    %306 = arith.addf %300, %305 : vector<16x640xf32>
    %c0_305 = arith.constant 0 : index
    %c203_306 = arith.constant 203 : index
    %307 = vector.load %arg6[%c0_305, %c203_306] : memref<16x896xf32, #tpu.memory_space<vmem>>, vector<16x640xf32>
    %308 = arith.truncf %307 : vector<16x640xf32> to vector<16x640xbf16>
    %c4_307 = arith.constant 4 : index
    %c8_308 = arith.constant 8 : index
    %c0_309 = arith.constant 0 : index
    %c0_310 = arith.constant 0 : index
    %309 = vector.load %arg2[%c4_307, %c8_308, %c0_309, %c0_310] : memref<7x9x16x16xbf16, #tpu.memory_space<vmem>>, vector<1x1x16x16xbf16>
    %310 = vector.shape_cast %309 : vector<1x1x16x16xbf16> to vector<16x16xbf16>
    %cst_311 = arith.constant dense<0.000000e+00> : vector<16x640xf32>
    %311 = tpu.matmul %310, %308, %cst_311 {dimension_numbers = #tpu.dot_dimension_numbers<[1], [0], [0], [1], [0, 0, 1, 1], [], []>} : vector<16x16xbf16>, vector<16x640xbf16>, vector<16x640xf32> -> vector<16x640xf32>
    %312 = arith.addf %306, %311 : vector<16x640xf32>
    %c4_312 = arith.constant 4 : index
    %c0_313 = arith.constant 0 : index
    %c0_314 = arith.constant 0 : index
    %313 = vector.load %arg3[%c4_312, %c0_313, %c0_314] : memref<7x16x1xf32, #tpu.memory_space<vmem>>, vector<1x16x1xf32>
    %314 = vector.shape_cast %313 : vector<1x16x1xf32> to vector<16x1xf32>
    %315 = vector.broadcast %314 : vector<16x1xf32> to vector<16x640xf32>
    %316 = arith.addf %312, %315 : vector<16x640xf32>
    %cst_315 = arith.constant 0.000000e+00 : f32
    %317 = vector.broadcast %cst_315 : f32 to vector<16x640xf32>
    %318 = arith.maximumf %316, %317 : vector<16x640xf32>
    %319 = arith.mulf %318, %6 : vector<16x640xf32>
    %c0_316 = arith.constant 0 : index
    %c128_317 = arith.constant 128 : index
    %320 = vector.load %arg6[%c0_316, %c128_317] : memref<16x896xf32, #tpu.memory_space<vmem>>, vector<16x640xf32>
    tpu.vector_store %arg6[%c0_316, %c128_317], %319 {strides = array<i32>} : memref<16x896xf32, #tpu.memory_space<vmem>>, vector<16x640xf32>,
    %c0_318 = arith.constant 0 : index
    %c78_319 = arith.constant 78 : index
    %321 = vector.load %arg6[%c0_318, %c78_319] : memref<16x896xf32, #tpu.memory_space<vmem>>, vector<16x640xf32>
    %322 = arith.truncf %321 : vector<16x640xf32> to vector<16x640xbf16>
    %c5_320 = arith.constant 5 : index
    %c0_321 = arith.constant 0 : index
    %c0_322 = arith.constant 0 : index
    %c0_323 = arith.constant 0 : index
    %323 = vector.load %arg2[%c5_320, %c0_321, %c0_322, %c0_323] : memref<7x9x16x16xbf16, #tpu.memory_space<vmem>>, vector<1x1x16x16xbf16>
    %324 = vector.shape_cast %323 : vector<1x1x16x16xbf16> to vector<16x16xbf16>
    %cst_324 = arith.constant dense<0.000000e+00> : vector<16x640xf32>
    %325 = tpu.matmul %324, %322, %cst_324 {dimension_numbers = #tpu.dot_dimension_numbers<[1], [0], [0], [1], [0, 0, 1, 1], [], []>} : vector<16x16xbf16>, vector<16x640xbf16>, vector<16x640xf32> -> vector<16x640xf32>
    %c0_325 = arith.constant 0 : index
    %c80_326 = arith.constant 80 : index
    %326 = vector.load %arg6[%c0_325, %c80_326] : memref<16x896xf32, #tpu.memory_space<vmem>>, vector<16x640xf32>
    %327 = arith.truncf %326 : vector<16x640xf32> to vector<16x640xbf16>
    %c5_327 = arith.constant 5 : index
    %c1_328 = arith.constant 1 : index
    %c0_329 = arith.constant 0 : index
    %c0_330 = arith.constant 0 : index
    %328 = vector.load %arg2[%c5_327, %c1_328, %c0_329, %c0_330] : memref<7x9x16x16xbf16, #tpu.memory_space<vmem>>, vector<1x1x16x16xbf16>
    %329 = vector.shape_cast %328 : vector<1x1x16x16xbf16> to vector<16x16xbf16>
    %cst_331 = arith.constant dense<0.000000e+00> : vector<16x640xf32>
    %330 = tpu.matmul %329, %327, %cst_331 {dimension_numbers = #tpu.dot_dimension_numbers<[1], [0], [0], [1], [0, 0, 1, 1], [], []>} : vector<16x16xbf16>, vector<16x640xbf16>, vector<16x640xf32> -> vector<16x640xf32>
    %331 = arith.addf %325, %330 : vector<16x640xf32>
    %c0_332 = arith.constant 0 : index
    %c82_333 = arith.constant 82 : index
    %332 = vector.load %arg6[%c0_332, %c82_333] : memref<16x896xf32, #tpu.memory_space<vmem>>, vector<16x640xf32>
    %333 = arith.truncf %332 : vector<16x640xf32> to vector<16x640xbf16>
    %c5_334 = arith.constant 5 : index
    %c2_335 = arith.constant 2 : index
    %c0_336 = arith.constant 0 : index
    %c0_337 = arith.constant 0 : index
    %334 = vector.load %arg2[%c5_334, %c2_335, %c0_336, %c0_337] : memref<7x9x16x16xbf16, #tpu.memory_space<vmem>>, vector<1x1x16x16xbf16>
    %335 = vector.shape_cast %334 : vector<1x1x16x16xbf16> to vector<16x16xbf16>
    %cst_338 = arith.constant dense<0.000000e+00> : vector<16x640xf32>
    %336 = tpu.matmul %335, %333, %cst_338 {dimension_numbers = #tpu.dot_dimension_numbers<[1], [0], [0], [1], [0, 0, 1, 1], [], []>} : vector<16x16xbf16>, vector<16x640xbf16>, vector<16x640xf32> -> vector<16x640xf32>
    %337 = arith.addf %331, %336 : vector<16x640xf32>
    %c0_339 = arith.constant 0 : index
    %c126_340 = arith.constant 126 : index
    %338 = vector.load %arg6[%c0_339, %c126_340] : memref<16x896xf32, #tpu.memory_space<vmem>>, vector<16x640xf32>
    %339 = arith.truncf %338 : vector<16x640xf32> to vector<16x640xbf16>
    %c5_341 = arith.constant 5 : index
    %c3_342 = arith.constant 3 : index
    %c0_343 = arith.constant 0 : index
    %c0_344 = arith.constant 0 : index
    %340 = vector.load %arg2[%c5_341, %c3_342, %c0_343, %c0_344] : memref<7x9x16x16xbf16, #tpu.memory_space<vmem>>, vector<1x1x16x16xbf16>
    %341 = vector.shape_cast %340 : vector<1x1x16x16xbf16> to vector<16x16xbf16>
    %cst_345 = arith.constant dense<0.000000e+00> : vector<16x640xf32>
    %342 = tpu.matmul %341, %339, %cst_345 {dimension_numbers = #tpu.dot_dimension_numbers<[1], [0], [0], [1], [0, 0, 1, 1], [], []>} : vector<16x16xbf16>, vector<16x640xbf16>, vector<16x640xf32> -> vector<16x640xf32>
    %343 = arith.addf %337, %342 : vector<16x640xf32>
    %c0_346 = arith.constant 0 : index
    %c128_347 = arith.constant 128 : index
    %344 = vector.load %arg6[%c0_346, %c128_347] : memref<16x896xf32, #tpu.memory_space<vmem>>, vector<16x640xf32>
    %345 = arith.truncf %344 : vector<16x640xf32> to vector<16x640xbf16>
    %c5_348 = arith.constant 5 : index
    %c4_349 = arith.constant 4 : index
    %c0_350 = arith.constant 0 : index
    %c0_351 = arith.constant 0 : index
    %346 = vector.load %arg2[%c5_348, %c4_349, %c0_350, %c0_351] : memref<7x9x16x16xbf16, #tpu.memory_space<vmem>>, vector<1x1x16x16xbf16>
    %347 = vector.shape_cast %346 : vector<1x1x16x16xbf16> to vector<16x16xbf16>
    %cst_352 = arith.constant dense<0.000000e+00> : vector<16x640xf32>
    %348 = tpu.matmul %347, %345, %cst_352 {dimension_numbers = #tpu.dot_dimension_numbers<[1], [0], [0], [1], [0, 0, 1, 1], [], []>} : vector<16x16xbf16>, vector<16x640xbf16>, vector<16x640xf32> -> vector<16x640xf32>
    %349 = arith.addf %343, %348 : vector<16x640xf32>
    %c0_353 = arith.constant 0 : index
    %c130_354 = arith.constant 130 : index
    %350 = vector.load %arg6[%c0_353, %c130_354] : memref<16x896xf32, #tpu.memory_space<vmem>>, vector<16x640xf32>
    %351 = arith.truncf %350 : vector<16x640xf32> to vector<16x640xbf16>
    %c5_355 = arith.constant 5 : index
    %c5_356 = arith.constant 5 : index
    %c0_357 = arith.constant 0 : index
    %c0_358 = arith.constant 0 : index
    %352 = vector.load %arg2[%c5_355, %c5_356, %c0_357, %c0_358] : memref<7x9x16x16xbf16, #tpu.memory_space<vmem>>, vector<1x1x16x16xbf16>
    %353 = vector.shape_cast %352 : vector<1x1x16x16xbf16> to vector<16x16xbf16>
    %cst_359 = arith.constant dense<0.000000e+00> : vector<16x640xf32>
    %354 = tpu.matmul %353, %351, %cst_359 {dimension_numbers = #tpu.dot_dimension_numbers<[1], [0], [0], [1], [0, 0, 1, 1], [], []>} : vector<16x16xbf16>, vector<16x640xbf16>, vector<16x640xf32> -> vector<16x640xf32>
    %355 = arith.addf %349, %354 : vector<16x640xf32>
    %c0_360 = arith.constant 0 : index
    %c174_361 = arith.constant 174 : index
    %356 = vector.load %arg6[%c0_360, %c174_361] : memref<16x896xf32, #tpu.memory_space<vmem>>, vector<16x640xf32>
    %357 = arith.truncf %356 : vector<16x640xf32> to vector<16x640xbf16>
    %c5_362 = arith.constant 5 : index
    %c6_363 = arith.constant 6 : index
    %c0_364 = arith.constant 0 : index
    %c0_365 = arith.constant 0 : index
    %358 = vector.load %arg2[%c5_362, %c6_363, %c0_364, %c0_365] : memref<7x9x16x16xbf16, #tpu.memory_space<vmem>>, vector<1x1x16x16xbf16>
    %359 = vector.shape_cast %358 : vector<1x1x16x16xbf16> to vector<16x16xbf16>
    %cst_366 = arith.constant dense<0.000000e+00> : vector<16x640xf32>
    %360 = tpu.matmul %359, %357, %cst_366 {dimension_numbers = #tpu.dot_dimension_numbers<[1], [0], [0], [1], [0, 0, 1, 1], [], []>} : vector<16x16xbf16>, vector<16x640xbf16>, vector<16x640xf32> -> vector<16x640xf32>
    %361 = arith.addf %355, %360 : vector<16x640xf32>
    %c0_367 = arith.constant 0 : index
    %c176_368 = arith.constant 176 : index
    %362 = vector.load %arg6[%c0_367, %c176_368] : memref<16x896xf32, #tpu.memory_space<vmem>>, vector<16x640xf32>
    %363 = arith.truncf %362 : vector<16x640xf32> to vector<16x640xbf16>
    %c5_369 = arith.constant 5 : index
    %c7_370 = arith.constant 7 : index
    %c0_371 = arith.constant 0 : index
    %c0_372 = arith.constant 0 : index
    %364 = vector.load %arg2[%c5_369, %c7_370, %c0_371, %c0_372] : memref<7x9x16x16xbf16, #tpu.memory_space<vmem>>, vector<1x1x16x16xbf16>
    %365 = vector.shape_cast %364 : vector<1x1x16x16xbf16> to vector<16x16xbf16>
    %cst_373 = arith.constant dense<0.000000e+00> : vector<16x640xf32>
    %366 = tpu.matmul %365, %363, %cst_373 {dimension_numbers = #tpu.dot_dimension_numbers<[1], [0], [0], [1], [0, 0, 1, 1], [], []>} : vector<16x16xbf16>, vector<16x640xbf16>, vector<16x640xf32> -> vector<16x640xf32>
    %367 = arith.addf %361, %366 : vector<16x640xf32>
    %c0_374 = arith.constant 0 : index
    %c178_375 = arith.constant 178 : index
    %368 = vector.load %arg6[%c0_374, %c178_375] : memref<16x896xf32, #tpu.memory_space<vmem>>, vector<16x640xf32>
    %369 = arith.truncf %368 : vector<16x640xf32> to vector<16x640xbf16>
    %c5_376 = arith.constant 5 : index
    %c8_377 = arith.constant 8 : index
    %c0_378 = arith.constant 0 : index
    %c0_379 = arith.constant 0 : index
    %370 = vector.load %arg2[%c5_376, %c8_377, %c0_378, %c0_379] : memref<7x9x16x16xbf16, #tpu.memory_space<vmem>>, vector<1x1x16x16xbf16>
    %371 = vector.shape_cast %370 : vector<1x1x16x16xbf16> to vector<16x16xbf16>
    %cst_380 = arith.constant dense<0.000000e+00> : vector<16x640xf32>
    %372 = tpu.matmul %371, %369, %cst_380 {dimension_numbers = #tpu.dot_dimension_numbers<[1], [0], [0], [1], [0, 0, 1, 1], [], []>} : vector<16x16xbf16>, vector<16x640xbf16>, vector<16x640xf32> -> vector<16x640xf32>
    %373 = arith.addf %367, %372 : vector<16x640xf32>
    %c5_381 = arith.constant 5 : index
    %c0_382 = arith.constant 0 : index
    %c0_383 = arith.constant 0 : index
    %374 = vector.load %arg3[%c5_381, %c0_382, %c0_383] : memref<7x16x1xf32, #tpu.memory_space<vmem>>, vector<1x16x1xf32>
    %375 = vector.shape_cast %374 : vector<1x16x1xf32> to vector<16x1xf32>
    %376 = vector.broadcast %375 : vector<16x1xf32> to vector<16x640xf32>
    %377 = arith.addf %373, %376 : vector<16x640xf32>
    %cst_384 = arith.constant 0.000000e+00 : f32
    %378 = vector.broadcast %cst_384 : f32 to vector<16x640xf32>
    %379 = arith.maximumf %377, %378 : vector<16x640xf32>
    %380 = arith.mulf %379, %6 : vector<16x640xf32>
    %c0_385 = arith.constant 0 : index
    %c128_386 = arith.constant 128 : index
    %381 = vector.load %arg6[%c0_385, %c128_386] : memref<16x896xf32, #tpu.memory_space<vmem>>, vector<16x640xf32>
    tpu.vector_store %arg6[%c0_385, %c128_386], %380 {strides = array<i32>} : memref<16x896xf32, #tpu.memory_space<vmem>>, vector<16x640xf32>,
    %c0_387 = arith.constant 0 : index
    %c103_388 = arith.constant 103 : index
    %382 = vector.load %arg6[%c0_387, %c103_388] : memref<16x896xf32, #tpu.memory_space<vmem>>, vector<16x640xf32>
    %383 = arith.truncf %382 : vector<16x640xf32> to vector<16x640xbf16>
    %c6_389 = arith.constant 6 : index
    %c0_390 = arith.constant 0 : index
    %c0_391 = arith.constant 0 : index
    %c0_392 = arith.constant 0 : index
    %384 = vector.load %arg2[%c6_389, %c0_390, %c0_391, %c0_392] : memref<7x9x16x16xbf16, #tpu.memory_space<vmem>>, vector<1x1x16x16xbf16>
    %385 = vector.shape_cast %384 : vector<1x1x16x16xbf16> to vector<16x16xbf16>
    %cst_393 = arith.constant dense<0.000000e+00> : vector<16x640xf32>
    %386 = tpu.matmul %385, %383, %cst_393 {dimension_numbers = #tpu.dot_dimension_numbers<[1], [0], [0], [1], [0, 0, 1, 1], [], []>} : vector<16x16xbf16>, vector<16x640xbf16>, vector<16x640xf32> -> vector<16x640xf32>
    %c0_394 = arith.constant 0 : index
    %c104_395 = arith.constant 104 : index
    %387 = vector.load %arg6[%c0_394, %c104_395] : memref<16x896xf32, #tpu.memory_space<vmem>>, vector<16x640xf32>
    %388 = arith.truncf %387 : vector<16x640xf32> to vector<16x640xbf16>
    %c6_396 = arith.constant 6 : index
    %c1_397 = arith.constant 1 : index
    %c0_398 = arith.constant 0 : index
    %c0_399 = arith.constant 0 : index
    %389 = vector.load %arg2[%c6_396, %c1_397, %c0_398, %c0_399] : memref<7x9x16x16xbf16, #tpu.memory_space<vmem>>, vector<1x1x16x16xbf16>
    %390 = vector.shape_cast %389 : vector<1x1x16x16xbf16> to vector<16x16xbf16>
    %cst_400 = arith.constant dense<0.000000e+00> : vector<16x640xf32>
    %391 = tpu.matmul %390, %388, %cst_400 {dimension_numbers = #tpu.dot_dimension_numbers<[1], [0], [0], [1], [0, 0, 1, 1], [], []>} : vector<16x16xbf16>, vector<16x640xbf16>, vector<16x640xf32> -> vector<16x640xf32>
    %392 = arith.addf %386, %391 : vector<16x640xf32>
    %c0_401 = arith.constant 0 : index
    %c105_402 = arith.constant 105 : index
    %393 = vector.load %arg6[%c0_401, %c105_402] : memref<16x896xf32, #tpu.memory_space<vmem>>, vector<16x640xf32>
    %394 = arith.truncf %393 : vector<16x640xf32> to vector<16x640xbf16>
    %c6_403 = arith.constant 6 : index
    %c2_404 = arith.constant 2 : index
    %c0_405 = arith.constant 0 : index
    %c0_406 = arith.constant 0 : index
    %395 = vector.load %arg2[%c6_403, %c2_404, %c0_405, %c0_406] : memref<7x9x16x16xbf16, #tpu.memory_space<vmem>>, vector<1x1x16x16xbf16>
    %396 = vector.shape_cast %395 : vector<1x1x16x16xbf16> to vector<16x16xbf16>
    %cst_407 = arith.constant dense<0.000000e+00> : vector<16x640xf32>
    %397 = tpu.matmul %396, %394, %cst_407 {dimension_numbers = #tpu.dot_dimension_numbers<[1], [0], [0], [1], [0, 0, 1, 1], [], []>} : vector<16x16xbf16>, vector<16x640xbf16>, vector<16x640xf32> -> vector<16x640xf32>
    %398 = arith.addf %392, %397 : vector<16x640xf32>
    %c0_408 = arith.constant 0 : index
    %c127_409 = arith.constant 127 : index
    %399 = vector.load %arg6[%c0_408, %c127_409] : memref<16x896xf32, #tpu.memory_space<vmem>>, vector<16x640xf32>
    %400 = arith.truncf %399 : vector<16x640xf32> to vector<16x640xbf16>
    %c6_410 = arith.constant 6 : index
    %c3_411 = arith.constant 3 : index
    %c0_412 = arith.constant 0 : index
    %c0_413 = arith.constant 0 : index
    %401 = vector.load %arg2[%c6_410, %c3_411, %c0_412, %c0_413] : memref<7x9x16x16xbf16, #tpu.memory_space<vmem>>, vector<1x1x16x16xbf16>
    %402 = vector.shape_cast %401 : vector<1x1x16x16xbf16> to vector<16x16xbf16>
    %cst_414 = arith.constant dense<0.000000e+00> : vector<16x640xf32>
    %403 = tpu.matmul %402, %400, %cst_414 {dimension_numbers = #tpu.dot_dimension_numbers<[1], [0], [0], [1], [0, 0, 1, 1], [], []>} : vector<16x16xbf16>, vector<16x640xbf16>, vector<16x640xf32> -> vector<16x640xf32>
    %404 = arith.addf %398, %403 : vector<16x640xf32>
    %c0_415 = arith.constant 0 : index
    %c128_416 = arith.constant 128 : index
    %405 = vector.load %arg6[%c0_415, %c128_416] : memref<16x896xf32, #tpu.memory_space<vmem>>, vector<16x640xf32>
    %406 = arith.truncf %405 : vector<16x640xf32> to vector<16x640xbf16>
    %c6_417 = arith.constant 6 : index
    %c4_418 = arith.constant 4 : index
    %c0_419 = arith.constant 0 : index
    %c0_420 = arith.constant 0 : index
    %407 = vector.load %arg2[%c6_417, %c4_418, %c0_419, %c0_420] : memref<7x9x16x16xbf16, #tpu.memory_space<vmem>>, vector<1x1x16x16xbf16>
    %408 = vector.shape_cast %407 : vector<1x1x16x16xbf16> to vector<16x16xbf16>
    %cst_421 = arith.constant dense<0.000000e+00> : vector<16x640xf32>
    %409 = tpu.matmul %408, %406, %cst_421 {dimension_numbers = #tpu.dot_dimension_numbers<[1], [0], [0], [1], [0, 0, 1, 1], [], []>} : vector<16x16xbf16>, vector<16x640xbf16>, vector<16x640xf32> -> vector<16x640xf32>
    %410 = arith.addf %404, %409 : vector<16x640xf32>
    %c0_422 = arith.constant 0 : index
    %c129_423 = arith.constant 129 : index
    %411 = vector.load %arg6[%c0_422, %c129_423] : memref<16x896xf32, #tpu.memory_space<vmem>>, vector<16x640xf32>
    %412 = arith.truncf %411 : vector<16x640xf32> to vector<16x640xbf16>
    %c6_424 = arith.constant 6 : index
    %c5_425 = arith.constant 5 : index
    %c0_426 = arith.constant 0 : index
    %c0_427 = arith.constant 0 : index
    %413 = vector.load %arg2[%c6_424, %c5_425, %c0_426, %c0_427] : memref<7x9x16x16xbf16, #tpu.memory_space<vmem>>, vector<1x1x16x16xbf16>
    %414 = vector.shape_cast %413 : vector<1x1x16x16xbf16> to vector<16x16xbf16>
    %cst_428 = arith.constant dense<0.000000e+00> : vector<16x640xf32>
    %415 = tpu.matmul %414, %412, %cst_428 {dimension_numbers = #tpu.dot_dimension_numbers<[1], [0], [0], [1], [0, 0, 1, 1], [], []>} : vector<16x16xbf16>, vector<16x640xbf16>, vector<16x640xf32> -> vector<16x640xf32>
    %416 = arith.addf %410, %415 : vector<16x640xf32>
    %c0_429 = arith.constant 0 : index
    %c151_430 = arith.constant 151 : index
    %417 = vector.load %arg6[%c0_429, %c151_430] : memref<16x896xf32, #tpu.memory_space<vmem>>, vector<16x640xf32>
    %418 = arith.truncf %417 : vector<16x640xf32> to vector<16x640xbf16>
    %c6_431 = arith.constant 6 : index
    %c6_432 = arith.constant 6 : index
    %c0_433 = arith.constant 0 : index
    %c0_434 = arith.constant 0 : index
    %419 = vector.load %arg2[%c6_431, %c6_432, %c0_433, %c0_434] : memref<7x9x16x16xbf16, #tpu.memory_space<vmem>>, vector<1x1x16x16xbf16>
    %420 = vector.shape_cast %419 : vector<1x1x16x16xbf16> to vector<16x16xbf16>
    %cst_435 = arith.constant dense<0.000000e+00> : vector<16x640xf32>
    %421 = tpu.matmul %420, %418, %cst_435 {dimension_numbers = #tpu.dot_dimension_numbers<[1], [0], [0], [1], [0, 0, 1, 1], [], []>} : vector<16x16xbf16>, vector<16x640xbf16>, vector<16x640xf32> -> vector<16x640xf32>
    %422 = arith.addf %416, %421 : vector<16x640xf32>
    %c0_436 = arith.constant 0 : index
    %c152_437 = arith.constant 152 : index
    %423 = vector.load %arg6[%c0_436, %c152_437] : memref<16x896xf32, #tpu.memory_space<vmem>>, vector<16x640xf32>
    %424 = arith.truncf %423 : vector<16x640xf32> to vector<16x640xbf16>
    %c6_438 = arith.constant 6 : index
    %c7_439 = arith.constant 7 : index
    %c0_440 = arith.constant 0 : index
    %c0_441 = arith.constant 0 : index
    %425 = vector.load %arg2[%c6_438, %c7_439, %c0_440, %c0_441] : memref<7x9x16x16xbf16, #tpu.memory_space<vmem>>, vector<1x1x16x16xbf16>
    %426 = vector.shape_cast %425 : vector<1x1x16x16xbf16> to vector<16x16xbf16>
    %cst_442 = arith.constant dense<0.000000e+00> : vector<16x640xf32>
    %427 = tpu.matmul %426, %424, %cst_442 {dimension_numbers = #tpu.dot_dimension_numbers<[1], [0], [0], [1], [0, 0, 1, 1], [], []>} : vector<16x16xbf16>, vector<16x640xbf16>, vector<16x640xf32> -> vector<16x640xf32>
    %428 = arith.addf %422, %427 : vector<16x640xf32>
    %c0_443 = arith.constant 0 : index
    %c153_444 = arith.constant 153 : index
    %429 = vector.load %arg6[%c0_443, %c153_444] : memref<16x896xf32, #tpu.memory_space<vmem>>, vector<16x640xf32>
    %430 = arith.truncf %429 : vector<16x640xf32> to vector<16x640xbf16>
    %c6_445 = arith.constant 6 : index
    %c8_446 = arith.constant 8 : index
    %c0_447 = arith.constant 0 : index
    %c0_448 = arith.constant 0 : index
    %431 = vector.load %arg2[%c6_445, %c8_446, %c0_447, %c0_448] : memref<7x9x16x16xbf16, #tpu.memory_space<vmem>>, vector<1x1x16x16xbf16>
    %432 = vector.shape_cast %431 : vector<1x1x16x16xbf16> to vector<16x16xbf16>
    %cst_449 = arith.constant dense<0.000000e+00> : vector<16x640xf32>
    %433 = tpu.matmul %432, %430, %cst_449 {dimension_numbers = #tpu.dot_dimension_numbers<[1], [0], [0], [1], [0, 0, 1, 1], [], []>} : vector<16x16xbf16>, vector<16x640xbf16>, vector<16x640xf32> -> vector<16x640xf32>
    %434 = arith.addf %428, %433 : vector<16x640xf32>
    %c6_450 = arith.constant 6 : index
    %c0_451 = arith.constant 0 : index
    %c0_452 = arith.constant 0 : index
    %435 = vector.load %arg3[%c6_450, %c0_451, %c0_452] : memref<7x16x1xf32, #tpu.memory_space<vmem>>, vector<1x16x1xf32>
    %436 = vector.shape_cast %435 : vector<1x16x1xf32> to vector<16x1xf32>
    %437 = vector.broadcast %436 : vector<16x1xf32> to vector<16x640xf32>
    %438 = arith.addf %434, %437 : vector<16x640xf32>
    %c0_453 = arith.constant 0 : index
    %c0_454 = arith.constant 0 : index
    %c128_455 = arith.constant 128 : index
    %439 = vector.load %arg1[%c0_453, %c0_454, %c128_455] : memref<1x16x896xf32, #tpu.memory_space<vmem>>, vector<1x16x640xf32>
    %440 = vector.shape_cast %439 : vector<1x16x640xf32> to vector<16x640xf32>
    %441 = arith.subf %440, %438 : vector<16x640xf32>
    %442 = arith.mulf %440, %441 : vector<16x640xf32>
    %c0_456 = arith.constant 0 : index
    %c0_457 = arith.constant 0 : index
    %c0_458 = arith.constant 0 : index
    %443 = vector.load %arg5[%c0_456, %c0_457, %c0_458] : memref<1x16x640xf32, #tpu.memory_space<vmem>>, vector<1x16x640xf32>
    %444 = vector.shape_cast %443 : vector<1x16x640xf32> to vector<16x640xf32>
    %445 = vector.shape_cast %442 : vector<16x640xf32> to vector<1x16x640xf32>
    tpu.vector_store %arg5[%c0_456, %c0_457, %c0_458], %445 {strides = array<i32>} : memref<1x16x640xf32, #tpu.memory_space<vmem>>, vector<1x16x640xf32>,
    return
  }
  func.func @transform_0(%arg0: i32) -> (i32, i32, i32) {
    %c0_i32 = arith.constant 0 : i32
    %c0_i32_0 = arith.constant 0 : i32
    %c0_i32_1 = arith.constant 0 : i32
    return %arg0, %c0_i32, %c0_i32_0 : i32, i32, i32
  }
  func.func @transform_1(%arg0: i32) -> (i32, i32, i32, i32) {
    %c0_i32 = arith.constant 0 : i32
    %c0_i32_0 = arith.constant 0 : i32
    %c0_i32_1 = arith.constant 0 : i32
    %c0_i32_2 = arith.constant 0 : i32
    %c0_i32_3 = arith.constant 0 : i32
    return %c0_i32, %c0_i32_0, %c0_i32_1, %c0_i32_2 : i32, i32, i32, i32
  }
  func.func @transform_2(%arg0: i32) -> (i32, i32, i32) {
    %c0_i32 = arith.constant 0 : i32
    %c0_i32_0 = arith.constant 0 : i32
    %c0_i32_1 = arith.constant 0 : i32
    %c0_i32_2 = arith.constant 0 : i32
    return %c0_i32, %c0_i32_0, %c0_i32_1 : i32, i32, i32
  }
  func.func @transform_3(%arg0: i32) -> (i32, i32) {
    %c0_i32 = arith.constant 0 : i32
    %c0_i32_0 = arith.constant 0 : i32
    %c0_i32_1 = arith.constant 0 : i32
    return %c0_i32, %c0_i32_0 : i32, i32
  }
  func.func @transform_4(%arg0: i32) -> (i32, i32, i32) {
    %c0_i32 = arith.constant 0 : i32
    %c0_i32_0 = arith.constant 0 : i32
    %c0_i32_1 = arith.constant 0 : i32
    return %arg0, %c0_i32, %c0_i32_0 : i32, i32, i32
  }
}

</mosaic_0001>

<bundles_post_ra>
// kernel: lircnn_forward.1
= control target key start
LH: loop header
LB: loop body
LE: loop exit
PB: predicated region body
PF: predicated region fallthrough
CT: control target
= control target key end

     0   :  { %s12978_s15 = smov 0   ;;  %s14855_s0 = inlined_call_operand.vmem [shape: f32[2,16,896], index: 0, kind: input, shape index: {}]   ;;  %s14856_s1 = inlined_call_operand.vmem [shape: bf16[7,9,16,16], index: 1, kind: input, shape index: {}]   ;;  %s14857_s2 = inlined_call_operand.vmem [shape: f32[7,16,1], index: 2, kind: input, shape index: {}]   ;;  %s14858_s3 = inlined_call_operand.vmem [shape: f32[1,640], index: 3, kind: input, shape index: {}]   ;;  %s14859_s4 = inlined_call_operand.vmem [shape: f32[2,16,640], index: 4, kind: output, shape index: {}]  }
   0x1 LB: > { %s11449_s16 = sadd.s32 4294967295, %s12915_s15   ;;  %p11453_p0 = scmp.ge.s32.totalorder %s12915_s15, 1  ;;  %s12915_s15 = sphi %s12978_s15, %s14_s15  }
   0x2   : > { %p162_p1 = scmp.lt.s32.totalorder %s12915_s15, 3 }
   0x4   : > { %p163_p2 = pnand %p11453_p0, %p162_p1 }
   0x5   : > { %p188_p3 = scmp.lt.s32.totalorder (!%p163_p2), %s11449_s16, 1  ;;  %v12917_v0 = vmov (!%p163_p2), 0   ;;  %s12918_s21 = smov (!%p163_p2), 24   ;;  %v1774_v24 = vld [vmem:[%s14857_s2] sm:$0xff] (!%p163_p2)  ;;  %v1775_v25 = vld [vmem:[%s14857_s2 + $0x8] sm:$0xff] (!%p163_p2)  ;;  %vm14877_vm0 = vcmask (!%p163_p2), 195584  }
   0x6   : > { %166 = sbr.rel (%p163_p2) target bundleno = 3229 (0xc9d), region = 36  ;;  %323 = vmatprep.mubr.bf16.mxu0 (!%p163_p2), %v12917_v0  ;;  %366 = vmatprep.mubr.bf16.mxu1 (!%p163_p2), %v12917_v0  ;;  %s14882_s22 = smov (!%p163_p2), 25   ;;  %v12846_v30 = vld [vmem:[%s14856_s1 + $0x8] sm:$0xff] (!%p163_p2)   ;;  %vm287_vm1 = vcmask (!%p163_p2), 130048   ;;  %v12926_v32 = vmov (!%p163_p2), 0.0   ;;  %vm14876_vm2 = vcmask (!%p163_p2), 203776  }
   0x7   : > { %12844 = vset.pattern.permute.xlu0 (!%p163_p2), %v12917_v0  ;;  %12845 = vset.pattern.permute.xlu1 (!%p163_p2), %v12917_v0  ;;  %s14880_s23 = smov (!%p163_p2), 23   ;;  %s14870_s24 = smov (!%p163_p2), 1   ;;  %vm12927_vm3 = vmmov (!%p163_p2), 0   ;;  %vm14875_vm4 = vcmask (!%p163_p2), 187392   ;;  %v12847_v47 = vld [vmem:[%s14856_s1] sm:$0xff] (!%p163_p2)   ;;  %v12848_v59 = vld [vmem:[%s14856_s1 + $0x10] sm:$0xff] (!%p163_p2)  }
   0x8   : > { %s14868_s25 = smov (!%p163_p2), 127   ;;  %s14866_s26 = smov (!%p163_p2), 105   ;;  %vm14874_vm5 = vcmask (!%p163_p2), 7168   ;;  %vm14873_vm6 = vcmask (!%p163_p2), 1039360   ;;  %vm14872_vm7 = vcmask (!%p163_p2), 859136   ;;  %vm14861_vm8 = vcmask (!%p163_p2), 850944  }
   0x9   : > { %s14864_s27 = smov (!%p163_p2), 104   ;;  %s14862_s28 = smov (!%p163_p2), 103   ;;  %vm14860_vm9 = vcmask (!%p163_p2), 842752   ;;  %vm1873_vm10 = vcmask (!%p163_p2), 392192   ;;  %vm2031_vm11 = vcmask (!%p163_p2), 408576   ;;  %vm2192_vm12 = vcmask (!%p163_p2), 375808  }
   0xa   : > { %s12928_s12 = smov (!%p163_p2), 48   ;;  %s12930_s13 = smov (!%p163_p2), 50   ;;  %vm14886_vm13 = vcmask (!%p163_p2), 15360   ;;  %vm14885_vm14 = vcmask (!%p163_p2), 1031168   ;;  %vm14884_vm15 = vcmask (!%p163_p2), 670720  }
   0xb   : > { %s12931_s14 = smov (!%p163_p2), 46   ;;  %s12933_s18 = smov (!%p163_p2), 126  }
   0xc   : > { %s12934_s19 = smov (!%p163_p2), 82   ;;  %s12935_s29 = smov (!%p163_p2), 80  }
   0xd   : > { %s14960_s16 = smov (!%p188_p3, %s11449_s16), 1  ;;  %s12936_s30 = smov 78  }
   0xe   : > { %s12798_s17 = smul.u32 112, %s14960_s16  ;;  %s12937_s6 = smov 72  }
   0xf   : > { %s12938_s7 = smov 75   ;;  %s12939_s8 = smov 69  }
  0x10   : > { %s12992_s20 = scalar_lea.vmem %s14855_s0, %s12798_s17  ;;  %s12932_s17 = smov 2  }
  0x11   : > { %v231_v1 = vld [vmem:[%s12992_s20 + $0x8] sm:$0xff]  ;;  %v237_v2 = vld [vmem:[%s12992_s20 + $0x40] sm:$0xff]  ;;  %v236_v5 = vld [vmem:[%s12992_s20 + $0x38] sm:$0xff]  ;;  %s12940_s9 = smov 3   ;;  %s12941_s10 = smov 125  }
  0x12   : > { %v230_v3 = vld [vmem:[%s12992_s20] sm:$0xff]  ;;  %v13001_v4 = vpack.c.bf16 %v237_v2, %v231_v1  ;;  %v232_v6 = vld [vmem:[%s12992_s20 + $0x10] sm:$0xff]  ;;  %v238_v7 = vld [vmem:[%s12992_s20 + $0x48] sm:$0xff]  ;;  %s12942_s11 = smov 59   ;;  %s12943_s5 = smov 56  }
  0x13   : > { %v242_v8 = vpack.c.bf16 %v236_v5, %v230_v3  ;;  %v233_v9 = vld [vmem:[%s12992_s20 + $0x18] sm:$0xff]  ;;  %v239_v10 = vld [vmem:[%s12992_s20 + $0x50] sm:$0xff]  ;;  %v13010_v11 = vpack.c.bf16 %v238_v7, %v232_v6  ;;  %v234_v12 = vld [vmem:[%s12992_s20 + $0x20] sm:$0xff] }
  0x14   : > { %266 = vrot.lane.b32.xlu0 %v13001_v4, %s12918_s21  ;;  %v240_v13 = vld [vmem:[%s12992_s20 + $0x58] sm:$0xff]  ;;  %v13015_v14 = vpack.c.bf16 %v239_v10, %v233_v9  ;;  %v235_v15 = vld [vmem:[%s12992_s20 + $0x28] sm:$0xff]  ;;  %v241_v16 = vld [vmem:[%s12992_s20 + $0x60] sm:$0xff] }
  0x15   : > { %264 = vrot.lane.b32.xlu1 %v242_v8, %s12918_s21  ;;  %v13021_v17 = vpack.c.bf16 %v240_v13, %v234_v12  ;;  %v13025_v18 = vpack.c.bf16 %v241_v16, %v235_v15  ;;  %v1071_v19 = vld [vmem:[%s12992_s20 + $0x30] sm:$0xff]  ;;  %v1077_v20 = vld [vmem:[%s12992_s20 + $0x68] sm:$0xff]  ;;  %v12849_v12 = vld [vmem:[%s14856_s1 + $0x18] sm:$0xff]  }
  0x16   : > { %v1083_v21 = vpack.c.bf16 %v1077_v20, %v1071_v19 }
  0x18   : > { %268 = vrot.lane.b32.xlu0 %v13010_v11, %s12918_s21 }
  0x19   : > { %270 = vrot.lane.b32.xlu1 %v13015_v14, %s12918_s21 }
  0x1c   : > { %272 = vrot.lane.b32.xlu0 %v13021_v17, %s12918_s21 }
  0x1d   : > { %274 = vrot.lane.b32.xlu1 %v13025_v18, %s12918_s21 }
  0x20   : > { %425 = vrot.lane.b32.xlu0 %v13001_v4, %s14882_s22 }
  0x21   : > { %427 = vrot.lane.b32.xlu1 %v13010_v11, %s14882_s22 }
  0x24   : > { %423 = vrot.lane.b32.xlu0 %v242_v8, %s14882_s22 }
  0x25   : > { %429 = vrot.lane.b32.xlu1 %v13015_v14, %s14882_s22 }
  0x28   : > { %431 = vrot.lane.b32.xlu0 %v13021_v17, %s14882_s22 }
  0x29   : > { %586 = vrot.lane.b32.xlu1 %v13001_v4, %s14880_s23 }
  0x2c   : > { %588 = vrot.lane.b32.xlu0 %v13010_v11, %s14880_s23 }
  0x2d   : > { %584 = vrot.lane.b32.xlu1 %v242_v8, %s14880_s23 }
  0x30   : > { %433 = vrot.lane.b32.xlu0 %v13025_v18, %s14882_s22 }
  0x31   : > { %590 = vrot.lane.b32.xlu1 %v13015_v14, %s14880_s23 }
  0x34   : > { %592 = vrot.lane.b32.xlu0 %v13021_v17, %s14880_s23 }
  0x35   : > { %594 = vrot.lane.b32.xlu1 %v13025_v18, %s14880_s23 }
  0x38   : > { %757 = vrot.lane.b32.xlu0 %v13001_v4, %s14870_s24 }
  0x39   : > { %759 = vrot.lane.b32.xlu1 %v13010_v11, %s14870_s24 }
  0x3c   : > { %755 = vrot.lane.b32.xlu0 %v242_v8, %s14870_s24 }
  0x3d   : > { %761 = vrot.lane.b32.xlu1 %v13015_v14, %s14870_s24 }
  0x40   : > { %763 = vrot.lane.b32.xlu0 %v13021_v17, %s14870_s24 }
  0x41   : > { %765 = vrot.lane.b32.xlu1 %v13025_v18, %s14870_s24  ;;  %s12945_s24 = smov 96  }
  0x44   : > { %1100 = vrot.lane.b32.xlu0 %v13010_v11, %s14868_s25 }
  0x45   : > { %1102 = vrot.lane.b32.xlu1 %v13015_v14, %s14868_s25 }
  0x48   : > { %1098 = vrot.lane.b32.xlu0 %v13001_v4, %s14868_s25 }
  0x49   : > { %1104 = vrot.lane.b32.xlu1 %v13021_v17, %s14868_s25 }
  0x4c   : > { %1106 = vrot.lane.b32.xlu0 %v13025_v18, %s14868_s25 }
  0x4d   : > { %1271 = vrot.lane.b32.xlu1 %v13010_v11, %s14866_s26 }
  0x50   : > { %1273 = vrot.lane.b32.xlu0 %v13015_v14, %s14866_s26 }
  0x51   : > { %1269 = vrot.lane.b32.xlu1 %v13001_v4, %s14866_s26 }
  0x54   : > { %1108 = vrot.lane.b32.xlu0 %v1083_v21, %s14868_s25  ;;  %s12946_s25 = smov 100  }
  0x55   : > { %1275 = vrot.lane.b32.xlu1 %v13021_v17, %s14866_s26 }
  0x58   : > { %1277 = vrot.lane.b32.xlu0 %v13025_v18, %s14866_s26 }
  0x59   : > { %1279 = vrot.lane.b32.xlu1 %v1083_v21, %s14866_s26  ;;  %s12947_s26 = smov 92  }
  0x5c   : > { %1442 = vrot.lane.b32.xlu0 %v13010_v11, %s14864_s27 }
  0x5d   : > { %1444 = vrot.lane.b32.xlu1 %v13015_v14, %s14864_s27 }
  0x60   : > { %1440 = vrot.lane.b32.xlu0 %v13001_v4, %s14864_s27 }
  0x61   : > { %1446 = vrot.lane.b32.xlu1 %v13021_v17, %s14864_s27 }
  0x64   : > { %1448 = vrot.lane.b32.xlu0 %v13025_v18, %s14864_s27 }
  0x65   : > { %1613 = vrot.lane.b32.xlu1 %v13010_v11, %s14862_s28 }
  0x68   : > { %1615 = vrot.lane.b32.xlu0 %v13015_v14, %s14862_s28 }
  0x69   : > { %1611 = vrot.lane.b32.xlu1 %v13001_v4, %s14862_s28 }
  0x6c   : > { %1450 = vrot.lane.b32.xlu0 %v1083_v21, %s14864_s27  ;;  %s12948_s27 = smov 4  }
  0x6d   : > { %1617 = vrot.lane.b32.xlu1 %v13021_v17, %s14862_s28 }
  0x70   : > { %1619 = vrot.lane.b32.xlu0 %v13025_v18, %s14862_s28 }
  0x71   : > { %1621 = vrot.lane.b32.xlu1 %v1083_v21, %s14862_s28  ;;  %s12944_s28 = smov 53  }
  0x74   : > { %1778 = vperm.xlu0 %12844, %v1774_v24  }
  0x75   : > { %1783 = vperm.xlu1 %12845, %v1775_v25  }
  0x86   : > { %v267_v22 = vpop.permute.xlu0 %266 }
  0x87   : > { %v265_v23 = vpop.permute.xlu1 %264 }
  0x88   : > { %v277_v29 = vsel %vm14877_vm0, %v265_v23, %v267_v22 }
  0x8a   : > { %v269_v26 = vpop.permute.xlu0 %268 }
  0x8b   : > { %v271_v27 = vpop.permute.xlu1 %270  ;;  %v278_v28 = vsel %vm14877_vm0, %v267_v22, %v269_v26 }
  0x8c   : > { %291 = vmatprep.subr.bf16.mxu0 %v278_v28  ;;  %v279_v36 = vsel %vm14877_vm0, %v269_v26, %v271_v27 }
  0x8d   : > { %292 = vmatpush1.bf16.msra.mxu0 %v277_v29  ;;  %v12851_v29 = vld [vmem:[%s14856_s1 + $0x28] sm:$0xff]  }
  0x8e   : > { %v273_v31 = vpop.permute.xlu0 %272  ;;  %11972 = vmatprep.subr.bf16.mxu0 %v12926_v32 }
  0x8f   : > { %v275_v33 = vpop.permute.xlu1 %274  ;;  %v280_v34 = vsel %vm14877_vm0, %v271_v27, %v273_v31 }
  0x90   : > { %v281_v35 = vsel %vm14877_vm0, %v273_v31, %v275_v33  ;;  %11459 = vmatmul.mubr.msk.bf16.vlgmr.msra.gmra.mrb[0].mxu0 %vm287_vm1, %v12846_v30  ;;  %334 = vmatprep.subr.bf16.mxu1 %v280_v34  ;;  %vm4474_vm0 = vcmask 482304  }
  0x91   : > { %335 = vmatpush1.bf16.msra.mxu1 %v279_v36  ;;  %11973 = vmatpush3.bf16.msra.mxu0 %v281_v35 }
  0x92   : > { %v426_v37 = vpop.permute.xlu0 %425  ;;  %11974 = vmatprep.mubr.msk.bf16.mxu0 %vm12927_vm3, %v12926_v32 }
  0x93   : > { %v428_v38 = vpop.permute.xlu1 %427 }
  0x94   : > { %11460 = vmatmul.mubr.msk.bf16.vlgmr.msra.gmra.mrb[0].mxu1 %vm287_vm1, %v12846_v30  ;;  %v437_v39 = vsel %vm14876_vm2, %v426_v37, %v428_v38 }
  0x95   : > { %449 = vmatprep.subr.bf16.mxu0 %v437_v39  ;;  %524 = vmatprep.mubr.bf16.mxu1 %v12917_v0 }
  0x96   : > { %v424_v40 = vpop.permute.xlu0 %423 }
  0x97   : > { %v436_v41 = vsel %vm14876_vm2, %v424_v40, %v426_v37  ;;  %v430_v42 = vpop.permute.xlu1 %429  ;;  %v12852_v40 = vld [vmem:[%s14856_s1 + $0x30] sm:$0xff]  }
  0x98   : > { %11975 = vmatmul.mubr.msk.bf16.vlgmr.msra.gmra.mrb[4].mxu0 %vm287_vm1, %v12846_v30  ;;  %v438_v44 = vsel %vm14876_vm2, %v428_v38, %v430_v42 }
  0x99   : > { %450 = vmatpush1.bf16.msra.mxu0 %v436_v41  ;;  %481 = vmatprep.mubr.bf16.mxu0 %v12917_v0 }
  0x9a   : > { %v432_v43 = vpop.permute.xlu0 %431 }
  0x9b   : > { %v587_v45 = vpop.permute.xlu1 %586  ;;  %v439_v46 = vsel %vm14876_vm2, %v430_v42, %v432_v43 }
  0x9c   : > { %492 = vmatprep.subr.bf16.mxu1 %v439_v46 }
  0x9d   : > { %493 = vmatpush1.bf16.msra.mxu1 %v438_v44 }
  0x9e   : > { %v589_v48 = vpop.permute.xlu0 %588  ;;  %11978 = vmatprep.subr.bf16.mxu1 %v12926_v32 }
  0x9f   : > { %v585_v49 = vpop.permute.xlu1 %584  ;;  %v598_v50 = vsel %vm14875_vm4, %v587_v45, %v589_v48 }
  0xa0   : > { %v597_v51 = vsel %vm14875_vm4, %v585_v49, %v587_v45  ;;  %11463 = vmatmul.mubr.msk.bf16.vlgmr.msra.gmra.mrb[0].mxu0 %vm287_vm1, %v12847_v47  ;;  %11464 = vmatmul.mubr.msk.bf16.vlgmr.msra.gmra.mrb[0].mxu1 %vm287_vm1, %v12847_v47 }
  0xa1   : > { %610 = vmatprep.subr.bf16.mxu0 %v598_v50  ;;  %11980 = vmatprep.mubr.msk.bf16.mxu1 %vm12927_vm3, %v12926_v32  ;;  %v12853_v50 = vld [vmem:[%s14856_s1 + $0x38] sm:$0xff]  }
  0xa2   : > { %v434_v52 = vpop.permute.xlu0 %433  ;;  %611 = vmatpush1.bf16.msra.mxu0 %v597_v51  ;;  %642 = vmatprep.mubr.bf16.mxu0 %v12917_v0 }
  0xa3   : > { %v440_v53 = vsel %vm14876_vm2, %v432_v43, %v434_v52  ;;  %v591_v54 = vpop.permute.xlu1 %590  ;;  %11984 = vmatprep.subr.bf16.mxu0 %v12926_v32  ;;  %vm4303_vm2 = vcmask 1022976  }
  0xa4   : > { %11979 = vmatpush3.bf16.msra.mxu1 %v440_v53  ;;  %v599_v58 = vsel %vm14875_vm4, %v589_v48, %v591_v54 }
  0xa6   : > { %v593_v55 = vpop.permute.xlu0 %592 }
  0xa7   : > { %v600_v56 = vsel %vm14875_vm4, %v591_v54, %v593_v55  ;;  %v595_v57 = vpop.permute.xlu1 %594 }
  0xa8   : > { %11981 = vmatmul.mubr.msk.bf16.vlgmr.msra.gmra.mrb[4].mxu1 %vm287_vm1, %v12847_v47  ;;  %653 = vmatprep.subr.bf16.mxu1 %v600_v56  ;;  %v601_v61 = vsel %vm14875_vm4, %v593_v55, %v595_v57  ;;  %vm3960_vm4 = vcmask 23552  }
  0xa9   : > { %654 = vmatpush1.bf16.msra.mxu1 %v599_v58  ;;  %685 = vmatprep.mubr.bf16.mxu1 %v12917_v0  ;;  %v12854_v58 = vld [vmem:[%s14856_s1 + $0x40] sm:$0xff]  }
  0xaa   : > { %v758_v60 = vpop.permute.xlu0 %757 }
  0xab   : > { %v760_v62 = vpop.permute.xlu1 %759 }
  0xac   : > { %11469 = vmatmul.mubr.msk.bf16.vlgmr.msra.gmra.mrb[0].mxu0 %vm287_vm1, %v12848_v59  ;;  %v769_v63 = vsel %vm14874_vm5, %v758_v60, %v760_v62 }
  0xad   : > { %11985 = vmatpush3.bf16.msra.mxu0 %v601_v61  ;;  %11986 = vmatprep.mubr.msk.bf16.mxu0 %vm12927_vm3, %v12926_v32 }
  0xae   : > { %v756_v1 = vpop.permute.xlu0 %755  ;;  %781 = vmatprep.subr.bf16.mxu0 %v769_v63 }
  0xaf   : > { %v762_v2 = vpop.permute.xlu1 %761  ;;  %v768_v3 = vsel %vm14874_vm5, %v756_v1, %v758_v60 }
  0xb0   : > { %11470 = vmatmul.mubr.msk.bf16.vlgmr.msra.gmra.mrb[0].mxu1 %vm287_vm1, %v12848_v59  ;;  %v770_v6 = vsel %vm14874_vm5, %v760_v62, %v762_v2 }
  0xb1   : > { %856 = vmatprep.mubr.bf16.mxu1 %v12917_v0 }
  0xb2   : > { %v764_v5 = vpop.permute.xlu0 %763 }
  0xb3   : > { %v771_v7 = vsel %vm14874_vm5, %v762_v2, %v764_v5  ;;  %v766_v8 = vpop.permute.xlu1 %765 }
  0xb4   : > { %11987 = vmatmul.mubr.msk.bf16.vlgmr.msra.gmra.mrb[8].mxu0 %vm287_vm1, %v12848_v59  ;;  %824 = vmatprep.subr.bf16.mxu1 %v771_v7  ;;  %v772_v13 = vsel %vm14874_vm5, %v764_v5, %v766_v8  ;;  %vm3789_vm5 = vcmask 564224  }
  0xb5   : > { %782 = vmatpush1.bf16.msra.mxu0 %v768_v3  ;;  %825 = vmatpush1.bf16.msra.mxu1 %v770_v6 }
  0xb6   : > { %813 = vmatprep.mubr.bf16.mxu0 %v12917_v0  ;;  %11990 = vmatprep.subr.bf16.mxu1 %v12926_v32  ;;  %v1101_v9 = vpop.permute.xlu0 %1100 }
  0xb7   : > { %929 = vmatprep.subr.bf16.mxu0 %v13010_v11  ;;  %v1103_v10 = vpop.permute.xlu1 %1102 }
  0xba   : > { %v1099_v15 = vpop.permute.xlu0 %1098 }
  0xbb   : > { %v1105_v16 = vpop.permute.xlu1 %1104  ;;  %v1111_v25 = vsel %vm14873_vm6, %v1099_v15, %v1101_v9 }
  0xbc   : > { %11475 = vmatmul.mubr.msk.bf16.vlgmr.msra.gmra.mrb[0].mxu0 %vm287_vm1, %v12849_v12  ;;  %11476 = vmatmul.mubr.msk.bf16.vlgmr.msra.gmra.mrb[0].mxu1 %vm287_vm1, %v12849_v12  ;;  %v1113_v24 = vsel %vm14873_vm6, %v1103_v10, %v1105_v16 }
  0xbd   : > { %11991 = vmatpush3.bf16.msra.mxu1 %v772_v13  ;;  %930 = vmatpush1.bf16.msra.mxu0 %v13001_v4  ;;  %v12850_v4 = vld [vmem:[%s14856_s1 + $0x20] sm:$0xff]  }
  0xbe   : > { %11992 = vmatprep.mubr.msk.bf16.mxu1 %vm12927_vm3, %v12926_v32  ;;  %961 = vmatprep.mubr.bf16.mxu0 %v12917_v0  ;;  %v1107_v11 = vpop.permute.xlu0 %1106 }
  0xbf   : > { %972 = vmatprep.subr.bf16.mxu1 %v13021_v17  ;;  %11996 = vmatprep.subr.bf16.mxu0 %v12926_v32  ;;  %v1272_v20 = vpop.permute.xlu1 %1271  ;;  %v1114_v21 = vsel %vm14873_vm6, %v1105_v16, %v1107_v11  ;;  %v1112_v17 = vsel %vm14873_vm6, %v1101_v9, %v1103_v10 }
  0xc2   : > { %v1274_v19 = vpop.permute.xlu0 %1273 }
  0xc3   : > { %v1270_v23 = vpop.permute.xlu1 %1269 }
  0xc4   : > { %11993 = vmatmul.mubr.msk.bf16.vlgmr.msra.gmra.mrb[8].mxu1 %vm287_vm1, %v12849_v12  ;;  %v1282_v31 = vsel %vm14872_vm7, %v1270_v23, %v1272_v20 }
  0xc5   : > { %973 = vmatpush1.bf16.msra.mxu1 %v13015_v14  ;;  %1004 = vmatprep.mubr.bf16.mxu1 %v12917_v0 }
  0xc6   : > { %1167 = vmatprep.subr.bf16.mxu1 %v1114_v21  ;;  %v1109_v22 = vpop.permute.xlu0 %1108 }
  0xc7   : > { %v1276_v26 = vpop.permute.xlu1 %1275  ;;  %v1115_v30 = vsel %vm14873_vm6, %v1107_v11, %v1109_v22  ;;  %vm3628_vm6 = vcmask 613376  }
  0xc8   : > { %11481 = vmatmul.mubr.msk.bf16.vlgmr.msra.gmra.mrb[0].mxu0 %vm287_vm1, %v12850_v4  ;;  %v1284_v39 = vsel %vm14872_vm7, %v1274_v19, %v1276_v26 }
  0xc9   : > { %11997 = vmatpush3.bf16.msra.mxu0 %v13025_v18  ;;  %11998 = vmatprep.mubr.msk.bf16.mxu0 %vm12927_vm3, %v12926_v32  ;;  %v1283_v18 = vsel %vm14872_vm7, %v1272_v20, %v1274_v19 }
  0xca   : > { %1124 = vmatprep.subr.bf16.mxu0 %v1112_v17  ;;  %v1278_v14 = vpop.permute.xlu0 %1277 }
  0xcb   : > { %v1280_v28 = vpop.permute.xlu1 %1279  ;;  %v1285_v33 = vsel %vm14872_vm7, %v1276_v26, %v1278_v14 }
  0xcc   : > { %11482 = vmatmul.mubr.msk.bf16.vlgmr.msra.gmra.mrb[0].mxu1 %vm287_vm1, %v12850_v4  ;;  %v1286_v41 = vsel %vm14872_vm7, %v1278_v14, %v1280_v28  ;;  %vm3470_vm7 = vcmask 588800  }
  0xcd   : > { %1168 = vmatpush1.bf16.msra.mxu1 %v1113_v24  ;;  %1199 = vmatprep.mubr.bf16.mxu1 %v12917_v0 }
  0xce   : > { %12002 = vmatprep.subr.bf16.mxu1 %v12926_v32  ;;  %v1443_v27 = vpop.permute.xlu0 %1442 }
  0xcf   : > { %v1445_v35 = vpop.permute.xlu1 %1444 }
  0xd0   : > { %11999 = vmatmul.mubr.msk.bf16.vlgmr.msra.gmra.mrb[12].mxu0 %vm287_vm1, %v12850_v4  ;;  %v1454_v42 = vsel %vm14861_vm8, %v1443_v27, %v1445_v35 }
  0xd1   : > { %1125 = vmatpush1.bf16.msra.mxu0 %v1111_v25  ;;  %1156 = vmatprep.mubr.bf16.mxu0 %v12917_v0 }
  0xd2   : > { %1295 = vmatprep.subr.bf16.mxu0 %v1283_v18  ;;  %v1441_v34 = vpop.permute.xlu0 %1440 }
  0xd3   : > { %v1447_v37 = vpop.permute.xlu1 %1446  ;;  %v1453_v46 = vsel %vm14861_vm8, %v1441_v34, %v1443_v27 }
  0xd4   : > { %v1455_v44 = vsel %vm14861_vm8, %v1445_v35, %v1447_v37 }
  0xd6   : > { %v1449_v36 = vpop.permute.xlu0 %1448 }
  0xd7   : > { %v1456_v38 = vsel %vm14861_vm8, %v1447_v37, %v1449_v36  ;;  %v1614_v45 = vpop.permute.xlu1 %1613 }
  0xd8   : > { %11487 = vmatmul.mubr.msk.bf16.vlgmr.msra.gmra.mrb[0].mxu0 %vm287_vm1, %v12851_v29  ;;  %11488 = vmatmul.mubr.msk.bf16.vlgmr.msra.gmra.mrb[0].mxu1 %vm287_vm1, %v12851_v29 }
  0xd9   : > { %12003 = vmatpush3.bf16.msra.mxu1 %v1115_v30  ;;  %1296 = vmatpush1.bf16.msra.mxu0 %v1282_v31 }
  0xda   : > { %12004 = vmatprep.mubr.msk.bf16.mxu1 %vm12927_vm3, %v12926_v32  ;;  %1338 = vmatprep.subr.bf16.mxu1 %v1285_v33  ;;  %v1616_v43 = vpop.permute.xlu0 %1615 }
  0xdb   : > { %1327 = vmatprep.mubr.bf16.mxu0 %v12917_v0  ;;  %12008 = vmatprep.subr.bf16.mxu0 %v12926_v32  ;;  %v1625_v47 = vsel %vm14860_vm9, %v1614_v45, %v1616_v43  ;;  %v1612_v49 = vpop.permute.xlu1 %1611 }
  0xdc   : > { %v1624_v53 = vsel %vm14860_vm9, %v1612_v49, %v1614_v45 }
  0xde   : > { %v1451_v48 = vpop.permute.xlu0 %1450 }
  0xdf   : > { %v1457_v52 = vsel %vm14861_vm8, %v1449_v36, %v1451_v48  ;;  %v1618_v54 = vpop.permute.xlu1 %1617  ;;  %v203_v48 = vld [vmem:[%s14858_s3] sm:$0x1f]  ;;  %vm14878_vm8 = vcmask 637952  }
  0xe0   : > { %12005 = vmatmul.mubr.msk.bf16.vlgmr.msra.gmra.mrb[12].mxu1 %vm287_vm1, %v12851_v29  ;;  %v1626_v57 = vsel %vm14860_vm9, %v1616_v43, %v1618_v54 }
  0xe1   : > { %1339 = vmatpush1.bf16.msra.mxu1 %v1284_v39  ;;  %1370 = vmatprep.mubr.bf16.mxu1 %v12917_v0 }
  0xe2   : > { %1509 = vmatprep.subr.bf16.mxu1 %v1456_v38  ;;  %v1620_v51 = vpop.permute.xlu0 %1619  ;;  %v205_v38 = vlaneseq }
  0xe3   : > { %v1627_v55 = vsel %vm14860_vm9, %v1618_v54, %v1620_v51  ;;  %v1622_v56 = vpop.permute.xlu1 %1621 }
  0xe4   : > { %11493 = vmatmul.mubr.msk.bf16.vlgmr.msra.gmra.mrb[0].mxu0 %vm287_vm1, %v12852_v40  ;;  %v1628_v59 = vsel %vm14860_vm9, %v1620_v51, %v1622_v56  ;;  %v13260_v39 = vshrl.u32 %v205_v38, 7  ;;  %vm14879_vm9 = vcmask 654336  }
  0xe5   : > { %12009 = vmatpush3.bf16.msra.mxu0 %v1286_v41  ;;  %12010 = vmatprep.mubr.msk.bf16.mxu0 %vm12927_vm3, %v12926_v32 }
  0xe6   : > { %1466 = vmatprep.subr.bf16.mxu0 %v1454_v42  ;;  %v215_v56 = vsub.s32 2, %v13260_v39 }
  0xe8   : > { %11494 = vmatmul.mubr.msk.bf16.vlgmr.msra.gmra.mrb[0].mxu1 %vm287_vm1, %v12852_v40 }
  0xe9   : > { %1510 = vmatpush1.bf16.msra.mxu1 %v1455_v44  ;;  %1541 = vmatprep.mubr.bf16.mxu1 %v12917_v0 }
  0xea   : > { %12014 = vmatprep.subr.bf16.mxu1 %v12926_v32 }
  0xec   : > { %12011 = vmatmul.mubr.msk.bf16.vlgmr.msra.gmra.mrb[16].mxu0 %vm287_vm1, %v12852_v40 }
  0xed   : > { %1467 = vmatpush1.bf16.msra.mxu0 %v1453_v46  ;;  %1498 = vmatprep.mubr.bf16.mxu0 %v12917_v0 }
  0xee   : > { %1637 = vmatprep.subr.bf16.mxu0 %v1625_v47  ;;  %v207_v47 = vsub.s32 0, %v13260_v39 }
  0xf3   : > { %v1779_v44 = vpop.permute.xlu0 %1778 }
  0xf4   : > { %11499 = vmatmul.mubr.msk.bf16.vlgmr.msra.gmra.mrb[0].mxu0 %vm287_vm1, %v12853_v50  ;;  %11500 = vmatmul.mubr.msk.bf16.vlgmr.msra.gmra.mrb[0].mxu1 %vm287_vm1, %v12853_v50  ;;  %v1784_v51 = vpop.permute.xlu1 %1783 }
  0xf5   : > { %12015 = vmatpush3.bf16.msra.mxu1 %v1457_v52  ;;  %1638 = vmatpush1.bf16.msra.mxu0 %v1624_v53 }
  0xf6   : > { %12016 = vmatprep.mubr.msk.bf16.mxu1 %vm12927_vm3, %v12926_v32  ;;  %1680 = vmatprep.subr.bf16.mxu1 %v1627_v55 }
  0xf7   : > { %1669 = vmatprep.mubr.bf16.mxu0 %v12917_v0  ;;  %12020 = vmatprep.subr.bf16.mxu0 %v12926_v32 }
  0xfc   : > { %12017 = vmatmul.mubr.msk.bf16.vlgmr.msra.gmra.mrb[16].mxu1 %vm287_vm1, %v12853_v50  ;;  %v211_v50 = vsub.s32 1, %v13260_v39 }
  0xfd   : > { %1681 = vmatpush1.bf16.msra.mxu1 %v1626_v57  ;;  %1712 = vmatprep.mubr.bf16.mxu1 %v12917_v0  ;;  %v219_v57 = vsub.s32 3, %v13260_v39 }
 0x100   : > { %11505 = vmatmul.mubr.msk.bf16.vlgmr.msra.gmra.mrb[0].mxu0 %vm287_vm1, %v12854_v58 }
 0x101   : > { %12021 = vmatpush3.bf16.msra.mxu0 %v1628_v59  ;;  %12022 = vmatprep.mubr.msk.bf16.mxu0 %vm12927_vm3, %v12926_v32 }
 0x104   : > { %11506 = vmatmul.mubr.msk.bf16.vlgmr.msra.gmra.mrb[0].mxu1 %vm287_vm1, %v12854_v58 }
 0x105   : > { %1919 = vmatprep.mubr.bf16.mxu1 %v12917_v0 }
 0x108   : > { %12023 = vmatmul.mubr.msk.bf16.vlgmr.msra.gmra.mrb[20].mxu0 %vm287_vm1, %v12854_v58  ;;  %v13269_v58 = vrot.slane %v203_v48, %v207_v47  ;;  %v11562_v47 = vld [vmem:[%s14857_s2 + $0x10] sm:$0xff] }
 0x109   : > { %1962 = vmatprep.mubr.bf16.mxu0 %v12917_v0 }
 0x16b   : > { %v411_v60 = vpop.f32.mrb[4].mxu0 }
 0x16c   : > { %v11976_v61 = vpop.f32.mrb[5].mxu0 }
 0x16d   : > { %v414_v62 = vpop.f32.mrb[6].mxu0 }
 0x16e   : > { %v11977_v63 = vpop.f32.mrb[7].mxu0 }
 0x17b   : > { %v569_v1 = vpop.f32.mrb[4].mxu1 }
 0x17c   : > { %v570_v2 = vadd.f32 %v569_v1, %v411_v60  ;;  %v11982_v3 = vpop.f32.mrb[5].mxu1 }
 0x17d   : > { %v572_v5 = vpop.f32.mrb[6].mxu1 }
 0x17e   : > { %v573_v6 = vadd.f32 %v572_v5, %v414_v62  ;;  %v11983_v7 = vpop.f32.mrb[7].mxu1  ;;  %v13271_v62 = vrot.slane %v203_v48, %v211_v50 }
 0x187   : > { %v730_v8 = vpop.f32.mrb[8].mxu0 }
 0x188   : > { %v741_v9 = vadd.f32 %v730_v8, %v570_v2  ;;  %v11988_v10 = vpop.f32.mrb[9].mxu0  ;;  %v13273_v8 = vrot.slane %v203_v48, %v215_v56 }
 0x189   : > { %v733_v12 = vpop.f32.mrb[10].mxu0 }
 0x18a   : > { %v746_v13 = vadd.f32 %v733_v12, %v573_v6  ;;  %v11989_v15 = vpop.f32.mrb[11].mxu0 }
 0x197   : > { %v901_v16 = vpop.f32.mrb[8].mxu1 }
 0x198   : > { %v912_v11 = vadd.f32 %v901_v16, %v741_v9  ;;  %v11994_v19 = vpop.f32.mrb[9].mxu1  ;;  %v13275_v9 = vrot.slane %v203_v48, %v219_v57 }
 0x199   : > { %v904_v20 = vpop.f32.mrb[10].mxu1 }
 0x19a   : > { %v917_v21 = vadd.f32 %v904_v20, %v746_v13  ;;  %v11995_v4 = vpop.f32.mrb[11].mxu1 }
 0x1a3   : > { %v1049_v17 = vpop.f32.mrb[12].mxu0 }
 0x1a4   : > { %v1060_v22 = vadd.f32 %v1049_v17, %v912_v11  ;;  %v12000_v23 = vpop.f32.mrb[13].mxu0 }
 0x1a5   : > { %v1052_v24 = vpop.f32.mrb[14].mxu0 }
 0x1a6   : > { %v1065_v14 = vadd.f32 %v1052_v24, %v917_v21  ;;  %v12001_v25 = vpop.f32.mrb[15].mxu0 }
 0x1b3   : > { %v1244_v26 = vpop.f32.mrb[12].mxu1 }
 0x1b4   : > { %v1255_v18 = vadd.f32 %v1244_v26, %v1060_v22  ;;  %v12006_v27 = vpop.f32.mrb[13].mxu1 }
 0x1b5   : > { %v1247_v28 = vpop.f32.mrb[14].mxu1 }
 0x1b6   : > { %v1260_v29 = vadd.f32 %v1247_v28, %v1065_v14  ;;  %v12007_v30 = vpop.f32.mrb[15].mxu1  ;;  %v223_v14 = vsub.s32 4, %v13260_v39 }
 0x1b8   : > { %v13296_v38 = vrot.slane %v203_v48, %v223_v14  ;;  %v11563_v48 = vld [vmem:[%s14857_s2 + $0x18] sm:$0xff] }
 0x1b9   : > { %v12857_v14 = vld [vmem:[%s14856_s1 + $0x58] sm:$0xff]  }
 0x1bf   : > { %v1415_v31 = vpop.f32.mrb[16].mxu0 }
 0x1c0   : > { %v1426_v33 = vadd.f32 %v1415_v31, %v1255_v18  ;;  %v12012_v34 = vpop.f32.mrb[17].mxu0 }
 0x1c1   : > { %v1418_v35 = vpop.f32.mrb[18].mxu0 }
 0x1c2   : > { %v1431_v36 = vadd.f32 %v1418_v35, %v1260_v29  ;;  %v12013_v37 = vpop.f32.mrb[19].mxu0 }
 0x1cf   : > { %v1586_v40 = vpop.f32.mrb[16].mxu1 }
 0x1d0   : > { %v1597_v41 = vadd.f32 %v1586_v40, %v1426_v33  ;;  %v12018_v42 = vpop.f32.mrb[17].mxu1 }
 0x1d1   : > { %v1589_v43 = vpop.f32.mrb[18].mxu1 }
 0x1d2   : > { %v1602_v45 = vadd.f32 %v1589_v43, %v1431_v36  ;;  %v12019_v46 = vpop.f32.mrb[19].mxu1  ;;  %v12929_v43 = vmov 0.0|0.0  }
 0x1d3   : > { %v1671_v49 = vpop.f32.mrb[0].mxu0 }
 0x1d4   : > { %v1786_v52 = vadd.f32 %v1779_v44, %v1671_v49  ;;  %v1673_v53 = vpop.f32.mrb[1].mxu0 }
 0x1d5   : > { %v1787_v54 = vadd.f32 %v1779_v44, %v1673_v53  ;;  %v1675_v55 = vpop.f32.mrb[2].mxu0 }
 0x1d6   : > { %v1796_v59 = vmax.f32 %v1786_v52, 0.0  ;;  %v1791_v60 = vadd.f32 %v1784_v51, %v1675_v55  ;;  %v1677_v61 = vpop.f32.mrb[3].mxu0  ;;  %v12855_v55 = vld [vmem:[%s14856_s1 + $0x50] sm:$0xff]  }
 0x1d7   : > { %v1797_v63 = vmax.f32 %v1787_v54, 0.0  ;;  %v1792_v1 = vadd.f32 %v1784_v51, %v1677_v61  ;;  %v1714_v2 = vpop.f32.mrb[0].mxu1 }
 0x1d8   : > { %v1801_v3 = vmax.f32 %v1791_v60, 0.0  ;;  %v1788_v5 = vadd.f32 %v1779_v44, %v1714_v2  ;;  %v1716_v6 = vpop.f32.mrb[1].mxu1  ;;  %v1806_v13 = vmul.f32 %v1796_v59, %v13269_v58 }
 0x1d9   : > { %v1802_v7 = vmax.f32 %v1792_v1, 0.0  ;;  %v1789_v10 = vadd.f32 %v1779_v44, %v1716_v6  ;;  %v1718_v12 = vpop.f32.mrb[2].mxu1  ;;  %v1807_v20 = vmul.f32 %v1797_v63, %v13271_v62 }
 0x1da   : > { %v1811_v15 = vmul.f32 %v1801_v3, %v13269_v58  ;;  %v1798_v16 = vmax.f32 %v1788_v5, 0.0  ;;  %v1793_v11 = vadd.f32 %v1784_v51, %v1718_v12  ;;  %v1720_v19 = vpop.f32.mrb[3].mxu1  ;;  %v12856_v12 = vld [vmem:[%s14856_s1 + $0x48] sm:$0xff]  }
 0x1db   : > { %v1812_v21 = vmul.f32 %v1802_v7, %v13271_v62  ;;  %v1799_v4 = vmax.f32 %v1789_v10, 0.0  ;;  %v1794_v17 = vadd.f32 %v1784_v51, %v1720_v19  ;;  %v1757_v22 = vpop.f32.mrb[20].mxu0 }
 0x1dc   : > { %v13281_v23 = vpack.c.bf16 %v1811_v15, %v1806_v13  ;;  %v1803_v24 = vmax.f32 %v1793_v11, 0.0  ;;  %v1768_v25 = vadd.f32 %v1757_v22, %v1597_v41  ;;  %v12024_v26 = vpop.f32.mrb[21].mxu0  ;;  %v1808_v29 = vmul.f32 %v1798_v16, %v13273_v8 }
 0x1dd   : > { %v13284_v18 = vpack.c.bf16 %v1812_v21, %v1807_v20  ;;  %v1804_v27 = vmax.f32 %v1794_v17, 0.0  ;;  %v1760_v28 = vpop.f32.mrb[22].mxu0  ;;  %v1809_v35 = vmul.f32 %v1799_v4, %v13275_v9 }
 0x1de   : > { %v1813_v30 = vmul.f32 %v1803_v24, %v13273_v8  ;;  %v1790_v31 = vadd.f32 %v1779_v44, %v1768_v25  ;;  %v1773_v33 = vadd.f32 %v1760_v28, %v1602_v45  ;;  %v12025_v34 = vpop.f32.mrb[23].mxu0  ;;  %1863 = vrot.lane.b32.xlu1 %v13281_v23, %s12928_s12 }
 0x1df   : > { %v1814_v36 = vmul.f32 %v1804_v27, %v13275_v9  ;;  %1865 = vrot.lane.b32.xlu0 %v13284_v18, %s12928_s12 }
 0x1e0   : > { %v13294_v37 = vpack.c.bf16 %v1813_v30, %v1808_v29  ;;  %v1800_v39 = vmax.f32 %v1790_v31, 0.0  ;;  %v1795_v40 = vadd.f32 %v1784_v51, %v1773_v33 }
 0x1e1   : > { %v13298_v41 = vpack.c.bf16 %v1814_v36, %v1809_v35 }
 0x1e2   : > { %v1805_v42 = vmax.f32 %v1795_v40, 0.0  ;;  %1861 = vrot.lane.b32.xlu1 %v12929_v43, %s12928_s12  ;;  %v1810_v44 = vmul.f32 %v1800_v39, %v13296_v38 }
 0x1e3   : > { %1867 = vrot.lane.b32.xlu0 %v13294_v37, %s12928_s12 }
 0x1e4   : > { %v1815_v45 = vmul.f32 %v1805_v42, %v13296_v38 }
 0x1e6   : > { %v13306_v46 = vpack.c.bf16 %v1815_v45, %v1810_v44  ;;  %1869 = vrot.lane.b32.xlu1 %v13298_v41, %s12928_s12  ;;  %v12858_v44 = vld [vmem:[%s14856_s1 + $0x60] sm:$0xff]  }
 0x1e8   : > { %1871 = vrot.lane.b32.xlu0 %v13306_v46, %s12928_s12 }
 0x1ea   : > { %2021 = vrot.lane.b32.xlu1 %v13281_v23, %s12930_s13 }
 0x1ec   : > { %2023 = vrot.lane.b32.xlu0 %v13284_v18, %s12930_s13 }
 0x1ee   : > { %2019 = vrot.lane.b32.xlu1 %v12929_v43, %s12930_s13 }
 0x1f0   : > { %2025 = vrot.lane.b32.xlu0 %v13294_v37, %s12930_s13 }
 0x1f2   : > { %2027 = vrot.lane.b32.xlu1 %v13298_v41, %s12930_s13 }
 0x1f4   : > { %2182 = vrot.lane.b32.xlu0 %v13281_v23, %s12931_s14 }
 0x1f6   : > { %2184 = vrot.lane.b32.xlu1 %v13284_v18, %s12931_s14 }
 0x1f8   : > { %2180 = vrot.lane.b32.xlu0 %v12929_v43, %s12931_s14 }
 0x1fa   : > { %2029 = vrot.lane.b32.xlu1 %v13306_v46, %s12930_s13 }
 0x1fc   : > { %2186 = vrot.lane.b32.xlu0 %v13294_v37, %s12931_s14 }
 0x1fe   : > { %2188 = vrot.lane.b32.xlu1 %v13298_v41, %s12931_s14 }
 0x200   : > { %2190 = vrot.lane.b32.xlu0 %v13306_v46, %s12931_s14 }
 0x202   : > { %2353 = vrot.lane.b32.xlu1 %v13281_v23, %s12932_s17 }
 0x204   : > { %2355 = vrot.lane.b32.xlu0 %v13284_v18, %s12932_s17 }
 0x206   : > { %2351 = vrot.lane.b32.xlu1 %v12929_v43, %s12932_s17 }
 0x208   : > { %2357 = vrot.lane.b32.xlu0 %v13294_v37, %s12932_s17 }
 0x20a   : > { %2359 = vrot.lane.b32.xlu1 %v13298_v41, %s12932_s17 }
 0x20c   : > { %2361 = vrot.lane.b32.xlu0 %v13306_v46, %s12932_s17 }
 0x20e   : > { %2696 = vrot.lane.b32.xlu1 %v13284_v18, %s12933_s18 }
 0x210   : > { %2698 = vrot.lane.b32.xlu0 %v13294_v37, %s12933_s18 }
 0x212   : > { %2694 = vrot.lane.b32.xlu1 %v13281_v23, %s12933_s18 }
 0x214   : > { %2700 = vrot.lane.b32.xlu0 %v13298_v41, %s12933_s18 }
 0x216   : > { %2702 = vrot.lane.b32.xlu1 %v13306_v46, %s12933_s18 }
 0x218   : > { %2867 = vrot.lane.b32.xlu0 %v13284_v18, %s12934_s19 }
 0x21a   : > { %2869 = vrot.lane.b32.xlu1 %v13294_v37, %s12934_s19 }
 0x21c   : > { %2865 = vrot.lane.b32.xlu0 %v13281_v23, %s12934_s19 }
 0x21e   : > { %2704 = vrot.lane.b32.xlu1 %v12929_v43, %s12933_s18 }
 0x220   : > { %2871 = vrot.lane.b32.xlu0 %v13298_v41, %s12934_s19 }
 0x222   : > { %2873 = vrot.lane.b32.xlu1 %v13306_v46, %s12934_s19 }
 0x224   : > { %2875 = vrot.lane.b32.xlu0 %v12929_v43, %s12934_s19 }
 0x226   : > { %3038 = vrot.lane.b32.xlu1 %v13284_v18, %s12935_s29 }
 0x228   : > { %3040 = vrot.lane.b32.xlu0 %v13294_v37, %s12935_s29 }
 0x22a   : > { %3036 = vrot.lane.b32.xlu1 %v13281_v23, %s12935_s29 }
 0x22c   : > { %3042 = vrot.lane.b32.xlu0 %v13298_v41, %s12935_s29 }
 0x22e   : > { %3044 = vrot.lane.b32.xlu1 %v13306_v46, %s12935_s29 }
 0x230   : > { %3209 = vrot.lane.b32.xlu0 %v13284_v18, %s12936_s30 }
 0x232   : > { %3211 = vrot.lane.b32.xlu1 %v13294_v37, %s12936_s30 }
 0x234   : > { %3207 = vrot.lane.b32.xlu0 %v13281_v23, %s12936_s30 }
 0x236   : > { %3046 = vrot.lane.b32.xlu1 %v12929_v43, %s12935_s29 }
 0x238   : > { %3213 = vrot.lane.b32.xlu0 %v13298_v41, %s12936_s30 }
 0x23a   : > { %3215 = vrot.lane.b32.xlu1 %v13306_v46, %s12936_s30 }
 0x23c   : > { %3217 = vrot.lane.b32.xlu0 %v12929_v43, %s12936_s30 }
 0x23e   : > { %3375 = vperm.xlu1 %12845, %v11562_v47  }
 0x240   : > { %3380 = vperm.xlu0 %12844, %v11563_v48  }
 0x250   : > { %v1864_v49 = vpop.permute.xlu1 %1863 }
 0x251   : > { %v1866_v50 = vpop.permute.xlu0 %1865 }
 0x252   : > { %v1875_v51 = vsel %vm1873_vm10, %v1864_v49, %v1866_v50 }
 0x253   : > { %1887 = vmatprep.subr.bf16.mxu1 %v1875_v51 }
 0x254   : > { %v1862_v52 = vpop.permute.xlu1 %1861 }
 0x255   : > { %v1874_v53 = vsel %vm1873_vm10, %v1862_v52, %v1864_v49  ;;  %v1868_v54 = vpop.permute.xlu0 %1867 }
 0x256   : > { %1888 = vmatpush1.bf16.msra.mxu1 %v1874_v53  ;;  %v1876_v60 = vsel %vm1873_vm10, %v1866_v50, %v1868_v54 }
 0x257   : > { %12026 = vmatprep.subr.bf16.mxu1 %v12926_v32 }
 0x258   : > { %v1870_v56 = vpop.permute.xlu1 %1869 }
 0x259   : > { %11513 = vmatmul.mubr.msk.bf16.vlgmr.msra.gmra.mrb[20].mxu1 %vm287_vm1, %v12855_v55  ;;  %v1877_v57 = vsel %vm1873_vm10, %v1868_v54, %v1870_v56 }
 0x25a   : > { %v1872_v59 = vpop.permute.xlu0 %1871  ;;  %1930 = vmatprep.subr.bf16.mxu0 %v1877_v57  ;;  %12028 = vmatprep.mubr.msk.bf16.mxu1 %vm12927_vm3, %v12926_v32 }
 0x25b   : > { %v1878_v61 = vsel %vm1873_vm10, %v1870_v56, %v1872_v59  ;;  %1931 = vmatpush1.bf16.msra.mxu0 %v1876_v60  ;;  %v12860_v60 = vld [vmem:[%s14856_s1 + $0x70] sm:$0xff]  }
 0x25c   : > { %12027 = vmatpush3.bf16.msra.mxu1 %v1878_v61  ;;  %v2022_v63 = vpop.permute.xlu1 %2021 }
 0x25e   : > { %v2024_v1 = vpop.permute.xlu0 %2023  ;;  %11514 = vmatmul.mubr.msk.bf16.vlgmr.msra.gmra.mrb[24].mxu0 %vm287_vm1, %v12855_v55 }
 0x25f   : > { %v2033_v2 = vsel %vm2031_vm11, %v2022_v63, %v2024_v1  ;;  %2120 = vmatprep.mubr.bf16.mxu0 %v12917_v0 }
 0x260   : > { %2045 = vmatprep.subr.bf16.mxu1 %v2033_v2  ;;  %v2020_v3 = vpop.permute.xlu1 %2019 }
 0x261   : > { %v2032_v5 = vsel %vm2031_vm11, %v2020_v3, %v2022_v63  ;;  %12029 = vmatmul.mubr.msk.bf16.vlgmr.msra.gmra.mrb[24].mxu1 %vm287_vm1, %v12855_v55 }
 0x262   : > { %v2026_v6 = vpop.permute.xlu0 %2025  ;;  %2046 = vmatpush1.bf16.msra.mxu1 %v2032_v5  ;;  %2077 = vmatprep.mubr.bf16.mxu1 %v12917_v0 }
 0x263   : > { %v2034_v15 = vsel %vm2031_vm11, %v2024_v1, %v2026_v6 }
 0x264   : > { %v2028_v7 = vpop.permute.xlu1 %2027 }
 0x265   : > { %v2035_v10 = vsel %vm2031_vm11, %v2026_v6, %v2028_v7 }
 0x266   : > { %v2183_v13 = vpop.permute.xlu0 %2182  ;;  %2088 = vmatprep.subr.bf16.mxu0 %v2035_v10 }
 0x267   : > { %2089 = vmatpush1.bf16.msra.mxu0 %v2034_v15 }
 0x268   : > { %v2185_v16 = vpop.permute.xlu1 %2184  ;;  %12032 = vmatprep.subr.bf16.mxu0 %v12926_v32 }
 0x269   : > { %11517 = vmatmul.mubr.msk.bf16.vlgmr.msra.gmra.mrb[20].mxu1 %vm287_vm1, %v12856_v12  ;;  %v2194_v11 = vsel %vm2192_vm12, %v2183_v13, %v2185_v16 }
 0x26a   : > { %v2181_v19 = vpop.permute.xlu0 %2180  ;;  %11518 = vmatmul.mubr.msk.bf16.vlgmr.msra.gmra.mrb[24].mxu0 %vm287_vm1, %v12856_v12  ;;  %2206 = vmatprep.subr.bf16.mxu1 %v2194_v11 }
 0x26b   : > { %v2193_v20 = vsel %vm2192_vm12, %v2181_v19, %v2183_v13  ;;  %12034 = vmatprep.mubr.msk.bf16.mxu0 %vm12927_vm3, %v12926_v32  ;;  %2238 = vmatprep.mubr.bf16.mxu1 %v12917_v0 }
 0x26c   : > { %2207 = vmatpush1.bf16.msra.mxu1 %v2193_v20  ;;  %v2030_v21 = vpop.permute.xlu1 %2029 }
 0x26d   : > { %v2036_v4 = vsel %vm2031_vm11, %v2028_v7, %v2030_v21  ;;  %12038 = vmatprep.subr.bf16.mxu1 %v12926_v32  ;;  %v12861_v7 = vld [vmem:[%s14856_s1 + $0x78] sm:$0xff]  }
 0x26e   : > { %v2187_v17 = vpop.permute.xlu0 %2186  ;;  %12033 = vmatpush3.bf16.msra.mxu0 %v2036_v4 }
 0x26f   : > { %v2195_v26 = vsel %vm2192_vm12, %v2185_v16, %v2187_v17 }
 0x270   : > { %v2189_v22 = vpop.permute.xlu1 %2188 }
 0x271   : > { %v2196_v24 = vsel %vm2192_vm12, %v2187_v17, %v2189_v22 }
 0x272   : > { %v2191_v25 = vpop.permute.xlu0 %2190  ;;  %12035 = vmatmul.mubr.msk.bf16.vlgmr.msra.gmra.mrb[28].mxu0 %vm287_vm1, %v12856_v12  ;;  %2249 = vmatprep.subr.bf16.mxu0 %v2196_v24  ;;  %v12862_v24 = vld [vmem:[%s14856_s1 + $0x80] sm:$0xff]  }
 0x273   : > { %v2197_v27 = vsel %vm2192_vm12, %v2189_v22, %v2191_v25  ;;  %2250 = vmatpush1.bf16.msra.mxu0 %v2195_v26  ;;  %2281 = vmatprep.mubr.bf16.mxu0 %v12917_v0 }
 0x274   : > { %v2354_v28 = vpop.permute.xlu1 %2353 }
 0x275   : > { %11523 = vmatmul.mubr.msk.bf16.vlgmr.msra.gmra.mrb[20].mxu1 %vm287_vm1, %v12857_v14 }
 0x276   : > { %12039 = vmatpush3.bf16.msra.mxu1 %v2197_v27  ;;  %v2356_v29 = vpop.permute.xlu0 %2355  ;;  %12040 = vmatprep.mubr.msk.bf16.mxu1 %vm12927_vm3, %v12926_v32 }
 0x277   : > { %v2365_v30 = vsel %vm14886_vm13, %v2354_v28, %v2356_v29 }
 0x278   : > { %2377 = vmatprep.subr.bf16.mxu1 %v2365_v30  ;;  %v2352_v31 = vpop.permute.xlu1 %2351 }
 0x279   : > { %v2364_v35 = vsel %vm14886_vm13, %v2352_v31, %v2354_v28 }
 0x27a   : > { %v2358_v33 = vpop.permute.xlu0 %2357  ;;  %11524 = vmatmul.mubr.msk.bf16.vlgmr.msra.gmra.mrb[24].mxu0 %vm287_vm1, %v12857_v14 }
 0x27b   : > { %2452 = vmatprep.mubr.bf16.mxu0 %v12917_v0  ;;  %v2366_v40 = vsel %vm14886_vm13, %v2356_v29, %v2358_v33  ;;  %v12863_v29 = vld [vmem:[%s14856_s1 + $0x88] sm:$0xff]  }
 0x27c   : > { %v2360_v34 = vpop.permute.xlu1 %2359 }
 0x27d   : > { %12041 = vmatmul.mubr.msk.bf16.vlgmr.msra.gmra.mrb[28].mxu1 %vm287_vm1, %v12857_v14  ;;  %v2367_v36 = vsel %vm14886_vm13, %v2358_v33, %v2360_v34 }
 0x27e   : > { %2378 = vmatpush1.bf16.msra.mxu1 %v2364_v35  ;;  %v2362_v39 = vpop.permute.xlu0 %2361  ;;  %2420 = vmatprep.subr.bf16.mxu0 %v2367_v36 }
 0x27f   : > { %2525 = vmatprep.subr.bf16.mxu1 %v13284_v18  ;;  %2421 = vmatpush1.bf16.msra.mxu0 %v2366_v40  ;;  %v2368_v48 = vsel %vm14886_vm13, %v2360_v34, %v2362_v39  ;;  %vm6413_vm13 = vcmask 228352  }
 0x280   : > { %v2697_v42 = vpop.permute.xlu1 %2696  ;;  %2409 = vmatprep.mubr.bf16.mxu1 %v12917_v0  ;;  %12044 = vmatprep.subr.bf16.mxu0 %v12926_v32 }
 0x282   : > { %v2699_v45 = vpop.permute.xlu0 %2698 }
 0x283   : > { %v2708_v54 = vsel %vm14885_vm14, %v2697_v42, %v2699_v45 }
 0x284   : > { %v2695_v47 = vpop.permute.xlu1 %2694 }
 0x285   : > { %11529 = vmatmul.mubr.msk.bf16.vlgmr.msra.gmra.mrb[20].mxu1 %vm287_vm1, %v12858_v44 }
 0x286   : > { %2526 = vmatpush1.bf16.msra.mxu1 %v13281_v23  ;;  %v2701_v49 = vpop.permute.xlu0 %2700  ;;  %11530 = vmatmul.mubr.msk.bf16.vlgmr.msra.gmra.mrb[24].mxu0 %vm287_vm1, %v12858_v44  ;;  %v12859_v23 = vld [vmem:[%s14856_s1 + $0x68] sm:$0xff]  }
 0x287   : > { %12045 = vmatpush3.bf16.msra.mxu0 %v2368_v48  ;;  %12046 = vmatprep.mubr.msk.bf16.mxu0 %vm12927_vm3, %v12926_v32 }
 0x288   : > { %2568 = vmatprep.subr.bf16.mxu0 %v13298_v41  ;;  %v2703_v18 = vpop.permute.xlu1 %2702  ;;  %2557 = vmatprep.mubr.bf16.mxu1 %v12917_v0 }
 0x289   : > { %12050 = vmatprep.subr.bf16.mxu1 %v12926_v32  ;;  %v2710_v52 = vsel %vm14885_vm14, %v2701_v49, %v2703_v18 }
 0x28a   : > { %v2868_v50 = vpop.permute.xlu0 %2867 }
 0x28c   : > { %v2870_v51 = vpop.permute.xlu1 %2869 }
 0x28d   : > { %v2879_v57 = vsel %vm14884_vm15, %v2868_v50, %v2870_v51 }
 0x28e   : > { %12047 = vmatmul.mubr.msk.bf16.vlgmr.msra.gmra.mrb[32].mxu0 %vm287_vm1, %v12858_v44  ;;  %v2866_v53 = vpop.permute.xlu0 %2865 }
 0x28f   : > { %2569 = vmatpush1.bf16.msra.mxu0 %v13294_v37  ;;  %2600 = vmatprep.mubr.bf16.mxu0 %v12917_v0  ;;  %v2709_v37 = vsel %vm14885_vm14, %v2699_v45, %v2701_v49  ;;  %v2878_v63 = vsel %vm14884_vm15, %v2866_v53, %v2868_v50 }
 0x290   : > { %2763 = vmatprep.subr.bf16.mxu0 %v2710_v52  ;;  %v2705_v41 = vpop.permute.xlu1 %2704 }
 0x291   : > { %11535 = vmatmul.mubr.msk.bf16.vlgmr.msra.gmra.mrb[20].mxu1 %vm287_vm1, %v12859_v23  ;;  %v2711_v1 = vsel %vm14885_vm14, %v2703_v18, %v2705_v41 }
 0x292   : > { %12051 = vmatpush3.bf16.msra.mxu1 %v13306_v46  ;;  %12052 = vmatprep.mubr.msk.bf16.mxu1 %vm12927_vm3, %v12926_v32  ;;  %v2872_v56 = vpop.permute.xlu0 %2871  ;;  %v2707_v46 = vsel %vm14885_vm14, %v2695_v47, %v2697_v42  ;;  %vm5225_vm14 = vcmask 818176  }
 0x293   : > { %2720 = vmatprep.subr.bf16.mxu1 %v2708_v54  ;;  %v2880_v12 = vsel %vm14884_vm15, %v2870_v51, %v2872_v56 }
 0x294   : > { %v2874_v55 = vpop.permute.xlu1 %2873 }
 0x295   : > { %v2881_v3 = vsel %vm14884_vm15, %v2872_v56, %v2874_v55 }
 0x296   : > { %11536 = vmatmul.mubr.msk.bf16.vlgmr.msra.gmra.mrb[24].mxu0 %vm287_vm1, %v12859_v23  ;;  %v2876_v61 = vpop.permute.xlu0 %2875 }
 0x297   : > { %2764 = vmatpush1.bf16.msra.mxu0 %v2709_v37  ;;  %2795 = vmatprep.mubr.bf16.mxu0 %v12917_v0  ;;  %v2882_v15 = vsel %vm14884_vm15, %v2874_v55, %v2876_v61  ;;  %vm5067_vm15 = vcmask 785408  }
 0x298   : > { %12056 = vmatprep.subr.bf16.mxu0 %v12926_v32  ;;  %v3039_v59 = vpop.permute.xlu1 %3038 }
 0x299   : > { %12053 = vmatmul.mubr.msk.bf16.vlgmr.msra.gmra.mrb[32].mxu1 %vm287_vm1, %v12859_v23 }
 0x29a   : > { %2721 = vmatpush1.bf16.msra.mxu1 %v2707_v46  ;;  %2752 = vmatprep.mubr.bf16.mxu1 %v12917_v0  ;;  %v3041_v5 = vpop.permute.xlu0 %3040 }
 0x29b   : > { %2891 = vmatprep.subr.bf16.mxu1 %v2879_v57  ;;  %v3050_v16 = vsel %vm14879_vm9, %v3039_v59, %v3041_v5 }
 0x29c   : > { %v3037_v2 = vpop.permute.xlu1 %3036 }
 0x29d   : > { %v3049_v21 = vsel %vm14879_vm9, %v3037_v2, %v3039_v59 }
 0x29e   : > { %v3043_v10 = vpop.permute.xlu0 %3042 }
 0x29f   : > { %v3051_v20 = vsel %vm14879_vm9, %v3041_v5, %v3043_v10 }
 0x2a0   : > { %v3045_v6 = vpop.permute.xlu1 %3044 }
 0x2a1   : > { %11541 = vmatmul.mubr.msk.bf16.vlgmr.msra.gmra.mrb[20].mxu1 %vm287_vm1, %v12860_v60  ;;  %v3052_v13 = vsel %vm14879_vm9, %v3043_v10, %v3045_v6 }
 0x2a2   : > { %2892 = vmatpush1.bf16.msra.mxu1 %v2878_v63  ;;  %11542 = vmatmul.mubr.msk.bf16.vlgmr.msra.gmra.mrb[24].mxu0 %vm287_vm1, %v12860_v60  ;;  %v3210_v19 = vpop.permute.xlu0 %3209 }
 0x2a3   : > { %12057 = vmatpush3.bf16.msra.mxu0 %v2711_v1  ;;  %12058 = vmatprep.mubr.msk.bf16.mxu0 %vm12927_vm3, %v12926_v32 }
 0x2a4   : > { %2934 = vmatprep.subr.bf16.mxu0 %v2881_v3  ;;  %2923 = vmatprep.mubr.bf16.mxu1 %v12917_v0  ;;  %v3212_v11 = vpop.permute.xlu1 %3211 }
 0x2a5   : > { %12062 = vmatprep.subr.bf16.mxu1 %v12926_v32  ;;  %v3221_v17 = vsel %vm14878_vm8, %v3210_v19, %v3212_v11 }
 0x2a6   : > { %v3208_v22 = vpop.permute.xlu0 %3207 }
 0x2a7   : > { %v3220_v25 = vsel %vm14878_vm8, %v3208_v22, %v3210_v19 }
 0x2a8   : > { %v3047_v4 = vpop.permute.xlu1 %3046 }
 0x2a9   : > { %v3053_v26 = vsel %vm14879_vm9, %v3045_v6, %v3047_v4  ;;  %vm4816_vm9 = vcmask 433152  }
 0x2aa   : > { %12059 = vmatmul.mubr.msk.bf16.vlgmr.msra.gmra.mrb[36].mxu0 %vm287_vm1, %v12860_v60  ;;  %v3214_v27 = vpop.permute.xlu0 %3213 }
 0x2ab   : > { %2935 = vmatpush1.bf16.msra.mxu0 %v2880_v12  ;;  %2966 = vmatprep.mubr.bf16.mxu0 %v12917_v0  ;;  %v3222_v31 = vsel %vm14878_vm8, %v3212_v11, %v3214_v27 }
 0x2ac   : > { %3105 = vmatprep.subr.bf16.mxu0 %v3052_v13  ;;  %v3216_v14 = vpop.permute.xlu1 %3215 }
 0x2ad   : > { %11547 = vmatmul.mubr.msk.bf16.vlgmr.msra.gmra.mrb[20].mxu1 %vm287_vm1, %v12861_v7  ;;  %v3223_v28 = vsel %vm14878_vm8, %v3214_v27, %v3216_v14 }
 0x2ae   : > { %12063 = vmatpush3.bf16.msra.mxu1 %v2882_v15  ;;  %12064 = vmatprep.mubr.msk.bf16.mxu1 %vm12927_vm3, %v12926_v32  ;;  %v3218_v30 = vpop.permute.xlu0 %3217 }
 0x2af   : > { %3062 = vmatprep.subr.bf16.mxu1 %v3050_v16  ;;  %v3224_v33 = vsel %vm14878_vm8, %v3216_v14, %v3218_v30  ;;  %vm4645_vm8 = vcmask 457728  }
 0x2b2   : > { %11548 = vmatmul.mubr.msk.bf16.vlgmr.msra.gmra.mrb[24].mxu0 %vm287_vm1, %v12861_v7 }
 0x2b3   : > { %3106 = vmatpush1.bf16.msra.mxu0 %v3051_v20  ;;  %3137 = vmatprep.mubr.bf16.mxu0 %v12917_v0 }
 0x2b4   : > { %12068 = vmatprep.subr.bf16.mxu0 %v12926_v32 }
 0x2b5   : > { %12065 = vmatmul.mubr.msk.bf16.vlgmr.msra.gmra.mrb[36].mxu1 %vm287_vm1, %v12861_v7 }
 0x2b6   : > { %3063 = vmatpush1.bf16.msra.mxu1 %v3049_v21  ;;  %3094 = vmatprep.mubr.bf16.mxu1 %v12917_v0 }
 0x2b7   : > { %3233 = vmatprep.subr.bf16.mxu1 %v3221_v17 }
 0x2bd   : > { %11553 = vmatmul.mubr.msk.bf16.vlgmr.msra.gmra.mrb[20].mxu1 %vm287_vm1, %v12862_v24  ;;  %v3376_v4 = vpop.permute.xlu1 %3375 }
 0x2be   : > { %3234 = vmatpush1.bf16.msra.mxu1 %v3220_v25  ;;  %11554 = vmatmul.mubr.msk.bf16.vlgmr.msra.gmra.mrb[24].mxu0 %vm287_vm1, %v12862_v24 }
 0x2bf   : > { %12069 = vmatpush3.bf16.msra.mxu0 %v3053_v26  ;;  %12070 = vmatprep.mubr.msk.bf16.mxu0 %vm12927_vm3, %v12926_v32  ;;  %v3381_v27 = vpop.permute.xlu0 %3380 }
 0x2c0   : > { %3276 = vmatprep.subr.bf16.mxu0 %v3223_v28  ;;  %3265 = vmatprep.mubr.bf16.mxu1 %v12917_v0 }
 0x2c1   : > { %12074 = vmatprep.subr.bf16.mxu1 %v12926_v32 }
 0x2c6   : > { %12071 = vmatmul.mubr.msk.bf16.vlgmr.msra.gmra.mrb[40].mxu0 %vm287_vm1, %v12862_v24 }
 0x2c7   : > { %3277 = vmatpush1.bf16.msra.mxu0 %v3222_v31  ;;  %3308 = vmatprep.mubr.bf16.mxu0 %v12917_v0 }
 0x2c9   : > { %11559 = vmatmul.mubr.msk.bf16.vlgmr.msra.gmra.mrb[20].mxu1 %vm287_vm1, %v12863_v29 }
 0x2ca   : > { %12075 = vmatpush3.bf16.msra.mxu1 %v3224_v33  ;;  %12076 = vmatprep.mubr.msk.bf16.mxu1 %vm12927_vm3, %v12926_v32 }
 0x2ce   : > { %11560 = vmatmul.mubr.msk.bf16.vlgmr.msra.gmra.mrb[24].mxu0 %vm287_vm1, %v12863_v29 }
 0x2cf   : > { %3516 = vmatprep.mubr.bf16.mxu0 %v12917_v0 }
 0x2d1   : > { %12077 = vmatmul.mubr.msk.bf16.vlgmr.msra.gmra.mrb[40].mxu1 %vm287_vm1, %v12863_v29 }
 0x2d2   : > { %3559 = vmatprep.mubr.bf16.mxu1 %v12917_v0 }
 0x334   : > { %v2007_v34 = vpop.f32.mrb[24].mxu1 }
 0x335   : > { %v12030_v35 = vpop.f32.mrb[25].mxu1 }
 0x336   : > { %v2010_v36 = vpop.f32.mrb[26].mxu1 }
 0x337   : > { %v12031_v39 = vpop.f32.mrb[27].mxu1 }
 0x345   : > { %v2165_v40 = vpop.f32.mrb[28].mxu0 }
 0x346   : > { %v2166_v42 = vadd.f32 %v2165_v40, %v2007_v34  ;;  %v12036_v44 = vpop.f32.mrb[29].mxu0 }
 0x347   : > { %v2168_v45 = vpop.f32.mrb[30].mxu0 }
 0x348   : > { %v2169_v47 = vadd.f32 %v2168_v45, %v2010_v36  ;;  %v12037_v48 = vpop.f32.mrb[31].mxu0 }
 0x350   : > { %v2326_v49 = vpop.f32.mrb[28].mxu1 }
 0x351   : > { %v2337_v18 = vadd.f32 %v2326_v49, %v2166_v42  ;;  %v12042_v50 = vpop.f32.mrb[29].mxu1 }
 0x352   : > { %v2329_v51 = vpop.f32.mrb[30].mxu1 }
 0x353   : > { %v2342_v23 = vadd.f32 %v2329_v51, %v2169_v47  ;;  %v12043_v52 = vpop.f32.mrb[31].mxu1 }
 0x361   : > { %v2497_v41 = vpop.f32.mrb[32].mxu0 }
 0x362   : > { %v2508_v53 = vadd.f32 %v2497_v41, %v2337_v18  ;;  %v12048_v54 = vpop.f32.mrb[33].mxu0 }
 0x363   : > { %v2500_v55 = vpop.f32.mrb[34].mxu0 }
 0x364   : > { %v2513_v37 = vadd.f32 %v2500_v55, %v2342_v23  ;;  %v12049_v56 = vpop.f32.mrb[35].mxu0 }
 0x36c   : > { %v2645_v46 = vpop.f32.mrb[32].mxu1 }
 0x36d   : > { %v2656_v57 = vadd.f32 %v2645_v46, %v2508_v53  ;;  %v12054_v59 = vpop.f32.mrb[33].mxu1 }
 0x36e   : > { %v2648_v60 = vpop.f32.mrb[34].mxu1 }
 0x36f   : > { %v2661_v61 = vadd.f32 %v2648_v60, %v2513_v37  ;;  %v12055_v63 = vpop.f32.mrb[35].mxu1 }
 0x37d   : > { %v2840_v1 = vpop.f32.mrb[36].mxu0 }
 0x37e   : > { %v2851_v2 = vadd.f32 %v2840_v1, %v2656_v57  ;;  %v12060_v3 = vpop.f32.mrb[37].mxu0 }
 0x37f   : > { %v2843_v5 = vpop.f32.mrb[38].mxu0 }
 0x380   : > { %v2856_v6 = vadd.f32 %v2843_v5, %v2661_v61  ;;  %v12061_v7 = vpop.f32.mrb[39].mxu0 }
 0x388   : > { %v3011_v10 = vpop.f32.mrb[36].mxu1 }
 0x389   : > { %v3022_v12 = vadd.f32 %v3011_v10, %v2851_v2  ;;  %v12066_v13 = vpop.f32.mrb[37].mxu1 }
 0x38a   : > { %v3014_v15 = vpop.f32.mrb[38].mxu1 }
 0x38b   : > { %v3027_v16 = vadd.f32 %v3014_v15, %v2856_v6  ;;  %v12067_v11 = vpop.f32.mrb[39].mxu1 }
 0x399   : > { %v3182_v19 = vpop.f32.mrb[40].mxu0 }
 0x39a   : > { %v3193_v20 = vadd.f32 %v3182_v19, %v3022_v12  ;;  %v12072_v21 = vpop.f32.mrb[41].mxu0 }
 0x39b   : > { %v3185_v17 = vpop.f32.mrb[42].mxu0  ;;  %v11619_v21 = vld [vmem:[%s14857_s2 + $0x28] sm:$0xff] }
 0x39c   : > { %v3198_v22 = vadd.f32 %v3185_v17, %v3027_v16  ;;  %v12073_v24 = vpop.f32.mrb[43].mxu0  ;;  %v3267_v14 = vpop.f32.mrb[20].mxu1 }
 0x39d   : > { %v3383_v25 = vadd.f32 %v3376_v4, %v3267_v14  ;;  %v3269_v26 = vpop.f32.mrb[21].mxu1 }
 0x39e   : > { %v3384_v28 = vadd.f32 %v3376_v4, %v3269_v26  ;;  %v3271_v29 = vpop.f32.mrb[22].mxu1  ;;  %v12864_v26 = vld [vmem:[%s14856_s1 + $0x98] sm:$0xff]  }
 0x39f   : > { %v3393_v30 = vmax.f32 %v3383_v25, 0.0  ;;  %v3388_v31 = vadd.f32 %v3381_v27, %v3271_v29  ;;  %v3273_v33 = vpop.f32.mrb[23].mxu1 }
 0x3a0   : > { %v3394_v34 = vmax.f32 %v3384_v28, 0.0  ;;  %v3389_v35 = vadd.f32 %v3381_v27, %v3273_v33 }
 0x3a1   : > { %v3398_v36 = vmax.f32 %v3388_v31, 0.0  ;;  %v3310_v39 = vpop.f32.mrb[24].mxu0  ;;  %v3403_v45 = vmul.f32 %v3393_v30, %v13269_v58 }
 0x3a2   : > { %v3399_v40 = vmax.f32 %v3389_v35, 0.0  ;;  %v3385_v42 = vadd.f32 %v3376_v4, %v3310_v39  ;;  %v3312_v44 = vpop.f32.mrb[25].mxu0  ;;  %v3404_v18 = vmul.f32 %v3394_v34, %v13271_v62 }
 0x3a3   : > { %v3408_v47 = vmul.f32 %v3398_v36, %v13269_v58  ;;  %v3386_v48 = vadd.f32 %v3376_v4, %v3312_v44  ;;  %v3314_v49 = vpop.f32.mrb[26].mxu0 }
 0x3a4   : > { %v3409_v50 = vmul.f32 %v3399_v40, %v13271_v62  ;;  %v3395_v51 = vmax.f32 %v3385_v42, 0.0  ;;  %v3390_v23 = vadd.f32 %v3381_v27, %v3314_v49  ;;  %v3316_v52 = vpop.f32.mrb[27].mxu0  ;;  %v3353_v41 = vpop.f32.mrb[40].mxu1 }
 0x3a5   : > { %v13550_v53 = vpack.c.bf16 %v3408_v47, %v3403_v45  ;;  %v3396_v54 = vmax.f32 %v3386_v48, 0.0  ;;  %v3391_v55 = vadd.f32 %v3381_v27, %v3316_v52  ;;  %v3364_v37 = vadd.f32 %v3353_v41, %v3193_v20  ;;  %v12078_v56 = vpop.f32.mrb[41].mxu1  ;;  %v11618_v20 = vld [vmem:[%s14857_s2 + $0x20] sm:$0xff]  ;;  %v12865_v45 = vld [vmem:[%s14856_s1 + $0x90] sm:$0xff]  }
 0x3a6   : > { %v13552_v46 = vpack.c.bf16 %v3409_v50, %v3404_v18  ;;  %v3400_v57 = vmax.f32 %v3390_v23, 0.0  ;;  %v3356_v59 = vpop.f32.mrb[42].mxu1  ;;  %v3405_v2 = vmul.f32 %v3395_v51, %v13273_v8 }
 0x3a7   : > { %v3401_v60 = vmax.f32 %v3391_v55, 0.0  ;;  %v3387_v61 = vadd.f32 %v3376_v4, %v3364_v37  ;;  %v3369_v63 = vadd.f32 %v3356_v59, %v3198_v22  ;;  %v12079_v1 = vpop.f32.mrb[43].mxu1  ;;  %3460 = vrot.lane.b32.xlu1 %v13550_v53, %s12937_s6  ;;  %v3406_v5 = vmul.f32 %v3396_v54, %v13275_v9  ;;  %v12866_v37 = vld [vmem:[%s14856_s1 + $0xa0] sm:$0xff]  }
 0x3a8   : > { %v3410_v3 = vmul.f32 %v3400_v57, %v13273_v8  ;;  %3462 = vrot.lane.b32.xlu0 %v13552_v46, %s12937_s6 }
 0x3a9   : > { %v3411_v6 = vmul.f32 %v3401_v60, %v13275_v9  ;;  %v3397_v7 = vmax.f32 %v3387_v61, 0.0  ;;  %v3392_v10 = vadd.f32 %v3381_v27, %v3369_v63 }
 0x3aa   : > { %v13562_v12 = vpack.c.bf16 %v3410_v3, %v3405_v2 }
 0x3ab   : > { %v13564_v13 = vpack.c.bf16 %v3411_v6, %v3406_v5  ;;  %v3402_v15 = vmax.f32 %v3392_v10, 0.0  ;;  %3458 = vrot.lane.b32.xlu1 %v12929_v43, %s12937_s6  ;;  %v3407_v16 = vmul.f32 %v3397_v7, %v13296_v38 }
 0x3ac   : > { %3464 = vrot.lane.b32.xlu0 %v13562_v12, %s12937_s6 }
 0x3ad   : > { %v3412_v11 = vmul.f32 %v3402_v15, %v13296_v38 }
 0x3af   : > { %v13572_v19 = vpack.c.bf16 %v3412_v11, %v3407_v16  ;;  %3466 = vrot.lane.b32.xlu1 %v13564_v13, %s12937_s6  ;;  %v12867_v16 = vld [vmem:[%s14856_s1 + $0xa8] sm:$0xff]  }
 0x3b1   : > { %3468 = vrot.lane.b32.xlu0 %v13572_v19, %s12937_s6 }
 0x3b3   : > { %3618 = vrot.lane.b32.xlu1 %v13550_v53, %s12938_s7 }
 0x3b5   : > { %3620 = vrot.lane.b32.xlu0 %v13552_v46, %s12938_s7 }
 0x3b7   : > { %3616 = vrot.lane.b32.xlu1 %v12929_v43, %s12938_s7 }
 0x3b9   : > { %3622 = vrot.lane.b32.xlu0 %v13562_v12, %s12938_s7 }
 0x3bb   : > { %3624 = vrot.lane.b32.xlu1 %v13564_v13, %s12938_s7 }
 0x3bd   : > { %3779 = vrot.lane.b32.xlu0 %v13550_v53, %s12939_s8 }
 0x3bf   : > { %3781 = vrot.lane.b32.xlu1 %v13552_v46, %s12939_s8 }
 0x3c1   : > { %3777 = vrot.lane.b32.xlu0 %v12929_v43, %s12939_s8 }
 0x3c3   : > { %3626 = vrot.lane.b32.xlu1 %v13572_v19, %s12938_s7 }
 0x3c5   : > { %3783 = vrot.lane.b32.xlu0 %v13562_v12, %s12939_s8 }
 0x3c7   : > { %3785 = vrot.lane.b32.xlu1 %v13564_v13, %s12939_s8 }
 0x3c9   : > { %3787 = vrot.lane.b32.xlu0 %v13572_v19, %s12939_s8 }
 0x3cb   : > { %3950 = vrot.lane.b32.xlu1 %v13550_v53, %s12940_s9 }
 0x3cd   : > { %3952 = vrot.lane.b32.xlu0 %v13552_v46, %s12940_s9 }
 0x3cf   : > { %3948 = vrot.lane.b32.xlu1 %v12929_v43, %s12940_s9 }
 0x3d1   : > { %3954 = vrot.lane.b32.xlu0 %v13562_v12, %s12940_s9 }
 0x3d3   : > { %3956 = vrot.lane.b32.xlu1 %v13564_v13, %s12940_s9 }
 0x3d5   : > { %3958 = vrot.lane.b32.xlu0 %v13572_v19, %s12940_s9 }
 0x3d7   : > { %4293 = vrot.lane.b32.xlu1 %v13552_v46, %s12941_s10 }
 0x3d9   : > { %4295 = vrot.lane.b32.xlu0 %v13562_v12, %s12941_s10 }
 0x3db   : > { %4291 = vrot.lane.b32.xlu1 %v13550_v53, %s12941_s10 }
 0x3dd   : > { %4297 = vrot.lane.b32.xlu0 %v13564_v13, %s12941_s10 }
 0x3df   : > { %4299 = vrot.lane.b32.xlu1 %v13572_v19, %s12941_s10 }
 0x3e1   : > { %4464 = vrot.lane.b32.xlu0 %v13552_v46, %s12942_s11 }
 0x3e3   : > { %4466 = vrot.lane.b32.xlu1 %v13562_v12, %s12942_s11 }
 0x3e5   : > { %4462 = vrot.lane.b32.xlu0 %v13550_v53, %s12942_s11 }
 0x3e7   : > { %4301 = vrot.lane.b32.xlu1 %v12929_v43, %s12941_s10 }
 0x3e9   : > { %4468 = vrot.lane.b32.xlu0 %v13564_v13, %s12942_s11 }
 0x3eb   : > { %4470 = vrot.lane.b32.xlu1 %v13572_v19, %s12942_s11 }
 0x3ed   : > { %4472 = vrot.lane.b32.xlu0 %v12929_v43, %s12942_s11 }
 0x3ef   : > { %4635 = vrot.lane.b32.xlu1 %v13552_v46, %s12943_s5 }
 0x3f1   : > { %4637 = vrot.lane.b32.xlu0 %v13562_v12, %s12943_s5 }
 0x3f3   : > { %4633 = vrot.lane.b32.xlu1 %v13550_v53, %s12943_s5 }
 0x3f5   : > { %4639 = vrot.lane.b32.xlu0 %v13564_v13, %s12943_s5 }
 0x3f7   : > { %4641 = vrot.lane.b32.xlu1 %v13572_v19, %s12943_s5 }
 0x3f9   : > { %4806 = vrot.lane.b32.xlu0 %v13552_v46, %s12944_s28 }
 0x3fb   : > { %4808 = vrot.lane.b32.xlu1 %v13562_v12, %s12944_s28 }
 0x3fd   : > { %4804 = vrot.lane.b32.xlu0 %v13550_v53, %s12944_s28 }
 0x3ff   : > { %4643 = vrot.lane.b32.xlu1 %v12929_v43, %s12943_s5 }
 0x401   : > { %4810 = vrot.lane.b32.xlu0 %v13564_v13, %s12944_s28 }
 0x403   : > { %4812 = vrot.lane.b32.xlu1 %v13572_v19, %s12944_s28 }
 0x405   : > { %4814 = vrot.lane.b32.xlu0 %v12929_v43, %s12944_s28 }
 0x407   : > { %4972 = vperm.xlu1 %12845, %v11618_v20  }
 0x409   : > { %4977 = vperm.xlu0 %12844, %v11619_v21  }
 0x419   : > { %v3461_v4 = vpop.permute.xlu1 %3460 }
 0x41a   : > { %v3463_v17 = vpop.permute.xlu0 %3462 }
 0x41b   : > { %v3472_v22 = vsel %vm3470_vm7, %v3461_v4, %v3463_v17 }
 0x41c   : > { %3484 = vmatprep.subr.bf16.mxu0 %v3472_v22 }
 0x41d   : > { %v3459_v24 = vpop.permute.xlu1 %3458 }
 0x41e   : > { %v3471_v14 = vsel %vm3470_vm7, %v3459_v24, %v3461_v4  ;;  %v3465_v25 = vpop.permute.xlu0 %3464 }
 0x41f   : > { %3485 = vmatpush1.bf16.msra.mxu0 %v3471_v14  ;;  %v3473_v30 = vsel %vm3470_vm7, %v3463_v17, %v3465_v25 }
 0x420   : > { %12080 = vmatprep.subr.bf16.mxu0 %v12926_v32 }
 0x421   : > { %v3467_v27 = vpop.permute.xlu1 %3466 }
 0x422   : > { %11569 = vmatmul.mubr.msk.bf16.vlgmr.msra.gmra.mrb[44].mxu0 %vm287_vm1, %v12864_v26  ;;  %v3474_v28 = vsel %vm3470_vm7, %v3465_v25, %v3467_v27 }
 0x423   : > { %v3469_v29 = vpop.permute.xlu0 %3468  ;;  %3527 = vmatprep.subr.bf16.mxu1 %v3474_v28  ;;  %12082 = vmatprep.mubr.msk.bf16.mxu0 %vm12927_vm3, %v12926_v32 }
 0x424   : > { %v3475_v31 = vsel %vm3470_vm7, %v3467_v27, %v3469_v29  ;;  %3528 = vmatpush1.bf16.msra.mxu1 %v3473_v30  ;;  %v12869_v30 = vld [vmem:[%s14856_s1 + $0xb8] sm:$0xff]  }
 0x425   : > { %12081 = vmatpush3.bf16.msra.mxu0 %v3475_v31  ;;  %v3619_v33 = vpop.permute.xlu1 %3618 }
 0x427   : > { %v3621_v34 = vpop.permute.xlu0 %3620  ;;  %11570 = vmatmul.mubr.msk.bf16.vlgmr.msra.gmra.mrb[44].mxu1 %vm287_vm1, %v12864_v26 }
 0x428   : > { %v3630_v35 = vsel %vm3628_vm6, %v3619_v33, %v3621_v34  ;;  %3717 = vmatprep.mubr.bf16.mxu1 %v12917_v0 }
 0x429   : > { %3642 = vmatprep.subr.bf16.mxu0 %v3630_v35  ;;  %v3617_v36 = vpop.permute.xlu1 %3616 }
 0x42a   : > { %v3629_v39 = vsel %vm3628_vm6, %v3617_v36, %v3619_v33  ;;  %12083 = vmatmul.mubr.msk.bf16.vlgmr.msra.gmra.mrb[48].mxu0 %vm287_vm1, %v12864_v26 }
 0x42b   : > { %v3623_v40 = vpop.permute.xlu0 %3622  ;;  %3643 = vmatpush1.bf16.msra.mxu0 %v3629_v39  ;;  %3674 = vmatprep.mubr.bf16.mxu0 %v12917_v0 }
 0x42c   : > { %v3631_v48 = vsel %vm3628_vm6, %v3621_v34, %v3623_v40 }
 0x42d   : > { %v3625_v42 = vpop.permute.xlu1 %3624 }
 0x42e   : > { %v3632_v44 = vsel %vm3628_vm6, %v3623_v40, %v3625_v42 }
 0x42f   : > { %v3780_v47 = vpop.permute.xlu0 %3779  ;;  %3685 = vmatprep.subr.bf16.mxu1 %v3632_v44 }
 0x430   : > { %3686 = vmatpush1.bf16.msra.mxu1 %v3631_v48 }
 0x431   : > { %v3782_v49 = vpop.permute.xlu1 %3781  ;;  %12086 = vmatprep.subr.bf16.mxu1 %v12926_v32 }
 0x432   : > { %11573 = vmatmul.mubr.msk.bf16.vlgmr.msra.gmra.mrb[44].mxu0 %vm287_vm1, %v12865_v45  ;;  %v3791_v18 = vsel %vm3789_vm5, %v3780_v47, %v3782_v49 }
 0x433   : > { %v3778_v50 = vpop.permute.xlu0 %3777  ;;  %11574 = vmatmul.mubr.msk.bf16.vlgmr.msra.gmra.mrb[44].mxu1 %vm287_vm1, %v12865_v45  ;;  %3803 = vmatprep.subr.bf16.mxu0 %v3791_v18 }
 0x434   : > { %v3790_v51 = vsel %vm3789_vm5, %v3778_v50, %v3780_v47  ;;  %12088 = vmatprep.mubr.msk.bf16.mxu1 %vm12927_vm3, %v12926_v32  ;;  %3835 = vmatprep.mubr.bf16.mxu0 %v12917_v0 }
 0x435   : > { %3804 = vmatpush1.bf16.msra.mxu0 %v3790_v51  ;;  %v3627_v23 = vpop.permute.xlu1 %3626 }
 0x436   : > { %v3633_v52 = vsel %vm3628_vm6, %v3625_v42, %v3627_v23  ;;  %12092 = vmatprep.subr.bf16.mxu0 %v12926_v32  ;;  %v12870_v42 = vld [vmem:[%s14856_s1 + $0xc0] sm:$0xff]  }
 0x437   : > { %v3784_v41 = vpop.permute.xlu0 %3783  ;;  %12087 = vmatpush3.bf16.msra.mxu1 %v3633_v52 }
 0x438   : > { %v3792_v57 = vsel %vm3789_vm5, %v3782_v49, %v3784_v41 }
 0x439   : > { %v3786_v54 = vpop.permute.xlu1 %3785 }
 0x43a   : > { %v3793_v55 = vsel %vm3789_vm5, %v3784_v41, %v3786_v54 }
 0x43b   : > { %v3788_v56 = vpop.permute.xlu0 %3787  ;;  %12089 = vmatmul.mubr.msk.bf16.vlgmr.msra.gmra.mrb[48].mxu1 %vm287_vm1, %v12865_v45  ;;  %3846 = vmatprep.subr.bf16.mxu1 %v3793_v55  ;;  %v12871_v55 = vld [vmem:[%s14856_s1 + $0xc8] sm:$0xff]  }
 0x43c   : > { %v3794_v59 = vsel %vm3789_vm5, %v3786_v54, %v3788_v56  ;;  %3847 = vmatpush1.bf16.msra.mxu1 %v3792_v57  ;;  %3878 = vmatprep.mubr.bf16.mxu1 %v12917_v0 }
 0x43d   : > { %v3951_v60 = vpop.permute.xlu1 %3950 }
 0x43e   : > { %11579 = vmatmul.mubr.msk.bf16.vlgmr.msra.gmra.mrb[44].mxu0 %vm287_vm1, %v12866_v37 }
 0x43f   : > { %12093 = vmatpush3.bf16.msra.mxu0 %v3794_v59  ;;  %v3953_v61 = vpop.permute.xlu0 %3952  ;;  %12094 = vmatprep.mubr.msk.bf16.mxu0 %vm12927_vm3, %v12926_v32 }
 0x440   : > { %v3962_v63 = vsel %vm3960_vm4, %v3951_v60, %v3953_v61 }
 0x441   : > { %3974 = vmatprep.subr.bf16.mxu0 %v3962_v63  ;;  %v3949_v1 = vpop.permute.xlu1 %3948 }
 0x442   : > { %v3961_v5 = vsel %vm3960_vm4, %v3949_v1, %v3951_v60 }
 0x443   : > { %v3955_v2 = vpop.permute.xlu0 %3954  ;;  %11580 = vmatmul.mubr.msk.bf16.vlgmr.msra.gmra.mrb[44].mxu1 %vm287_vm1, %v12866_v37 }
 0x444   : > { %4049 = vmatprep.mubr.bf16.mxu1 %v12917_v0  ;;  %v3963_v10 = vsel %vm3960_vm4, %v3953_v61, %v3955_v2  ;;  %v12872_v61 = vld [vmem:[%s14856_s1 + $0xd0] sm:$0xff]  }
 0x445   : > { %v3957_v3 = vpop.permute.xlu1 %3956 }
 0x446   : > { %12095 = vmatmul.mubr.msk.bf16.vlgmr.msra.gmra.mrb[52].mxu0 %vm287_vm1, %v12866_v37  ;;  %v3964_v6 = vsel %vm3960_vm4, %v3955_v2, %v3957_v3 }
 0x447   : > { %3975 = vmatpush1.bf16.msra.mxu0 %v3961_v5  ;;  %v3959_v7 = vpop.permute.xlu0 %3958  ;;  %4017 = vmatprep.subr.bf16.mxu1 %v3964_v6 }
 0x448   : > { %4122 = vmatprep.subr.bf16.mxu0 %v13552_v46  ;;  %4018 = vmatpush1.bf16.msra.mxu1 %v3963_v10  ;;  %v3965_v21 = vsel %vm3960_vm4, %v3957_v3, %v3959_v7 }
 0x449   : > { %v4294_v15 = vpop.permute.xlu1 %4293  ;;  %4006 = vmatprep.mubr.bf16.mxu0 %v12917_v0  ;;  %12098 = vmatprep.subr.bf16.mxu1 %v12926_v32 }
 0x44b   : > { %v4296_v11 = vpop.permute.xlu0 %4295 }
 0x44c   : > { %v4305_v25 = vsel %vm4303_vm2, %v4294_v15, %v4296_v11 }
 0x44d   : > { %v4292_v20 = vpop.permute.xlu1 %4291 }
 0x44e   : > { %11585 = vmatmul.mubr.msk.bf16.vlgmr.msra.gmra.mrb[44].mxu0 %vm287_vm1, %v12867_v16 }
 0x44f   : > { %4123 = vmatpush1.bf16.msra.mxu0 %v13550_v53  ;;  %v4298_v4 = vpop.permute.xlu0 %4297  ;;  %11586 = vmatmul.mubr.msk.bf16.vlgmr.msra.gmra.mrb[44].mxu1 %vm287_vm1, %v12867_v16  ;;  %v12868_v53 = vld [vmem:[%s14856_s1 + $0xb0] sm:$0xff]  }
 0x450   : > { %12099 = vmatpush3.bf16.msra.mxu1 %v3965_v21  ;;  %12100 = vmatprep.mubr.msk.bf16.mxu1 %vm12927_vm3, %v12926_v32 }
 0x451   : > { %4165 = vmatprep.subr.bf16.mxu1 %v13564_v13  ;;  %v4300_v46 = vpop.permute.xlu1 %4299  ;;  %4154 = vmatprep.mubr.bf16.mxu0 %v12917_v0 }
 0x452   : > { %12104 = vmatprep.subr.bf16.mxu0 %v12926_v32  ;;  %v4307_v24 = vsel %vm4303_vm2, %v4298_v4, %v4300_v46 }
 0x453   : > { %v4465_v17 = vpop.permute.xlu0 %4464 }
 0x455   : > { %v4467_v22 = vpop.permute.xlu1 %4466 }
 0x456   : > { %v4476_v28 = vsel %vm4474_vm0, %v4465_v17, %v4467_v22 }
 0x457   : > { %12101 = vmatmul.mubr.msk.bf16.vlgmr.msra.gmra.mrb[52].mxu1 %vm287_vm1, %v12867_v16  ;;  %v4463_v14 = vpop.permute.xlu0 %4462 }
 0x458   : > { %4166 = vmatpush1.bf16.msra.mxu1 %v13562_v12  ;;  %4197 = vmatprep.mubr.bf16.mxu1 %v12917_v0  ;;  %v4306_v12 = vsel %vm4303_vm2, %v4296_v11, %v4298_v4  ;;  %v4475_v33 = vsel %vm4474_vm0, %v4463_v14, %v4465_v17 }
 0x459   : > { %4360 = vmatprep.subr.bf16.mxu1 %v4307_v24  ;;  %v4302_v13 = vpop.permute.xlu1 %4301 }
 0x45a   : > { %11591 = vmatmul.mubr.msk.bf16.vlgmr.msra.gmra.mrb[44].mxu0 %vm287_vm1, %v12868_v53  ;;  %v4308_v34 = vsel %vm4303_vm2, %v4300_v46, %v4302_v13 }
 0x45b   : > { %12105 = vmatpush3.bf16.msra.mxu0 %v13572_v19  ;;  %12106 = vmatprep.mubr.msk.bf16.mxu0 %vm12927_vm3, %v12926_v32  ;;  %v4469_v27 = vpop.permute.xlu0 %4468  ;;  %v4304_v19 = vsel %vm4303_vm2, %v4292_v20, %v4294_v15 }
 0x45c   : > { %4317 = vmatprep.subr.bf16.mxu0 %v4305_v25  ;;  %v4477_v45 = vsel %vm4474_vm0, %v4467_v22, %v4469_v27 }
 0x45d   : > { %v4471_v26 = vpop.permute.xlu1 %4470 }
 0x45e   : > { %v4478_v36 = vsel %vm4474_vm0, %v4469_v27, %v4471_v26 }
 0x45f   : > { %11592 = vmatmul.mubr.msk.bf16.vlgmr.msra.gmra.mrb[44].mxu1 %vm287_vm1, %v12868_v53  ;;  %v4473_v31 = vpop.permute.xlu0 %4472 }
 0x460   : > { %4361 = vmatpush1.bf16.msra.mxu1 %v4306_v12  ;;  %4392 = vmatprep.mubr.bf16.mxu1 %v12917_v0  ;;  %v4479_v48 = vsel %vm4474_vm0, %v4471_v26, %v4473_v31 }
 0x461   : > { %12110 = vmatprep.subr.bf16.mxu1 %v12926_v32  ;;  %v4636_v29 = vpop.permute.xlu1 %4635 }
 0x462   : > { %12107 = vmatmul.mubr.msk.bf16.vlgmr.msra.gmra.mrb[56].mxu0 %vm287_vm1, %v12868_v53 }
 0x463   : > { %4318 = vmatpush1.bf16.msra.mxu0 %v4304_v19  ;;  %4349 = vmatprep.mubr.bf16.mxu0 %v12917_v0  ;;  %v4638_v39 = vpop.permute.xlu0 %4637 }
 0x464   : > { %4488 = vmatprep.subr.bf16.mxu0 %v4476_v28  ;;  %v4647_v49 = vsel %vm4645_vm8, %v4636_v29, %v4638_v39 }
 0x465   : > { %v4634_v35 = vpop.permute.xlu1 %4633 }
 0x466   : > { %v4646_v23 = vsel %vm4645_vm8, %v4634_v35, %v4636_v29 }
 0x467   : > { %v4640_v44 = vpop.permute.xlu0 %4639 }
 0x468   : > { %v4648_v51 = vsel %vm4645_vm8, %v4638_v39, %v4640_v44 }
 0x469   : > { %v4642_v40 = vpop.permute.xlu1 %4641 }
 0x46a   : > { %11597 = vmatmul.mubr.msk.bf16.vlgmr.msra.gmra.mrb[44].mxu0 %vm287_vm1, %v12869_v30  ;;  %v4649_v47 = vsel %vm4645_vm8, %v4640_v44, %v4642_v40 }
 0x46b   : > { %4489 = vmatpush1.bf16.msra.mxu0 %v4475_v33  ;;  %11598 = vmatmul.mubr.msk.bf16.vlgmr.msra.gmra.mrb[44].mxu1 %vm287_vm1, %v12869_v30  ;;  %v4807_v50 = vpop.permute.xlu0 %4806 }
 0x46c   : > { %12111 = vmatpush3.bf16.msra.mxu1 %v4308_v34  ;;  %12112 = vmatprep.mubr.msk.bf16.mxu1 %vm12927_vm3, %v12926_v32 }
 0x46d   : > { %4531 = vmatprep.subr.bf16.mxu1 %v4478_v36  ;;  %4520 = vmatprep.mubr.bf16.mxu0 %v12917_v0  ;;  %v4809_v18 = vpop.permute.xlu1 %4808 }
 0x46e   : > { %12116 = vmatprep.subr.bf16.mxu0 %v12926_v32  ;;  %v4818_v41 = vsel %vm4816_vm9, %v4807_v50, %v4809_v18 }
 0x46f   : > { %v4805_v54 = vpop.permute.xlu0 %4804 }
 0x470   : > { %v4817_v56 = vsel %vm4816_vm9, %v4805_v54, %v4807_v50 }
 0x471   : > { %v4644_v52 = vpop.permute.xlu1 %4643 }
 0x472   : > { %v4650_v57 = vsel %vm4645_vm8, %v4642_v40, %v4644_v52 }
 0x473   : > { %12113 = vmatmul.mubr.msk.bf16.vlgmr.msra.gmra.mrb[56].mxu1 %vm287_vm1, %v12869_v30  ;;  %v4811_v59 = vpop.permute.xlu0 %4810 }
 0x474   : > { %4532 = vmatpush1.bf16.msra.mxu1 %v4477_v45  ;;  %4563 = vmatprep.mubr.bf16.mxu1 %v12917_v0  ;;  %v4819_v1 = vsel %vm4816_vm9, %v4809_v18, %v4811_v59 }
 0x475   : > { %4702 = vmatprep.subr.bf16.mxu1 %v4649_v47  ;;  %v4813_v37 = vpop.permute.xlu1 %4812 }
 0x476   : > { %11603 = vmatmul.mubr.msk.bf16.vlgmr.msra.gmra.mrb[44].mxu0 %vm287_vm1, %v12870_v42  ;;  %v4820_v60 = vsel %vm4816_vm9, %v4811_v59, %v4813_v37 }
 0x477   : > { %12117 = vmatpush3.bf16.msra.mxu0 %v4479_v48  ;;  %12118 = vmatprep.mubr.msk.bf16.mxu0 %vm12927_vm3, %v12926_v32  ;;  %v4815_v63 = vpop.permute.xlu0 %4814 }
 0x478   : > { %4659 = vmatprep.subr.bf16.mxu0 %v4647_v49  ;;  %v4821_v2 = vsel %vm4816_vm9, %v4813_v37, %v4815_v63 }
 0x47b   : > { %11604 = vmatmul.mubr.msk.bf16.vlgmr.msra.gmra.mrb[44].mxu1 %vm287_vm1, %v12870_v42 }
 0x47c   : > { %4703 = vmatpush1.bf16.msra.mxu1 %v4648_v51  ;;  %4734 = vmatprep.mubr.bf16.mxu1 %v12917_v0 }
 0x47d   : > { %12122 = vmatprep.subr.bf16.mxu1 %v12926_v32 }
 0x47e   : > { %12119 = vmatmul.mubr.msk.bf16.vlgmr.msra.gmra.mrb[60].mxu0 %vm287_vm1, %v12870_v42 }
 0x47f   : > { %4660 = vmatpush1.bf16.msra.mxu0 %v4646_v23  ;;  %4691 = vmatprep.mubr.bf16.mxu0 %v12917_v0 }
 0x480   : > { %4830 = vmatprep.subr.bf16.mxu0 %v4818_v41 }
 0x486   : > { %11609 = vmatmul.mubr.msk.bf16.vlgmr.msra.gmra.mrb[44].mxu0 %vm287_vm1, %v12871_v55  ;;  %v4973_v52 = vpop.permute.xlu1 %4972 }
 0x487   : > { %4831 = vmatpush1.bf16.msra.mxu0 %v4817_v56  ;;  %11610 = vmatmul.mubr.msk.bf16.vlgmr.msra.gmra.mrb[44].mxu1 %vm287_vm1, %v12871_v55 }
 0x488   : > { %12123 = vmatpush3.bf16.msra.mxu1 %v4650_v57  ;;  %12124 = vmatprep.mubr.msk.bf16.mxu1 %vm12927_vm3, %v12926_v32  ;;  %v4978_v59 = vpop.permute.xlu0 %4977 }
 0x489   : > { %4873 = vmatprep.subr.bf16.mxu1 %v4820_v60  ;;  %4862 = vmatprep.mubr.bf16.mxu0 %v12917_v0 }
 0x48a   : > { %12128 = vmatprep.subr.bf16.mxu0 %v12926_v32 }
 0x48f   : > { %12125 = vmatmul.mubr.msk.bf16.vlgmr.msra.gmra.mrb[60].mxu1 %vm287_vm1, %v12871_v55 }
 0x490   : > { %4874 = vmatpush1.bf16.msra.mxu1 %v4819_v1  ;;  %4905 = vmatprep.mubr.bf16.mxu1 %v12917_v0 }
 0x492   : > { %11615 = vmatmul.mubr.msk.bf16.vlgmr.msra.gmra.mrb[44].mxu0 %vm287_vm1, %v12872_v61 }
 0x493   : > { %12129 = vmatpush3.bf16.msra.mxu0 %v4821_v2  ;;  %12130 = vmatprep.mubr.msk.bf16.mxu0 %vm12927_vm3, %v12926_v32 }
 0x497   : > { %11616 = vmatmul.mubr.msk.bf16.vlgmr.msra.gmra.mrb[44].mxu1 %vm287_vm1, %v12872_v61 }
 0x498   : > { %5113 = vmatprep.mubr.bf16.mxu1 %v12917_v0 }
 0x49a   : > { %12131 = vmatmul.mubr.msk.bf16.vlgmr.msra.gmra.mrb[64].mxu0 %vm287_vm1, %v12872_v61 }
 0x49b   : > { %5156 = vmatprep.mubr.bf16.mxu0 %v12917_v0 }
 0x4fd   : > { %v3604_v3 = vpop.f32.mrb[48].mxu0 }
 0x4fe   : > { %v12084_v5 = vpop.f32.mrb[49].mxu0 }
 0x4ff   : > { %v3607_v6 = vpop.f32.mrb[50].mxu0 }
 0x500   : > { %v12085_v7 = vpop.f32.mrb[51].mxu0 }
 0x50e   : > { %v3762_v10 = vpop.f32.mrb[48].mxu1 }
 0x50f   : > { %v3763_v15 = vadd.f32 %v3762_v10, %v3604_v3  ;;  %v12090_v16 = vpop.f32.mrb[49].mxu1 }
 0x510   : > { %v3765_v11 = vpop.f32.mrb[50].mxu1 }
 0x511   : > { %v3766_v20 = vadd.f32 %v3765_v11, %v3607_v6  ;;  %v12091_v21 = vpop.f32.mrb[51].mxu1 }
 0x519   : > { %v3923_v4 = vpop.f32.mrb[52].mxu0 }
 0x51a   : > { %v3934_v46 = vadd.f32 %v3923_v4, %v3763_v15  ;;  %v12096_v17 = vpop.f32.mrb[53].mxu0 }
 0x51b   : > { %v3926_v22 = vpop.f32.mrb[54].mxu0 }
 0x51c   : > { %v3939_v53 = vadd.f32 %v3926_v22, %v3766_v20  ;;  %v12097_v24 = vpop.f32.mrb[55].mxu0 }
 0x52a   : > { %v4094_v13 = vpop.f32.mrb[52].mxu1 }
 0x52b   : > { %v4105_v14 = vadd.f32 %v4094_v13, %v3934_v46  ;;  %v12102_v25 = vpop.f32.mrb[53].mxu1 }
 0x52c   : > { %v4097_v26 = vpop.f32.mrb[54].mxu1 }
 0x52d   : > { %v4110_v12 = vadd.f32 %v4097_v26, %v3939_v53  ;;  %v12103_v27 = vpop.f32.mrb[55].mxu1 }
 0x535   : > { %v4242_v19 = vpop.f32.mrb[56].mxu0 }
 0x536   : > { %v4253_v28 = vadd.f32 %v4242_v19, %v4105_v14  ;;  %v12108_v29 = vpop.f32.mrb[57].mxu0 }
 0x537   : > { %v4245_v30 = vpop.f32.mrb[58].mxu0 }
 0x538   : > { %v4258_v31 = vadd.f32 %v4245_v30, %v4110_v12  ;;  %v12109_v33 = vpop.f32.mrb[59].mxu0 }
 0x546   : > { %v4437_v34 = vpop.f32.mrb[56].mxu1 }
 0x547   : > { %v4448_v35 = vadd.f32 %v4437_v34, %v4253_v28  ;;  %v12114_v36 = vpop.f32.mrb[57].mxu1 }
 0x548   : > { %v4440_v39 = vpop.f32.mrb[58].mxu1 }
 0x549   : > { %v4453_v40 = vadd.f32 %v4440_v39, %v4258_v31  ;;  %v12115_v42 = vpop.f32.mrb[59].mxu1 }
 0x551   : > { %v4608_v44 = vpop.f32.mrb[60].mxu0 }
 0x552   : > { %v4619_v45 = vadd.f32 %v4608_v44, %v4448_v35  ;;  %v12120_v47 = vpop.f32.mrb[61].mxu0 }
 0x553   : > { %v4611_v48 = vpop.f32.mrb[62].mxu0 }
 0x554   : > { %v4624_v49 = vadd.f32 %v4611_v48, %v4453_v40  ;;  %v12121_v18 = vpop.f32.mrb[63].mxu0 }
 0x562   : > { %v4779_v50 = vpop.f32.mrb[60].mxu1 }
 0x563   : > { %v4790_v51 = vadd.f32 %v4779_v50, %v4619_v45  ;;  %v12126_v23 = vpop.f32.mrb[61].mxu1 }
 0x564   : > { %v4782_v41 = vpop.f32.mrb[62].mxu1  ;;  %v11675_v23 = vld [vmem:[%s14857_s2 + $0x38] sm:$0xff] }
 0x565   : > { %v4795_v54 = vadd.f32 %v4782_v41, %v4624_v49  ;;  %v12127_v55 = vpop.f32.mrb[63].mxu1  ;;  %v4864_v37 = vpop.f32.mrb[44].mxu0 }
 0x566   : > { %v4980_v56 = vadd.f32 %v4973_v52, %v4864_v37  ;;  %v4866_v57 = vpop.f32.mrb[45].mxu0 }
 0x567   : > { %v4981_v60 = vadd.f32 %v4973_v52, %v4866_v57  ;;  %v4868_v61 = vpop.f32.mrb[46].mxu0  ;;  %v12873_v57 = vld [vmem:[%s14856_s1 + $0xe0] sm:$0xff]  }
 0x568   : > { %v4990_v63 = vmax.f32 %v4980_v56, 0.0  ;;  %v4985_v1 = vadd.f32 %v4978_v59, %v4868_v61  ;;  %v4870_v2 = vpop.f32.mrb[47].mxu0 }
 0x569   : > { %v4991_v3 = vmax.f32 %v4981_v60, 0.0  ;;  %v4986_v5 = vadd.f32 %v4978_v59, %v4870_v2 }
 0x56a   : > { %v4995_v6 = vmax.f32 %v4985_v1, 0.0  ;;  %v4907_v7 = vpop.f32.mrb[44].mxu1  ;;  %v5000_v11 = vmul.f32 %v4990_v63, %v13269_v58 }
 0x56b   : > { %v4996_v10 = vmax.f32 %v4986_v5, 0.0  ;;  %v4982_v15 = vadd.f32 %v4973_v52, %v4907_v7  ;;  %v4909_v16 = vpop.f32.mrb[45].mxu1  ;;  %v5001_v46 = vmul.f32 %v4991_v3, %v13271_v62 }
 0x56c   : > { %v5005_v20 = vmul.f32 %v4995_v6, %v13269_v58  ;;  %v4983_v21 = vadd.f32 %v4973_v52, %v4909_v16  ;;  %v4911_v4 = vpop.f32.mrb[46].mxu1 }
 0x56d   : > { %v5006_v17 = vmul.f32 %v4996_v10, %v13271_v62  ;;  %v4992_v22 = vmax.f32 %v4982_v15, 0.0  ;;  %v4987_v53 = vadd.f32 %v4978_v59, %v4911_v4  ;;  %v4913_v24 = vpop.f32.mrb[47].mxu1  ;;  %v4950_v13 = vpop.f32.mrb[64].mxu0 }
 0x56e   : > { %v13816_v14 = vpack.c.bf16 %v5005_v20, %v5000_v11  ;;  %v4993_v25 = vmax.f32 %v4983_v21, 0.0  ;;  %v4988_v26 = vadd.f32 %v4978_v59, %v4913_v24  ;;  %v4961_v12 = vadd.f32 %v4950_v13, %v4790_v51  ;;  %v12132_v27 = vpop.f32.mrb[65].mxu0  ;;  %v11674_v51 = vld [vmem:[%s14857_s2 + $0x30] sm:$0xff]  ;;  %v12874_v11 = vld [vmem:[%s14856_s1 + $0xd8] sm:$0xff]  }
 0x56f   : > { %v13818_v19 = vpack.c.bf16 %v5006_v17, %v5001_v46  ;;  %v4997_v28 = vmax.f32 %v4987_v53, 0.0  ;;  %v4953_v29 = vpop.f32.mrb[66].mxu0  ;;  %v5002_v35 = vmul.f32 %v4992_v22, %v13273_v8 }
 0x570   : > { %v4998_v30 = vmax.f32 %v4988_v26, 0.0  ;;  %v4984_v31 = vadd.f32 %v4973_v52, %v4961_v12  ;;  %v4966_v33 = vadd.f32 %v4953_v29, %v4795_v54  ;;  %v12133_v34 = vpop.f32.mrb[67].mxu0  ;;  %5057 = vrot.lane.b32.xlu1 %v13816_v14, %s12945_s24  ;;  %v5003_v39 = vmul.f32 %v4993_v25, %v13275_v9  ;;  %v12875_v12 = vld [vmem:[%s14856_s1 + $0xe8] sm:$0xff]  }
 0x571   : > { %v5007_v36 = vmul.f32 %v4997_v28, %v13273_v8  ;;  %5059 = vrot.lane.b32.xlu0 %v13818_v19, %s12945_s24 }
 0x572   : > { %v5008_v40 = vmul.f32 %v4998_v30, %v13275_v9  ;;  %v4994_v42 = vmax.f32 %v4984_v31, 0.0  ;;  %v4989_v44 = vadd.f32 %v4978_v59, %v4966_v33 }
 0x573   : > { %v13826_v45 = vpack.c.bf16 %v5007_v36, %v5002_v35 }
 0x574   : > { %v13828_v47 = vpack.c.bf16 %v5008_v40, %v5003_v39  ;;  %v4999_v48 = vmax.f32 %v4989_v44, 0.0  ;;  %5055 = vrot.lane.b32.xlu1 %v12929_v43, %s12945_s24  ;;  %v5004_v49 = vmul.f32 %v4994_v42, %v13296_v38 }
 0x575   : > { %5061 = vrot.lane.b32.xlu0 %v13826_v45, %s12945_s24 }
 0x576   : > { %v5009_v18 = vmul.f32 %v4999_v48, %v13296_v38 }
 0x578   : > { %v13834_v50 = vpack.c.bf16 %v5009_v18, %v5004_v49  ;;  %5063 = vrot.lane.b32.xlu1 %v13828_v47, %s12945_s24  ;;  %v12876_v49 = vld [vmem:[%s14856_s1 + $0xf0] sm:$0xff]  }
 0x57a   : > { %5065 = vrot.lane.b32.xlu0 %v13834_v50, %s12945_s24  ;;  %s12949_s24 = smov 124  }
 0x57c   : > { %5215 = vrot.lane.b32.xlu1 %v13816_v14, %s12946_s25 }
 0x57e   : > { %5217 = vrot.lane.b32.xlu0 %v13818_v19, %s12946_s25 }
 0x580   : > { %5213 = vrot.lane.b32.xlu1 %v12929_v43, %s12946_s25 }
 0x582   : > { %5219 = vrot.lane.b32.xlu0 %v13826_v45, %s12946_s25 }
 0x584   : > { %5221 = vrot.lane.b32.xlu1 %v13828_v47, %s12946_s25 }
 0x586   : > { %5376 = vrot.lane.b32.xlu0 %v13816_v14, %s12947_s26 }
 0x588   : > { %5378 = vrot.lane.b32.xlu1 %v13818_v19, %s12947_s26 }
 0x58a   : > { %5374 = vrot.lane.b32.xlu0 %v12929_v43, %s12947_s26 }
 0x58c   : > { %5223 = vrot.lane.b32.xlu1 %v13834_v50, %s12946_s25  ;;  %s12950_s25 = smov 36  }
 0x58e   : > { %5380 = vrot.lane.b32.xlu0 %v13826_v45, %s12947_s26 }
 0x590   : > { %5382 = vrot.lane.b32.xlu1 %v13828_v47, %s12947_s26 }
 0x592   : > { %5384 = vrot.lane.b32.xlu0 %v13834_v50, %s12947_s26  ;;  %s12951_s26 = smov 32  }
 0x594   : > { %5547 = vrot.lane.b32.xlu1 %v13816_v14, %s12948_s27 }
 0x596   : > { %5549 = vrot.lane.b32.xlu0 %v13818_v19, %s12948_s27 }
 0x598   : > { %5545 = vrot.lane.b32.xlu1 %v12929_v43, %s12948_s27 }
 0x59a   : > { %5551 = vrot.lane.b32.xlu0 %v13826_v45, %s12948_s27 }
 0x59c   : > { %5553 = vrot.lane.b32.xlu1 %v13828_v47, %s12948_s27 }
 0x59e   : > { %5555 = vrot.lane.b32.xlu0 %v13834_v50, %s12948_s27  ;;  %s12952_s27 = smov 28  }
 0x5a0   : > { %5890 = vrot.lane.b32.xlu1 %v13818_v19, %s12949_s24 }
 0x5a2   : > { %5892 = vrot.lane.b32.xlu0 %v13826_v45, %s12949_s24 }
 0x5a4   : > { %5888 = vrot.lane.b32.xlu1 %v13816_v14, %s12949_s24 }
 0x5a6   : > { %5894 = vrot.lane.b32.xlu0 %v13828_v47, %s12949_s24 }
 0x5a8   : > { %5896 = vrot.lane.b32.xlu1 %v13834_v50, %s12949_s24 }
 0x5aa   : > { %6061 = vrot.lane.b32.xlu0 %v13818_v19, %s12950_s25 }
 0x5ac   : > { %6063 = vrot.lane.b32.xlu1 %v13826_v45, %s12950_s25 }
 0x5ae   : > { %6059 = vrot.lane.b32.xlu0 %v13816_v14, %s12950_s25 }
 0x5b0   : > { %5898 = vrot.lane.b32.xlu1 %v12929_v43, %s12949_s24 }
 0x5b2   : > { %6065 = vrot.lane.b32.xlu0 %v13828_v47, %s12950_s25 }
 0x5b4   : > { %6067 = vrot.lane.b32.xlu1 %v13834_v50, %s12950_s25 }
 0x5b6   : > { %6069 = vrot.lane.b32.xlu0 %v12929_v43, %s12950_s25 }
 0x5b8   : > { %6232 = vrot.lane.b32.xlu1 %v13818_v19, %s12951_s26 }
 0x5ba   : > { %6234 = vrot.lane.b32.xlu0 %v13826_v45, %s12951_s26 }
 0x5bc   : > { %6230 = vrot.lane.b32.xlu1 %v13816_v14, %s12951_s26 }
 0x5be   : > { %6236 = vrot.lane.b32.xlu0 %v13828_v47, %s12951_s26 }
 0x5c0   : > { %6238 = vrot.lane.b32.xlu1 %v13834_v50, %s12951_s26 }
 0x5c2   : > { %6403 = vrot.lane.b32.xlu0 %v13818_v19, %s12952_s27 }
 0x5c4   : > { %6405 = vrot.lane.b32.xlu1 %v13826_v45, %s12952_s27 }
 0x5c6   : > { %6401 = vrot.lane.b32.xlu0 %v13816_v14, %s12952_s27 }
 0x5c8   : > { %6240 = vrot.lane.b32.xlu1 %v12929_v43, %s12951_s26 }
 0x5ca   : > { %6407 = vrot.lane.b32.xlu0 %v13828_v47, %s12952_s27 }
 0x5cc   : > { %6409 = vrot.lane.b32.xlu1 %v13834_v50, %s12952_s27 }
 0x5ce   : > { %6411 = vrot.lane.b32.xlu0 %v12929_v43, %s12952_s27 }
 0x5d0   : > { %6569 = vperm.xlu1 %12845, %v11674_v51  }
 0x5d2   : > { %6574 = vperm.xlu0 %12844, %v11675_v23  }
 0x5e2   : > { %v5058_v52 = vpop.permute.xlu1 %5057 }
 0x5e3   : > { %v5060_v41 = vpop.permute.xlu0 %5059 }
 0x5e4   : > { %v5069_v54 = vsel %vm5067_vm15, %v5058_v52, %v5060_v41 }
 0x5e5   : > { %5081 = vmatprep.subr.bf16.mxu1 %v5069_v54 }
 0x5e6   : > { %v5056_v55 = vpop.permute.xlu1 %5055 }
 0x5e7   : > { %v5068_v37 = vsel %vm5067_vm15, %v5056_v55, %v5058_v52  ;;  %v5062_v56 = vpop.permute.xlu0 %5061 }
 0x5e8   : > { %5082 = vmatpush1.bf16.msra.mxu1 %v5068_v37  ;;  %v5070_v63 = vsel %vm5067_vm15, %v5060_v41, %v5062_v56 }
 0x5e9   : > { %12134 = vmatprep.subr.bf16.mxu1 %v12926_v32 }
 0x5ea   : > { %v5064_v59 = vpop.permute.xlu1 %5063 }
 0x5eb   : > { %11625 = vmatmul.mubr.msk.bf16.vlgmr.msra.gmra.mrb[64].mxu1 %vm287_vm1, %v12873_v57  ;;  %v5071_v60 = vsel %vm5067_vm15, %v5062_v56, %v5064_v59 }
 0x5ec   : > { %v5066_v61 = vpop.permute.xlu0 %5065  ;;  %5124 = vmatprep.subr.bf16.mxu0 %v5071_v60  ;;  %12136 = vmatprep.mubr.msk.bf16.mxu1 %vm12927_vm3, %v12926_v32 }
 0x5ed   : > { %v5072_v1 = vsel %vm5067_vm15, %v5064_v59, %v5066_v61  ;;  %5125 = vmatpush1.bf16.msra.mxu0 %v5070_v63  ;;  %vm5386_vm15 = vcmask 752640   ;;  %v12878_v63 = vld [vmem:[%s14856_s1 + $0x100] sm:$0xff]  }
 0x5ee   : > { %12135 = vmatpush3.bf16.msra.mxu1 %v5072_v1  ;;  %v5216_v2 = vpop.permute.xlu1 %5215 }
 0x5f0   : > { %v5218_v3 = vpop.permute.xlu0 %5217  ;;  %11626 = vmatmul.mubr.msk.bf16.vlgmr.msra.gmra.mrb[68].mxu0 %vm287_vm1, %v12873_v57 }
 0x5f1   : > { %v5227_v5 = vsel %vm5225_vm14, %v5216_v2, %v5218_v3  ;;  %5314 = vmatprep.mubr.bf16.mxu0 %v12917_v0 }
 0x5f2   : > { %5239 = vmatprep.subr.bf16.mxu1 %v5227_v5  ;;  %v5214_v6 = vpop.permute.xlu1 %5213 }
 0x5f3   : > { %v5226_v7 = vsel %vm5225_vm14, %v5214_v6, %v5216_v2  ;;  %12137 = vmatmul.mubr.msk.bf16.vlgmr.msra.gmra.mrb[68].mxu1 %vm287_vm1, %v12873_v57 }
 0x5f4   : > { %v5220_v10 = vpop.permute.xlu0 %5219  ;;  %5240 = vmatpush1.bf16.msra.mxu1 %v5226_v7  ;;  %5271 = vmatprep.mubr.bf16.mxu1 %v12917_v0 }
 0x5f5   : > { %v5228_v21 = vsel %vm5225_vm14, %v5218_v3, %v5220_v10 }
 0x5f6   : > { %v5222_v15 = vpop.permute.xlu1 %5221 }
 0x5f7   : > { %v5229_v16 = vsel %vm5225_vm14, %v5220_v10, %v5222_v15 }
 0x5f8   : > { %v5377_v20 = vpop.permute.xlu0 %5376  ;;  %5282 = vmatprep.subr.bf16.mxu0 %v5229_v16 }
 0x5f9   : > { %5283 = vmatpush1.bf16.msra.mxu0 %v5228_v21 }
 0x5fa   : > { %v5379_v4 = vpop.permute.xlu1 %5378  ;;  %12140 = vmatprep.subr.bf16.mxu0 %v12926_v32 }
 0x5fb   : > { %11629 = vmatmul.mubr.msk.bf16.vlgmr.msra.gmra.mrb[64].mxu1 %vm287_vm1, %v12874_v11  ;;  %v5388_v46 = vsel %vm5386_vm15, %v5377_v20, %v5379_v4 }
 0x5fc   : > { %v5375_v17 = vpop.permute.xlu0 %5374  ;;  %11630 = vmatmul.mubr.msk.bf16.vlgmr.msra.gmra.mrb[68].mxu0 %vm287_vm1, %v12874_v11  ;;  %5400 = vmatprep.subr.bf16.mxu1 %v5388_v46 }
 0x5fd   : > { %v5387_v22 = vsel %vm5386_vm15, %v5375_v17, %v5377_v20  ;;  %12142 = vmatprep.mubr.msk.bf16.mxu0 %vm12927_vm3, %v12926_v32  ;;  %5432 = vmatprep.mubr.bf16.mxu1 %v12917_v0 }
 0x5fe   : > { %5401 = vmatpush1.bf16.msra.mxu1 %v5387_v22  ;;  %v5224_v53 = vpop.permute.xlu1 %5223 }
 0x5ff   : > { %v5230_v24 = vsel %vm5225_vm14, %v5222_v15, %v5224_v53  ;;  %12146 = vmatprep.subr.bf16.mxu1 %v12926_v32  ;;  %vm5557_vm14 = vcmask 31744   ;;  %v12879_v15 = vld [vmem:[%s14856_s1 + $0x108] sm:$0xff]  }
 0x600   : > { %v5381_v13 = vpop.permute.xlu0 %5380  ;;  %12141 = vmatpush3.bf16.msra.mxu0 %v5230_v24 }
 0x601   : > { %v5389_v28 = vsel %vm5386_vm15, %v5379_v4, %v5381_v13 }
 0x602   : > { %v5383_v25 = vpop.permute.xlu1 %5382 }
 0x603   : > { %v5390_v26 = vsel %vm5386_vm15, %v5381_v13, %v5383_v25 }
 0x604   : > { %v5385_v27 = vpop.permute.xlu0 %5384  ;;  %12143 = vmatmul.mubr.msk.bf16.vlgmr.msra.gmra.mrb[72].mxu0 %vm287_vm1, %v12874_v11  ;;  %5443 = vmatprep.subr.bf16.mxu0 %v5390_v26  ;;  %v12880_v26 = vld [vmem:[%s14856_s1 + $0x110] sm:$0xff]  }
 0x605   : > { %v5391_v29 = vsel %vm5386_vm15, %v5383_v25, %v5385_v27  ;;  %5444 = vmatpush1.bf16.msra.mxu0 %v5389_v28  ;;  %5475 = vmatprep.mubr.bf16.mxu0 %v12917_v0  ;;  %vm5900_vm15 = vcmask 1014784  }
 0x606   : > { %v5548_v30 = vpop.permute.xlu1 %5547 }
 0x607   : > { %11635 = vmatmul.mubr.msk.bf16.vlgmr.msra.gmra.mrb[64].mxu1 %vm287_vm1, %v12875_v12 }
 0x608   : > { %12147 = vmatpush3.bf16.msra.mxu1 %v5391_v29  ;;  %v5550_v31 = vpop.permute.xlu0 %5549  ;;  %12148 = vmatprep.mubr.msk.bf16.mxu1 %vm12927_vm3, %v12926_v32 }
 0x609   : > { %v5559_v33 = vsel %vm5557_vm14, %v5548_v30, %v5550_v31 }
 0x60a   : > { %5571 = vmatprep.subr.bf16.mxu1 %v5559_v33  ;;  %v5546_v34 = vpop.permute.xlu1 %5545 }
 0x60b   : > { %v5558_v39 = vsel %vm5557_vm14, %v5546_v34, %v5548_v30 }
 0x60c   : > { %v5552_v35 = vpop.permute.xlu0 %5551  ;;  %11636 = vmatmul.mubr.msk.bf16.vlgmr.msra.gmra.mrb[68].mxu0 %vm287_vm1, %v12875_v12 }
 0x60d   : > { %5646 = vmatprep.mubr.bf16.mxu0 %v12917_v0  ;;  %v5560_v44 = vsel %vm5557_vm14, %v5550_v31, %v5552_v35  ;;  %v12881_v31 = vld [vmem:[%s14856_s1 + $0x118] sm:$0xff]  }
 0x60e   : > { %v5554_v36 = vpop.permute.xlu1 %5553 }
 0x60f   : > { %12149 = vmatmul.mubr.msk.bf16.vlgmr.msra.gmra.mrb[72].mxu1 %vm287_vm1, %v12875_v12  ;;  %v5561_v40 = vsel %vm5557_vm14, %v5552_v35, %v5554_v36 }
 0x610   : > { %5572 = vmatpush1.bf16.msra.mxu1 %v5558_v39  ;;  %v5556_v42 = vpop.permute.xlu0 %5555  ;;  %5614 = vmatprep.subr.bf16.mxu0 %v5561_v40 }
 0x611   : > { %5719 = vmatprep.subr.bf16.mxu1 %v13818_v19  ;;  %5615 = vmatpush1.bf16.msra.mxu0 %v5560_v44  ;;  %v5562_v23 = vsel %vm5557_vm14, %v5554_v36, %v5556_v42  ;;  %vm6071_vm14 = vcmask 293888  }
 0x612   : > { %v5891_v48 = vpop.permute.xlu1 %5890  ;;  %5603 = vmatprep.mubr.bf16.mxu1 %v12917_v0  ;;  %12152 = vmatprep.subr.bf16.mxu0 %v12926_v32 }
 0x614   : > { %v5893_v18 = vpop.permute.xlu0 %5892 }
 0x615   : > { %v5902_v56 = vsel %vm5900_vm15, %v5891_v48, %v5893_v18 }
 0x616   : > { %v5889_v51 = vpop.permute.xlu1 %5888 }
 0x617   : > { %11641 = vmatmul.mubr.msk.bf16.vlgmr.msra.gmra.mrb[64].mxu1 %vm287_vm1, %v12876_v49 }
 0x618   : > { %5720 = vmatpush1.bf16.msra.mxu1 %v13816_v14  ;;  %v5895_v52 = vpop.permute.xlu0 %5894  ;;  %11642 = vmatmul.mubr.msk.bf16.vlgmr.msra.gmra.mrb[68].mxu0 %vm287_vm1, %v12876_v49  ;;  %v12877_v14 = vld [vmem:[%s14856_s1 + $0xf8] sm:$0xff]  }
 0x619   : > { %12153 = vmatpush3.bf16.msra.mxu0 %v5562_v23  ;;  %12154 = vmatprep.mubr.msk.bf16.mxu0 %vm12927_vm3, %v12926_v32 }
 0x61a   : > { %5762 = vmatprep.subr.bf16.mxu0 %v13828_v47  ;;  %v5897_v19 = vpop.permute.xlu1 %5896  ;;  %5751 = vmatprep.mubr.bf16.mxu1 %v12917_v0 }
 0x61b   : > { %12158 = vmatprep.subr.bf16.mxu1 %v12926_v32  ;;  %v5904_v55 = vsel %vm5900_vm15, %v5895_v52, %v5897_v19 }
 0x61c   : > { %v6062_v41 = vpop.permute.xlu0 %6061 }
 0x61e   : > { %v6064_v54 = vpop.permute.xlu1 %6063 }
 0x61f   : > { %v6073_v60 = vsel %vm6071_vm14, %v6062_v41, %v6064_v54 }
 0x620   : > { %12155 = vmatmul.mubr.msk.bf16.vlgmr.msra.gmra.mrb[76].mxu0 %vm287_vm1, %v12876_v49  ;;  %v6060_v37 = vpop.permute.xlu0 %6059 }
 0x621   : > { %5763 = vmatpush1.bf16.msra.mxu0 %v13826_v45  ;;  %5794 = vmatprep.mubr.bf16.mxu0 %v12917_v0  ;;  %v5903_v45 = vsel %vm5900_vm15, %v5893_v18, %v5895_v52  ;;  %v6072_v2 = vsel %vm6071_vm14, %v6060_v37, %v6062_v41 }
 0x622   : > { %5957 = vmatprep.subr.bf16.mxu0 %v5904_v55  ;;  %v5899_v47 = vpop.permute.xlu1 %5898 }
 0x623   : > { %11647 = vmatmul.mubr.msk.bf16.vlgmr.msra.gmra.mrb[64].mxu1 %vm287_vm1, %v12877_v14  ;;  %v5905_v3 = vsel %vm5900_vm15, %v5897_v19, %v5899_v47 }
 0x624   : > { %12159 = vmatpush3.bf16.msra.mxu1 %v13834_v50  ;;  %12160 = vmatprep.mubr.msk.bf16.mxu1 %vm12927_vm3, %v12926_v32  ;;  %v6066_v59 = vpop.permute.xlu0 %6065  ;;  %v5901_v50 = vsel %vm5900_vm15, %v5889_v51, %v5891_v48  ;;  %vm6242_vm15 = vcmask 261120  }
 0x625   : > { %5914 = vmatprep.subr.bf16.mxu1 %v5902_v56  ;;  %v6074_v11 = vsel %vm6071_vm14, %v6064_v54, %v6066_v59 }
 0x626   : > { %v6068_v57 = vpop.permute.xlu1 %6067 }
 0x627   : > { %v6075_v6 = vsel %vm6071_vm14, %v6066_v59, %v6068_v57 }
 0x628   : > { %11648 = vmatmul.mubr.msk.bf16.vlgmr.msra.gmra.mrb[68].mxu0 %vm287_vm1, %v12877_v14  ;;  %v6070_v1 = vpop.permute.xlu0 %6069 }
 0x629   : > { %5958 = vmatpush1.bf16.msra.mxu0 %v5903_v45  ;;  %5989 = vmatprep.mubr.bf16.mxu0 %v12917_v0  ;;  %v6076_v21 = vsel %vm6071_vm14, %v6068_v57, %v6070_v1 }
 0x62a   : > { %12164 = vmatprep.subr.bf16.mxu0 %v12926_v32  ;;  %v6233_v61 = vpop.permute.xlu1 %6232 }
 0x62b   : > { %12161 = vmatmul.mubr.msk.bf16.vlgmr.msra.gmra.mrb[76].mxu1 %vm287_vm1, %v12877_v14 }
 0x62c   : > { %5915 = vmatpush1.bf16.msra.mxu1 %v5901_v50  ;;  %5946 = vmatprep.mubr.bf16.mxu1 %v12917_v0  ;;  %v6235_v7 = vpop.permute.xlu0 %6234 }
 0x62d   : > { %6085 = vmatprep.subr.bf16.mxu1 %v6073_v60  ;;  %v6244_v4 = vsel %vm6242_vm15, %v6233_v61, %v6235_v7 }
 0x62e   : > { %v6231_v5 = vpop.permute.xlu1 %6230 }
 0x62f   : > { %v6243_v53 = vsel %vm6242_vm15, %v6231_v5, %v6233_v61 }
 0x630   : > { %v6237_v16 = vpop.permute.xlu0 %6236 }
 0x631   : > { %v6245_v22 = vsel %vm6242_vm15, %v6235_v7, %v6237_v16 }
 0x632   : > { %v6239_v10 = vpop.permute.xlu1 %6238 }
 0x633   : > { %11653 = vmatmul.mubr.msk.bf16.vlgmr.msra.gmra.mrb[64].mxu1 %vm287_vm1, %v12878_v63  ;;  %v6246_v20 = vsel %vm6242_vm15, %v6237_v16, %v6239_v10 }
 0x634   : > { %6086 = vmatpush1.bf16.msra.mxu1 %v6072_v2  ;;  %11654 = vmatmul.mubr.msk.bf16.vlgmr.msra.gmra.mrb[68].mxu0 %vm287_vm1, %v12878_v63  ;;  %v6404_v17 = vpop.permute.xlu0 %6403 }
 0x635   : > { %12165 = vmatpush3.bf16.msra.mxu0 %v5905_v3  ;;  %12166 = vmatprep.mubr.msk.bf16.mxu0 %vm12927_vm3, %v12926_v32 }
 0x636   : > { %6128 = vmatprep.subr.bf16.mxu0 %v6075_v6  ;;  %6117 = vmatprep.mubr.bf16.mxu1 %v12917_v0  ;;  %v6406_v46 = vpop.permute.xlu1 %6405 }
 0x637   : > { %12170 = vmatprep.subr.bf16.mxu1 %v12926_v32  ;;  %v6415_v13 = vsel %vm6413_vm13, %v6404_v17, %v6406_v46 }
 0x638   : > { %v6402_v25 = vpop.permute.xlu0 %6401 }
 0x639   : > { %v6414_v27 = vsel %vm6413_vm13, %v6402_v25, %v6404_v17 }
 0x63a   : > { %v6241_v24 = vpop.permute.xlu1 %6240 }
 0x63b   : > { %v6247_v28 = vsel %vm6242_vm15, %v6239_v10, %v6241_v24 }
 0x63c   : > { %12167 = vmatmul.mubr.msk.bf16.vlgmr.msra.gmra.mrb[80].mxu0 %vm287_vm1, %v12878_v63  ;;  %v6408_v29 = vpop.permute.xlu0 %6407 }
 0x63d   : > { %6129 = vmatpush1.bf16.msra.mxu0 %v6074_v11  ;;  %6160 = vmatprep.mubr.bf16.mxu0 %v12917_v0  ;;  %v6416_v34 = vsel %vm6413_vm13, %v6406_v46, %v6408_v29 }
 0x63e   : > { %6299 = vmatprep.subr.bf16.mxu0 %v6246_v20  ;;  %v6410_v12 = vpop.permute.xlu1 %6409 }
 0x63f   : > { %11659 = vmatmul.mubr.msk.bf16.vlgmr.msra.gmra.mrb[64].mxu1 %vm287_vm1, %v12879_v15  ;;  %v6417_v30 = vsel %vm6413_vm13, %v6408_v29, %v6410_v12 }
 0x640   : > { %12171 = vmatpush3.bf16.msra.mxu1 %v6076_v21  ;;  %12172 = vmatprep.mubr.msk.bf16.mxu1 %vm12927_vm3, %v12926_v32  ;;  %v6412_v33 = vpop.permute.xlu0 %6411 }
 0x641   : > { %6256 = vmatprep.subr.bf16.mxu1 %v6244_v4  ;;  %v6418_v35 = vsel %vm6413_vm13, %v6410_v12, %v6412_v33 }
 0x644   : > { %11660 = vmatmul.mubr.msk.bf16.vlgmr.msra.gmra.mrb[68].mxu0 %vm287_vm1, %v12879_v15 }
 0x645   : > { %6300 = vmatpush1.bf16.msra.mxu0 %v6245_v22  ;;  %6331 = vmatprep.mubr.bf16.mxu0 %v12917_v0 }
 0x646   : > { %12176 = vmatprep.subr.bf16.mxu0 %v12926_v32 }
 0x647   : > { %12173 = vmatmul.mubr.msk.bf16.vlgmr.msra.gmra.mrb[80].mxu1 %vm287_vm1, %v12879_v15 }
 0x648   : > { %6257 = vmatpush1.bf16.msra.mxu1 %v6243_v53  ;;  %6288 = vmatprep.mubr.bf16.mxu1 %v12917_v0 }
 0x649   : > { %6427 = vmatprep.subr.bf16.mxu1 %v6415_v13 }
 0x64f   : > { %11665 = vmatmul.mubr.msk.bf16.vlgmr.msra.gmra.mrb[64].mxu1 %vm287_vm1, %v12880_v26  ;;  %v6570_v24 = vpop.permute.xlu1 %6569 }
 0x650   : > { %6428 = vmatpush1.bf16.msra.mxu1 %v6414_v27  ;;  %11666 = vmatmul.mubr.msk.bf16.vlgmr.msra.gmra.mrb[68].mxu0 %vm287_vm1, %v12880_v26 }
 0x651   : > { %12177 = vmatpush3.bf16.msra.mxu0 %v6247_v28  ;;  %12178 = vmatprep.mubr.msk.bf16.mxu0 %vm12927_vm3, %v12926_v32  ;;  %v6575_v29 = vpop.permute.xlu0 %6574 }
 0x652   : > { %6470 = vmatprep.subr.bf16.mxu0 %v6417_v30  ;;  %6459 = vmatprep.mubr.bf16.mxu1 %v12917_v0 }
 0x653   : > { %12182 = vmatprep.subr.bf16.mxu1 %v12926_v32 }
 0x658   : > { %12179 = vmatmul.mubr.msk.bf16.vlgmr.msra.gmra.mrb[84].mxu0 %vm287_vm1, %v12880_v26 }
 0x659   : > { %6471 = vmatpush1.bf16.msra.mxu0 %v6416_v34  ;;  %6502 = vmatprep.mubr.bf16.mxu0 %v12917_v0 }
 0x65b   : > { %11671 = vmatmul.mubr.msk.bf16.vlgmr.msra.gmra.mrb[64].mxu1 %vm287_vm1, %v12881_v31 }
 0x65c   : > { %12183 = vmatpush3.bf16.msra.mxu1 %v6418_v35  ;;  %12184 = vmatprep.mubr.msk.bf16.mxu1 %vm12927_vm3, %v12926_v32 }
 0x660   : > { %11672 = vmatmul.mubr.msk.bf16.vlgmr.msra.gmra.mrb[68].mxu0 %vm287_vm1, %v12881_v31 }
 0x661   : > { %6709 = vmatprep.mubr.bf16.mxu0 %v12917_v0 }
 0x663   : > { %12185 = vmatmul.mubr.msk.bf16.vlgmr.msra.gmra.mrb[84].mxu1 %vm287_vm1, %v12881_v31 }
 0x664   : > { %6752 = vmatprep.mubr.bf16.mxu1 %v12917_v0 }
 0x6c6   : > { %v5201_v36 = vpop.f32.mrb[68].mxu1 }
 0x6c7   : > { %v12138_v39 = vpop.f32.mrb[69].mxu1 }
 0x6c8   : > { %v5204_v40 = vpop.f32.mrb[70].mxu1 }
 0x6c9   : > { %v12139_v42 = vpop.f32.mrb[71].mxu1 }
 0x6d7   : > { %v5359_v44 = vpop.f32.mrb[72].mxu0 }
 0x6d8   : > { %v5360_v48 = vadd.f32 %v5359_v44, %v5201_v36  ;;  %v12144_v49 = vpop.f32.mrb[73].mxu0 }
 0x6d9   : > { %v5362_v18 = vpop.f32.mrb[74].mxu0 }
 0x6da   : > { %v5363_v51 = vadd.f32 %v5362_v18, %v5204_v40  ;;  %v12145_v23 = vpop.f32.mrb[75].mxu0 }
 0x6e2   : > { %v5520_v52 = vpop.f32.mrb[72].mxu1 }
 0x6e3   : > { %v5531_v19 = vadd.f32 %v5520_v52, %v5360_v48  ;;  %v12150_v41 = vpop.f32.mrb[73].mxu1 }
 0x6e4   : > { %v5523_v54 = vpop.f32.mrb[74].mxu1 }
 0x6e5   : > { %v5536_v14 = vadd.f32 %v5523_v54, %v5363_v51  ;;  %v12151_v55 = vpop.f32.mrb[75].mxu1 }
 0x6f3   : > { %v5691_v47 = vpop.f32.mrb[76].mxu0 }
 0x6f4   : > { %v5702_v37 = vadd.f32 %v5691_v47, %v5531_v19  ;;  %v12156_v56 = vpop.f32.mrb[77].mxu0 }
 0x6f5   : > { %v5694_v57 = vpop.f32.mrb[78].mxu0 }
 0x6f6   : > { %v5707_v45 = vadd.f32 %v5694_v57, %v5536_v14  ;;  %v12157_v59 = vpop.f32.mrb[79].mxu0 }
 0x6fe   : > { %v5839_v50 = vpop.f32.mrb[76].mxu1 }
 0x6ff   : > { %v5850_v60 = vadd.f32 %v5839_v50, %v5702_v37  ;;  %v12162_v61 = vpop.f32.mrb[77].mxu1 }
 0x700   : > { %v5842_v63 = vpop.f32.mrb[78].mxu1 }
 0x701   : > { %v5855_v1 = vadd.f32 %v5842_v63, %v5707_v45  ;;  %v12163_v2 = vpop.f32.mrb[79].mxu1 }
 0x70f   : > { %v6034_v3 = vpop.f32.mrb[80].mxu0 }
 0x710   : > { %v6045_v5 = vadd.f32 %v6034_v3, %v5850_v60  ;;  %v12168_v6 = vpop.f32.mrb[81].mxu0 }
 0x711   : > { %v6037_v7 = vpop.f32.mrb[82].mxu0 }
 0x712   : > { %v6050_v10 = vadd.f32 %v6037_v7, %v5855_v1  ;;  %v12169_v15 = vpop.f32.mrb[83].mxu0 }
 0x71a   : > { %v6205_v16 = vpop.f32.mrb[80].mxu1 }
 0x71b   : > { %v6216_v11 = vadd.f32 %v6205_v16, %v6045_v5  ;;  %v12174_v20 = vpop.f32.mrb[81].mxu1 }
 0x71c   : > { %v6208_v21 = vpop.f32.mrb[82].mxu1 }
 0x71d   : > { %v6221_v4 = vadd.f32 %v6208_v21, %v6050_v10  ;;  %v12175_v46 = vpop.f32.mrb[83].mxu1 }
 0x72b   : > { %v6376_v17 = vpop.f32.mrb[84].mxu0 }
 0x72c   : > { %v6387_v22 = vadd.f32 %v6376_v17, %v6216_v11  ;;  %v12180_v53 = vpop.f32.mrb[85].mxu0 }
 0x72d   : > { %v6379_v13 = vpop.f32.mrb[86].mxu0  ;;  %v11731_v53 = vld [vmem:[%s14857_s2 + $0x48] sm:$0xff] }
 0x72e   : > { %v6392_v25 = vadd.f32 %v6379_v13, %v6221_v4  ;;  %v12181_v26 = vpop.f32.mrb[87].mxu0  ;;  %v6461_v12 = vpop.f32.mrb[64].mxu1 }
 0x72f   : > { %v6577_v27 = vadd.f32 %v6570_v24, %v6461_v12  ;;  %v6463_v28 = vpop.f32.mrb[65].mxu1 }
 0x730   : > { %v6578_v30 = vadd.f32 %v6570_v24, %v6463_v28  ;;  %v6465_v31 = vpop.f32.mrb[66].mxu1  ;;  %v12882_v28 = vld [vmem:[%s14856_s1 + $0x128] sm:$0xff]  }
 0x731   : > { %v6587_v33 = vmax.f32 %v6577_v27, 0.0  ;;  %v6582_v34 = vadd.f32 %v6575_v29, %v6465_v31  ;;  %v6467_v35 = vpop.f32.mrb[67].mxu1 }
 0x732   : > { %v6588_v36 = vmax.f32 %v6578_v30, 0.0  ;;  %v6583_v39 = vadd.f32 %v6575_v29, %v6467_v35 }
 0x733   : > { %v6592_v40 = vmax.f32 %v6582_v34, 0.0  ;;  %v6504_v42 = vpop.f32.mrb[68].mxu0  ;;  %v6597_v18 = vmul.f32 %v6587_v33, %v13269_v58 }
 0x734   : > { %v6593_v44 = vmax.f32 %v6583_v39, 0.0  ;;  %v6579_v48 = vadd.f32 %v6570_v24, %v6504_v42  ;;  %v6506_v49 = vpop.f32.mrb[69].mxu0  ;;  %v6598_v19 = vmul.f32 %v6588_v36, %v13271_v62 }
 0x735   : > { %v6602_v51 = vmul.f32 %v6592_v40, %v13269_v58  ;;  %v6580_v23 = vadd.f32 %v6570_v24, %v6506_v49  ;;  %v6508_v52 = vpop.f32.mrb[70].mxu0 }
 0x736   : > { %v6603_v41 = vmul.f32 %v6593_v44, %v13271_v62  ;;  %v6589_v54 = vmax.f32 %v6579_v48, 0.0  ;;  %v6584_v14 = vadd.f32 %v6575_v29, %v6508_v52  ;;  %v6510_v55 = vpop.f32.mrb[71].mxu0  ;;  %v6547_v47 = vpop.f32.mrb[84].mxu1 }
 0x737   : > { %v14034_v37 = vpack.c.bf16 %v6602_v51, %v6597_v18  ;;  %v6590_v56 = vmax.f32 %v6580_v23, 0.0  ;;  %v6585_v57 = vadd.f32 %v6575_v29, %v6510_v55  ;;  %v6558_v45 = vadd.f32 %v6547_v47, %v6387_v22  ;;  %v12186_v59 = vpop.f32.mrb[85].mxu1  ;;  %v11730_v22 = vld [vmem:[%s14857_s2 + $0x40] sm:$0xff] }
 0x738   : > { %v14036_v50 = vpack.c.bf16 %v6603_v41, %v6598_v19  ;;  %v6594_v60 = vmax.f32 %v6584_v14, 0.0  ;;  %v6550_v61 = vpop.f32.mrb[86].mxu1  ;;  %v6599_v5 = vmul.f32 %v6589_v54, %v13273_v8  ;;  %v12883_v18 = vld [vmem:[%s14856_s1 + $0x120] sm:$0xff]  }
 0x739   : > { %v6595_v63 = vmax.f32 %v6585_v57, 0.0  ;;  %v6581_v1 = vadd.f32 %v6570_v24, %v6558_v45  ;;  %v6563_v2 = vadd.f32 %v6550_v61, %v6392_v25  ;;  %v12187_v3 = vpop.f32.mrb[87].mxu1  ;;  %6654 = vrot.lane.b32.xlu1 %v14034_v37, %s12937_s6  ;;  %v6600_v7 = vmul.f32 %v6590_v56, %v13275_v9  ;;  %v12884_v45 = vld [vmem:[%s14856_s1 + $0x130] sm:$0xff]  }
 0x73a   : > { %v6604_v6 = vmul.f32 %v6594_v60, %v13273_v8  ;;  %6656 = vrot.lane.b32.xlu0 %v14036_v50, %s12937_s6 }
 0x73b   : > { %v6605_v10 = vmul.f32 %v6595_v63, %v13275_v9  ;;  %v6591_v15 = vmax.f32 %v6581_v1, 0.0  ;;  %v6586_v16 = vadd.f32 %v6575_v29, %v6563_v2 }
 0x73c   : > { %v14046_v11 = vpack.c.bf16 %v6604_v6, %v6599_v5 }
 0x73d   : > { %v14048_v20 = vpack.c.bf16 %v6605_v10, %v6600_v7  ;;  %v6596_v21 = vmax.f32 %v6586_v16, 0.0  ;;  %6652 = vrot.lane.b32.xlu1 %v12929_v43, %s12937_s6  ;;  %v6601_v4 = vmul.f32 %v6591_v15, %v13296_v38 }
 0x73e   : > { %6658 = vrot.lane.b32.xlu0 %v14046_v11, %s12937_s6 }
 0x73f   : > { %v6606_v46 = vmul.f32 %v6596_v21, %v13296_v38 }
 0x741   : > { %v14056_v17 = vpack.c.bf16 %v6606_v46, %v6601_v4  ;;  %6660 = vrot.lane.b32.xlu1 %v14048_v20, %s12937_s6  ;;  %v12885_v4 = vld [vmem:[%s14856_s1 + $0x138] sm:$0xff]  }
 0x743   : > { %6662 = vrot.lane.b32.xlu0 %v14056_v17, %s12937_s6 }
 0x745   : > { %6811 = vrot.lane.b32.xlu1 %v14034_v37, %s12938_s7 }
 0x747   : > { %6813 = vrot.lane.b32.xlu0 %v14036_v50, %s12938_s7 }
 0x749   : > { %6809 = vrot.lane.b32.xlu1 %v12929_v43, %s12938_s7 }
 0x74b   : > { %6815 = vrot.lane.b32.xlu0 %v14046_v11, %s12938_s7 }
 0x74d   : > { %6817 = vrot.lane.b32.xlu1 %v14048_v20, %s12938_s7 }
 0x74f   : > { %6971 = vrot.lane.b32.xlu0 %v14034_v37, %s12939_s8 }
 0x751   : > { %6973 = vrot.lane.b32.xlu1 %v14036_v50, %s12939_s8 }
 0x753   : > { %6969 = vrot.lane.b32.xlu0 %v12929_v43, %s12939_s8 }
 0x755   : > { %6819 = vrot.lane.b32.xlu1 %v14056_v17, %s12938_s7 }
 0x757   : > { %6975 = vrot.lane.b32.xlu0 %v14046_v11, %s12939_s8 }
 0x759   : > { %6977 = vrot.lane.b32.xlu1 %v14048_v20, %s12939_s8 }
 0x75b   : > { %6979 = vrot.lane.b32.xlu0 %v14056_v17, %s12939_s8 }
 0x75d   : > { %7141 = vrot.lane.b32.xlu1 %v14034_v37, %s12940_s9 }
 0x75f   : > { %7143 = vrot.lane.b32.xlu0 %v14036_v50, %s12940_s9 }
 0x761   : > { %7139 = vrot.lane.b32.xlu1 %v12929_v43, %s12940_s9 }
 0x763   : > { %7145 = vrot.lane.b32.xlu0 %v14046_v11, %s12940_s9 }
 0x765   : > { %7147 = vrot.lane.b32.xlu1 %v14048_v20, %s12940_s9 }
 0x767   : > { %7149 = vrot.lane.b32.xlu0 %v14056_v17, %s12940_s9 }
 0x769   : > { %7483 = vrot.lane.b32.xlu1 %v14036_v50, %s12941_s10 }
 0x76b   : > { %7485 = vrot.lane.b32.xlu0 %v14046_v11, %s12941_s10 }
 0x76d   : > { %7481 = vrot.lane.b32.xlu1 %v14034_v37, %s12941_s10 }
 0x76f   : > { %7487 = vrot.lane.b32.xlu0 %v14048_v20, %s12941_s10 }
 0x771   : > { %7489 = vrot.lane.b32.xlu1 %v14056_v17, %s12941_s10 }
 0x773   : > { %7653 = vrot.lane.b32.xlu0 %v14036_v50, %s12942_s11 }
 0x775   : > { %7655 = vrot.lane.b32.xlu1 %v14046_v11, %s12942_s11 }
 0x777   : > { %7651 = vrot.lane.b32.xlu0 %v14034_v37, %s12942_s11 }
 0x779   : > { %7491 = vrot.lane.b32.xlu1 %v12929_v43, %s12941_s10 }
 0x77b   : > { %7657 = vrot.lane.b32.xlu0 %v14048_v20, %s12942_s11 }
 0x77d   : > { %7659 = vrot.lane.b32.xlu1 %v14056_v17, %s12942_s11 }
 0x77f   : > { %7661 = vrot.lane.b32.xlu0 %v12929_v43, %s12942_s11 }
 0x781   : > { %7823 = vrot.lane.b32.xlu1 %v14036_v50, %s12943_s5 }
 0x783   : > { %7825 = vrot.lane.b32.xlu0 %v14046_v11, %s12943_s5 }
 0x785   : > { %7821 = vrot.lane.b32.xlu1 %v14034_v37, %s12943_s5 }
 0x787   : > { %7827 = vrot.lane.b32.xlu0 %v14048_v20, %s12943_s5 }
 0x789   : > { %7829 = vrot.lane.b32.xlu1 %v14056_v17, %s12943_s5 }
 0x78b   : > { %7993 = vrot.lane.b32.xlu0 %v14036_v50, %s12944_s28 }
 0x78d   : > { %7995 = vrot.lane.b32.xlu1 %v14046_v11, %s12944_s28 }
 0x78f   : > { %7991 = vrot.lane.b32.xlu0 %v14034_v37, %s12944_s28 }
 0x791   : > { %7831 = vrot.lane.b32.xlu1 %v12929_v43, %s12943_s5 }
 0x793   : > { %7997 = vrot.lane.b32.xlu0 %v14048_v20, %s12944_s28 }
 0x795   : > { %7999 = vrot.lane.b32.xlu1 %v14056_v17, %s12944_s28 }
 0x797   : > { %8001 = vrot.lane.b32.xlu0 %v12929_v43, %s12944_s28 }
 0x799   : > { %8158 = vperm.xlu1 %12845, %v11730_v22  }
 0x79b   : > { %8163 = vperm.xlu0 %12844, %v11731_v53  }
 0x7ab   : > { %v6655_v24 = vpop.permute.xlu1 %6654 }
 0x7ac   : > { %v6657_v13 = vpop.permute.xlu0 %6656 }
 0x7ad   : > { %v6665_v25 = vsel %vm3470_vm7, %v6655_v24, %v6657_v13 }
 0x7ae   : > { %6677 = vmatprep.subr.bf16.mxu0 %v6665_v25 }
 0x7af   : > { %v6653_v26 = vpop.permute.xlu1 %6652 }
 0x7b0   : > { %v6664_v12 = vsel %vm3470_vm7, %v6653_v26, %v6655_v24  ;;  %v6659_v27 = vpop.permute.xlu0 %6658 }
 0x7b1   : > { %6678 = vmatpush1.bf16.msra.mxu0 %v6664_v12  ;;  %v6666_v33 = vsel %vm3470_vm7, %v6657_v13, %v6659_v27 }
 0x7b2   : > { %12188 = vmatprep.subr.bf16.mxu0 %v12926_v32 }
 0x7b3   : > { %v6661_v29 = vpop.permute.xlu1 %6660 }
 0x7b4   : > { %11681 = vmatmul.mubr.msk.bf16.vlgmr.msra.gmra.mrb[88].mxu0 %vm287_vm1, %v12882_v28  ;;  %v6667_v30 = vsel %vm3470_vm7, %v6659_v27, %v6661_v29 }
 0x7b5   : > { %v6663_v31 = vpop.permute.xlu0 %6662  ;;  %6720 = vmatprep.subr.bf16.mxu1 %v6667_v30  ;;  %12190 = vmatprep.mubr.msk.bf16.mxu0 %vm12927_vm3, %v12926_v32 }
 0x7b6   : > { %v6668_v34 = vsel %vm3470_vm7, %v6661_v29, %v6663_v31  ;;  %6721 = vmatpush1.bf16.msra.mxu1 %v6666_v33  ;;  %v12887_v33 = vld [vmem:[%s14856_s1 + $0x148] sm:$0xff]   ;;  %vm14892_vm7 = vcmask 1031168  }
 0x7b7   : > { %12189 = vmatpush3.bf16.msra.mxu0 %v6668_v34  ;;  %v6812_v35 = vpop.permute.xlu1 %6811  ;;  %vm14898_vm13 = vmmov %vm14892_vm7 }
 0x7b9   : > { %v6814_v36 = vpop.permute.xlu0 %6813  ;;  %11682 = vmatmul.mubr.msk.bf16.vlgmr.msra.gmra.mrb[88].mxu1 %vm287_vm1, %v12882_v28 }
 0x7ba   : > { %v6822_v39 = vsel %vm3628_vm6, %v6812_v35, %v6814_v36  ;;  %6909 = vmatprep.mubr.bf16.mxu1 %v12917_v0 }
 0x7bb   : > { %6834 = vmatprep.subr.bf16.mxu0 %v6822_v39  ;;  %v6810_v40 = vpop.permute.xlu1 %6809 }
 0x7bc   : > { %v6821_v42 = vsel %vm3628_vm6, %v6810_v40, %v6812_v35  ;;  %12191 = vmatmul.mubr.msk.bf16.vlgmr.msra.gmra.mrb[92].mxu0 %vm287_vm1, %v12882_v28 }
 0x7bd   : > { %v6816_v44 = vpop.permute.xlu0 %6815  ;;  %6835 = vmatpush1.bf16.msra.mxu0 %v6821_v42  ;;  %6866 = vmatprep.mubr.bf16.mxu0 %v12917_v0 }
 0x7be   : > { %v6823_v23 = vsel %vm3628_vm6, %v6814_v36, %v6816_v44 }
 0x7bf   : > { %v6818_v48 = vpop.permute.xlu1 %6817 }
 0x7c0   : > { %v6824_v49 = vsel %vm3628_vm6, %v6816_v44, %v6818_v48 }
 0x7c1   : > { %v6972_v51 = vpop.permute.xlu0 %6971  ;;  %6877 = vmatprep.subr.bf16.mxu1 %v6824_v49 }
 0x7c2   : > { %6878 = vmatpush1.bf16.msra.mxu1 %v6823_v23 }
 0x7c3   : > { %v6974_v52 = vpop.permute.xlu1 %6973  ;;  %12194 = vmatprep.subr.bf16.mxu1 %v12926_v32 }
 0x7c4   : > { %11685 = vmatmul.mubr.msk.bf16.vlgmr.msra.gmra.mrb[88].mxu0 %vm287_vm1, %v12883_v18  ;;  %v6982_v19 = vsel %vm3789_vm5, %v6972_v51, %v6974_v52 }
 0x7c5   : > { %v6970_v41 = vpop.permute.xlu0 %6969  ;;  %11686 = vmatmul.mubr.msk.bf16.vlgmr.msra.gmra.mrb[88].mxu1 %vm287_vm1, %v12883_v18  ;;  %6994 = vmatprep.subr.bf16.mxu0 %v6982_v19 }
 0x7c6   : > { %v6981_v54 = vsel %vm3789_vm5, %v6970_v41, %v6972_v51  ;;  %12196 = vmatprep.mubr.msk.bf16.mxu1 %vm12927_vm3, %v12926_v32  ;;  %7026 = vmatprep.mubr.bf16.mxu0 %v12917_v0 }
 0x7c7   : > { %6995 = vmatpush1.bf16.msra.mxu0 %v6981_v54  ;;  %v6820_v14 = vpop.permute.xlu1 %6819 }
 0x7c8   : > { %v6825_v55 = vsel %vm3628_vm6, %v6818_v48, %v6820_v14  ;;  %12200 = vmatprep.subr.bf16.mxu0 %v12926_v32  ;;  %v12888_v48 = vld [vmem:[%s14856_s1 + $0x150] sm:$0xff]  }
 0x7c9   : > { %v6976_v47 = vpop.permute.xlu0 %6975  ;;  %12195 = vmatpush3.bf16.msra.mxu1 %v6825_v55 }
 0x7ca   : > { %v6983_v60 = vsel %vm3789_vm5, %v6974_v52, %v6976_v47 }
 0x7cb   : > { %v6978_v56 = vpop.permute.xlu1 %6977 }
 0x7cc   : > { %v6984_v57 = vsel %vm3789_vm5, %v6976_v47, %v6978_v56 }
 0x7cd   : > { %v6980_v59 = vpop.permute.xlu0 %6979  ;;  %12197 = vmatmul.mubr.msk.bf16.vlgmr.msra.gmra.mrb[92].mxu1 %vm287_vm1, %v12883_v18  ;;  %7037 = vmatprep.subr.bf16.mxu1 %v6984_v57  ;;  %v12889_v57 = vld [vmem:[%s14856_s1 + $0x158] sm:$0xff]  }
 0x7ce   : > { %v6985_v61 = vsel %vm3789_vm5, %v6978_v56, %v6980_v59  ;;  %7038 = vmatpush1.bf16.msra.mxu1 %v6983_v60  ;;  %7069 = vmatprep.mubr.bf16.mxu1 %v12917_v0 }
 0x7cf   : > { %v7142_v63 = vpop.permute.xlu1 %7141 }
 0x7d0   : > { %11691 = vmatmul.mubr.msk.bf16.vlgmr.msra.gmra.mrb[88].mxu0 %vm287_vm1, %v12884_v45 }
 0x7d1   : > { %12201 = vmatpush3.bf16.msra.mxu0 %v6985_v61  ;;  %v7144_v1 = vpop.permute.xlu0 %7143  ;;  %12202 = vmatprep.mubr.msk.bf16.mxu0 %vm12927_vm3, %v12926_v32 }
 0x7d2   : > { %v7152_v2 = vsel %vm3960_vm4, %v7142_v63, %v7144_v1 }
 0x7d3   : > { %7164 = vmatprep.subr.bf16.mxu0 %v7152_v2  ;;  %v7140_v3 = vpop.permute.xlu1 %7139 }
 0x7d4   : > { %v7151_v7 = vsel %vm3960_vm4, %v7140_v3, %v7142_v63 }
 0x7d5   : > { %v7146_v5 = vpop.permute.xlu0 %7145  ;;  %11692 = vmatmul.mubr.msk.bf16.vlgmr.msra.gmra.mrb[88].mxu1 %vm287_vm1, %v12884_v45 }
 0x7d6   : > { %7239 = vmatprep.mubr.bf16.mxu1 %v12917_v0  ;;  %v7153_v16 = vsel %vm3960_vm4, %v7144_v1, %v7146_v5  ;;  %v12890_v1 = vld [vmem:[%s14856_s1 + $0x160] sm:$0xff]  }
 0x7d7   : > { %v7148_v6 = vpop.permute.xlu1 %7147 }
 0x7d8   : > { %12203 = vmatmul.mubr.msk.bf16.vlgmr.msra.gmra.mrb[96].mxu0 %vm287_vm1, %v12884_v45  ;;  %v7154_v10 = vsel %vm3960_vm4, %v7146_v5, %v7148_v6 }
 0x7d9   : > { %7165 = vmatpush1.bf16.msra.mxu0 %v7151_v7  ;;  %v7150_v15 = vpop.permute.xlu0 %7149  ;;  %7207 = vmatprep.subr.bf16.mxu1 %v7154_v10 }
 0x7da   : > { %7312 = vmatprep.subr.bf16.mxu0 %v14036_v50  ;;  %7208 = vmatpush1.bf16.msra.mxu1 %v7153_v16  ;;  %v7155_v53 = vsel %vm3960_vm4, %v7148_v6, %v7150_v15 }
 0x7db   : > { %v7484_v21 = vpop.permute.xlu1 %7483  ;;  %7196 = vmatprep.mubr.bf16.mxu0 %v12917_v0  ;;  %12206 = vmatprep.subr.bf16.mxu1 %v12926_v32 }
 0x7dd   : > { %v7486_v46 = vpop.permute.xlu0 %7485 }
 0x7de   : > { %v7494_v27 = vsel %vm4303_vm2, %v7484_v21, %v7486_v46 }
 0x7df   : > { %v7482_v22 = vpop.permute.xlu1 %7481 }
 0x7e0   : > { %11697 = vmatmul.mubr.msk.bf16.vlgmr.msra.gmra.mrb[88].mxu0 %vm287_vm1, %v12885_v4  ;;  %v7493_v30 = vsel %vm4303_vm2, %v7482_v22, %v7484_v21 }
 0x7e1   : > { %7313 = vmatpush1.bf16.msra.mxu0 %v14034_v37  ;;  %v7488_v24 = vpop.permute.xlu0 %7487  ;;  %11698 = vmatmul.mubr.msk.bf16.vlgmr.msra.gmra.mrb[88].mxu1 %vm287_vm1, %v12885_v4  ;;  %v12886_v37 = vld [vmem:[%s14856_s1 + $0x140] sm:$0xff]  }
 0x7e2   : > { %12207 = vmatpush3.bf16.msra.mxu1 %v7155_v53  ;;  %12208 = vmatprep.mubr.msk.bf16.mxu1 %vm12927_vm3, %v12926_v32 }
 0x7e3   : > { %7355 = vmatprep.subr.bf16.mxu1 %v14048_v20  ;;  %v7490_v50 = vpop.permute.xlu1 %7489  ;;  %7344 = vmatprep.mubr.bf16.mxu0 %v12917_v0 }
 0x7e4   : > { %12212 = vmatprep.subr.bf16.mxu0 %v12926_v32  ;;  %v7496_v26 = vsel %vm4303_vm2, %v7488_v24, %v7490_v50 }
 0x7e5   : > { %v7654_v13 = vpop.permute.xlu0 %7653 }
 0x7e7   : > { %v7656_v25 = vpop.permute.xlu1 %7655 }
 0x7e9   : > { %12209 = vmatmul.mubr.msk.bf16.vlgmr.msra.gmra.mrb[96].mxu1 %vm287_vm1, %v12885_v4  ;;  %v7652_v12 = vpop.permute.xlu0 %7651 }
 0x7ea   : > { %7356 = vmatpush1.bf16.msra.mxu1 %v14046_v11  ;;  %7387 = vmatprep.mubr.bf16.mxu1 %v12917_v0  ;;  %v7495_v11 = vsel %vm4303_vm2, %v7486_v46, %v7488_v24  ;;  %v7663_v35 = vsel %vm4474_vm0, %v7652_v12, %v7654_v13 }
 0x7eb   : > { %7549 = vmatprep.subr.bf16.mxu1 %v7496_v26  ;;  %v7492_v20 = vpop.permute.xlu1 %7491 }
 0x7ec   : > { %11703 = vmatmul.mubr.msk.bf16.vlgmr.msra.gmra.mrb[88].mxu0 %vm287_vm1, %v12886_v37  ;;  %v7497_v36 = vsel %vm4303_vm2, %v7490_v50, %v7492_v20 }
 0x7ed   : > { %12213 = vmatpush3.bf16.msra.mxu0 %v14056_v17  ;;  %12214 = vmatprep.mubr.msk.bf16.mxu0 %vm12927_vm3, %v12926_v32  ;;  %v7658_v29 = vpop.permute.xlu0 %7657  ;;  %v7664_v17 = vsel %vm4474_vm0, %v7654_v13, %v7656_v25 }
 0x7ee   : > { %7506 = vmatprep.subr.bf16.mxu0 %v7494_v27  ;;  %v7665_v18 = vsel %vm4474_vm0, %v7656_v25, %v7658_v29 }
 0x7ef   : > { %v7660_v28 = vpop.permute.xlu1 %7659 }
 0x7f0   : > { %v7666_v40 = vsel %vm4474_vm0, %v7658_v29, %v7660_v28 }
 0x7f1   : > { %11704 = vmatmul.mubr.msk.bf16.vlgmr.msra.gmra.mrb[88].mxu1 %vm287_vm1, %v12886_v37  ;;  %v7662_v34 = vpop.permute.xlu0 %7661 }
 0x7f2   : > { %7550 = vmatpush1.bf16.msra.mxu1 %v7495_v11  ;;  %7581 = vmatprep.mubr.bf16.mxu1 %v12917_v0  ;;  %v7667_v23 = vsel %vm4474_vm0, %v7660_v28, %v7662_v34  ;;  %vm14887_vm0 = vcmask 15360  }
 0x7f3   : > { %12218 = vmatprep.subr.bf16.mxu1 %v12926_v32  ;;  %v7824_v31 = vpop.permute.xlu1 %7823  ;;  %vm14888_vm2 = vmmov %vm14887_vm0 }
 0x7f4   : > { %12215 = vmatmul.mubr.msk.bf16.vlgmr.msra.gmra.mrb[100].mxu0 %vm287_vm1, %v12886_v37  ;;  %vm14889_vm4 = vmmov %vm14887_vm0 }
 0x7f5   : > { %7507 = vmatpush1.bf16.msra.mxu0 %v7493_v30  ;;  %7538 = vmatprep.mubr.bf16.mxu0 %v12917_v0  ;;  %v7826_v42 = vpop.permute.xlu0 %7825  ;;  %vm14890_vm5 = vmmov %vm14887_vm0 }
 0x7f6   : > { %7676 = vmatprep.subr.bf16.mxu0 %v7664_v17  ;;  %v7834_v52 = vsel %vm4645_vm8, %v7824_v31, %v7826_v42  ;;  %vm14891_vm6 = vmmov %vm14887_vm0 }
 0x7f7   : > { %v7822_v39 = vpop.permute.xlu1 %7821 }
 0x7f8   : > { %v7833_v14 = vsel %vm4645_vm8, %v7822_v39, %v7824_v31 }
 0x7f9   : > { %v7828_v49 = vpop.permute.xlu0 %7827 }
 0x7fa   : > { %v7835_v54 = vsel %vm4645_vm8, %v7826_v42, %v7828_v49 }
 0x7fb   : > { %v7830_v44 = vpop.permute.xlu1 %7829 }
 0x7fc   : > { %11709 = vmatmul.mubr.msk.bf16.vlgmr.msra.gmra.mrb[88].mxu0 %vm287_vm1, %v12887_v33  ;;  %v7836_v51 = vsel %vm4645_vm8, %v7828_v49, %v7830_v44 }
 0x7fd   : > { %7677 = vmatpush1.bf16.msra.mxu0 %v7663_v35  ;;  %11710 = vmatmul.mubr.msk.bf16.vlgmr.msra.gmra.mrb[88].mxu1 %vm287_vm1, %v12887_v33  ;;  %v7994_v41 = vpop.permute.xlu0 %7993 }
 0x7fe   : > { %12219 = vmatpush3.bf16.msra.mxu1 %v7497_v36  ;;  %12220 = vmatprep.mubr.msk.bf16.mxu1 %vm12927_vm3, %v12926_v32 }
 0x7ff   : > { %7719 = vmatprep.subr.bf16.mxu1 %v7666_v40  ;;  %7708 = vmatprep.mubr.bf16.mxu0 %v12917_v0  ;;  %v7996_v19 = vpop.permute.xlu1 %7995 }
 0x800   : > { %12224 = vmatprep.subr.bf16.mxu0 %v12926_v32  ;;  %v8004_v47 = vsel %vm4816_vm9, %v7994_v41, %v7996_v19 }
 0x801   : > { %v7992_v56 = vpop.permute.xlu0 %7991 }
 0x802   : > { %v8003_v59 = vsel %vm4816_vm9, %v7992_v56, %v7994_v41 }
 0x803   : > { %v7832_v55 = vpop.permute.xlu1 %7831 }
 0x804   : > { %v7837_v60 = vsel %vm4645_vm8, %v7830_v44, %v7832_v55  ;;  %vm14893_vm8 = vmmov %vm14892_vm7 }
 0x805   : > { %12221 = vmatmul.mubr.msk.bf16.vlgmr.msra.gmra.mrb[100].mxu1 %vm287_vm1, %v12887_v33  ;;  %v7998_v61 = vpop.permute.xlu0 %7997 }
 0x806   : > { %7720 = vmatpush1.bf16.msra.mxu1 %v7665_v18  ;;  %7751 = vmatprep.mubr.bf16.mxu1 %v12917_v0  ;;  %v8005_v3 = vsel %vm4816_vm9, %v7996_v19, %v7998_v61 }
 0x807   : > { %7889 = vmatprep.subr.bf16.mxu1 %v7836_v51  ;;  %v8000_v45 = vpop.permute.xlu1 %7999 }
 0x808   : > { %11715 = vmatmul.mubr.msk.bf16.vlgmr.msra.gmra.mrb[88].mxu0 %vm287_vm1, %v12888_v48  ;;  %v8006_v63 = vsel %vm4816_vm9, %v7998_v61, %v8000_v45 }
 0x809   : > { %12225 = vmatpush3.bf16.msra.mxu0 %v7667_v23  ;;  %12226 = vmatprep.mubr.msk.bf16.mxu0 %vm12927_vm3, %v12926_v32  ;;  %v8002_v2 = vpop.permute.xlu0 %8001 }
 0x80a   : > { %7846 = vmatprep.subr.bf16.mxu0 %v7834_v52  ;;  %v8007_v5 = vsel %vm4816_vm9, %v8000_v45, %v8002_v2  ;;  %vm14894_vm9 = vmmov %vm14892_vm7 }
 0x80d   : > { %11716 = vmatmul.mubr.msk.bf16.vlgmr.msra.gmra.mrb[88].mxu1 %vm287_vm1, %v12888_v48 }
 0x80e   : > { %7890 = vmatpush1.bf16.msra.mxu1 %v7835_v54  ;;  %7921 = vmatprep.mubr.bf16.mxu1 %v12917_v0 }
 0x80f   : > { %12230 = vmatprep.subr.bf16.mxu1 %v12926_v32 }
 0x810   : > { %12227 = vmatmul.mubr.msk.bf16.vlgmr.msra.gmra.mrb[104].mxu0 %vm287_vm1, %v12888_v48 }
 0x811   : > { %7847 = vmatpush1.bf16.msra.mxu0 %v7833_v14  ;;  %7878 = vmatprep.mubr.bf16.mxu0 %v12917_v0 }
 0x812   : > { %8016 = vmatprep.subr.bf16.mxu0 %v8004_v47 }
 0x818   : > { %11721 = vmatmul.mubr.msk.bf16.vlgmr.msra.gmra.mrb[88].mxu0 %vm287_vm1, %v12889_v57  ;;  %v8159_v55 = vpop.permute.xlu1 %8158 }
 0x819   : > { %8017 = vmatpush1.bf16.msra.mxu0 %v8003_v59  ;;  %11722 = vmatmul.mubr.msk.bf16.vlgmr.msra.gmra.mrb[88].mxu1 %vm287_vm1, %v12889_v57 }
 0x81a   : > { %12231 = vmatpush3.bf16.msra.mxu1 %v7837_v60  ;;  %12232 = vmatprep.mubr.msk.bf16.mxu1 %vm12927_vm3, %v12926_v32  ;;  %v8164_v61 = vpop.permute.xlu0 %8163 }
 0x81b   : > { %8059 = vmatprep.subr.bf16.mxu1 %v8006_v63  ;;  %8048 = vmatprep.mubr.bf16.mxu0 %v12917_v0 }
 0x81c   : > { %12236 = vmatprep.subr.bf16.mxu0 %v12926_v32 }
 0x821   : > { %12233 = vmatmul.mubr.msk.bf16.vlgmr.msra.gmra.mrb[104].mxu1 %vm287_vm1, %v12889_v57 }
 0x822   : > { %8060 = vmatpush1.bf16.msra.mxu1 %v8005_v3  ;;  %8091 = vmatprep.mubr.bf16.mxu1 %v12917_v0 }
 0x824   : > { %11727 = vmatmul.mubr.msk.bf16.vlgmr.msra.gmra.mrb[88].mxu0 %vm287_vm1, %v12890_v1 }
 0x825   : > { %12237 = vmatpush3.bf16.msra.mxu0 %v8007_v5  ;;  %12238 = vmatprep.mubr.msk.bf16.mxu0 %vm12927_vm3, %v12926_v32 }
 0x829   : > { %11728 = vmatmul.mubr.msk.bf16.vlgmr.msra.gmra.mrb[88].mxu1 %vm287_vm1, %v12890_v1 }
 0x82a   : > { %8298 = vmatprep.mubr.bf16.mxu1 %v12917_v0 }
 0x82c   : > { %12239 = vmatmul.mubr.msk.bf16.vlgmr.msra.gmra.mrb[108].mxu0 %vm287_vm1, %v12890_v1 }
 0x82d   : > { %8341 = vmatprep.mubr.bf16.mxu0 %v12917_v0 }
 0x88f   : > { %v6797_v6 = vpop.f32.mrb[92].mxu0 }
 0x890   : > { %v12192_v7 = vpop.f32.mrb[93].mxu0 }
 0x891   : > { %v6800_v10 = vpop.f32.mrb[94].mxu0 }
 0x892   : > { %v12193_v15 = vpop.f32.mrb[95].mxu0 }
 0x8a0   : > { %v6954_v16 = vpop.f32.mrb[92].mxu1 }
 0x8a1   : > { %v6955_v21 = vadd.f32 %v6954_v16, %v6797_v6  ;;  %v12198_v4 = vpop.f32.mrb[93].mxu1 }
 0x8a2   : > { %v6957_v46 = vpop.f32.mrb[94].mxu1 }
 0x8a3   : > { %v6958_v22 = vadd.f32 %v6957_v46, %v6800_v10  ;;  %v12199_v53 = vpop.f32.mrb[95].mxu1 }
 0x8ab   : > { %v7114_v24 = vpop.f32.mrb[96].mxu0 }
 0x8ac   : > { %v7125_v50 = vadd.f32 %v7114_v24, %v6955_v21  ;;  %v12204_v13 = vpop.f32.mrb[97].mxu0 }
 0x8ad   : > { %v7117_v25 = vpop.f32.mrb[98].mxu0 }
 0x8ae   : > { %v7130_v37 = vadd.f32 %v7117_v25, %v6958_v22  ;;  %v12205_v26 = vpop.f32.mrb[99].mxu0 }
 0x8bc   : > { %v7284_v20 = vpop.f32.mrb[96].mxu1 }
 0x8bd   : > { %v7295_v12 = vadd.f32 %v7284_v20, %v7125_v50  ;;  %v12210_v27 = vpop.f32.mrb[97].mxu1 }
 0x8be   : > { %v7287_v28 = vpop.f32.mrb[98].mxu1 }
 0x8bf   : > { %v7300_v11 = vadd.f32 %v7287_v28, %v7130_v37  ;;  %v12211_v29 = vpop.f32.mrb[99].mxu1 }
 0x8c7   : > { %v7432_v30 = vpop.f32.mrb[100].mxu0 }
 0x8c8   : > { %v7443_v17 = vadd.f32 %v7432_v30, %v7295_v12  ;;  %v12216_v31 = vpop.f32.mrb[101].mxu0 }
 0x8c9   : > { %v7435_v33 = vpop.f32.mrb[102].mxu0 }
 0x8ca   : > { %v7448_v34 = vadd.f32 %v7435_v33, %v7300_v11  ;;  %v12217_v35 = vpop.f32.mrb[103].mxu0 }
 0x8d8   : > { %v7626_v36 = vpop.f32.mrb[100].mxu1 }
 0x8d9   : > { %v7637_v39 = vadd.f32 %v7626_v36, %v7443_v17  ;;  %v12222_v40 = vpop.f32.mrb[101].mxu1 }
 0x8da   : > { %v7629_v42 = vpop.f32.mrb[102].mxu1 }
 0x8db   : > { %v7642_v44 = vadd.f32 %v7629_v42, %v7448_v34  ;;  %v12223_v48 = vpop.f32.mrb[103].mxu1 }
 0x8e3   : > { %v7796_v49 = vpop.f32.mrb[104].mxu0 }
 0x8e4   : > { %v7807_v18 = vadd.f32 %v7796_v49, %v7637_v39  ;;  %v12228_v51 = vpop.f32.mrb[105].mxu0 }
 0x8e5   : > { %v7799_v23 = vpop.f32.mrb[106].mxu0 }
 0x8e6   : > { %v7812_v52 = vadd.f32 %v7799_v23, %v7642_v44  ;;  %v12229_v19 = vpop.f32.mrb[107].mxu0 }
 0x8f4   : > { %v7966_v41 = vpop.f32.mrb[104].mxu1 }
 0x8f5   : > { %v7977_v54 = vadd.f32 %v7966_v41, %v7807_v18  ;;  %v12234_v14 = vpop.f32.mrb[105].mxu1 }
 0x8f6   : > { %v7969_v47 = vpop.f32.mrb[106].mxu1  ;;  %v11787_v14 = vld [vmem:[%s14857_s2 + $0x58] sm:$0xff] }
 0x8f7   : > { %v7982_v56 = vadd.f32 %v7969_v47, %v7812_v52  ;;  %v12235_v57 = vpop.f32.mrb[107].mxu1  ;;  %v8050_v45 = vpop.f32.mrb[88].mxu0 }
 0x8f8   : > { %v8166_v59 = vadd.f32 %v8159_v55, %v8050_v45  ;;  %v8052_v60 = vpop.f32.mrb[89].mxu0 }
 0x8f9   : > { %v8167_v63 = vadd.f32 %v8159_v55, %v8052_v60  ;;  %v8054_v1 = vpop.f32.mrb[90].mxu0  ;;  %v12891_v60 = vld [vmem:[%s14856_s1 + $0x170] sm:$0xff]  }
 0x8fa   : > { %v8176_v2 = vmax.f32 %v8166_v59, 0.0  ;;  %v8171_v3 = vadd.f32 %v8164_v61, %v8054_v1  ;;  %v8056_v5 = vpop.f32.mrb[91].mxu0 }
 0x8fb   : > { %v8177_v6 = vmax.f32 %v8167_v63, 0.0  ;;  %v8172_v7 = vadd.f32 %v8164_v61, %v8056_v5 }
 0x8fc   : > { %v8181_v10 = vmax.f32 %v8171_v3, 0.0  ;;  %v8093_v15 = vpop.f32.mrb[88].mxu1  ;;  %v8186_v46 = vmul.f32 %v8176_v2, %v13269_v58 }
 0x8fd   : > { %v8182_v16 = vmax.f32 %v8172_v7, 0.0  ;;  %v8168_v21 = vadd.f32 %v8159_v55, %v8093_v15  ;;  %v8095_v4 = vpop.f32.mrb[89].mxu1  ;;  %v8187_v50 = vmul.f32 %v8177_v6, %v13271_v62 }
 0x8fe   : > { %v8191_v22 = vmul.f32 %v8181_v10, %v13269_v58  ;;  %v8169_v53 = vadd.f32 %v8159_v55, %v8095_v4  ;;  %v8097_v24 = vpop.f32.mrb[90].mxu1 }
 0x8ff   : > { %v8192_v13 = vmul.f32 %v8182_v16, %v13271_v62  ;;  %v8178_v25 = vmax.f32 %v8168_v21, 0.0  ;;  %v8173_v37 = vadd.f32 %v8164_v61, %v8097_v24  ;;  %v8099_v26 = vpop.f32.mrb[91].mxu1  ;;  %v8136_v20 = vpop.f32.mrb[108].mxu0 }
 0x900   : > { %v14300_v12 = vpack.c.bf16 %v8191_v22, %v8186_v46  ;;  %v8179_v27 = vmax.f32 %v8169_v53, 0.0  ;;  %v8174_v28 = vadd.f32 %v8164_v61, %v8099_v26  ;;  %v8147_v11 = vadd.f32 %v8136_v20, %v7977_v54  ;;  %v12240_v29 = vpop.f32.mrb[109].mxu0  ;;  %v11786_v54 = vld [vmem:[%s14857_s2 + $0x50] sm:$0xff]  ;;  %v12892_v46 = vld [vmem:[%s14856_s1 + $0x168] sm:$0xff]  }
 0x901   : > { %v14302_v30 = vpack.c.bf16 %v8192_v13, %v8187_v50  ;;  %v8183_v17 = vmax.f32 %v8173_v37, 0.0  ;;  %v8139_v31 = vpop.f32.mrb[110].mxu0  ;;  %v8188_v39 = vmul.f32 %v8178_v25, %v13273_v8 }
 0x902   : > { %v8184_v33 = vmax.f32 %v8174_v28, 0.0  ;;  %v8170_v34 = vadd.f32 %v8159_v55, %v8147_v11  ;;  %v8152_v35 = vadd.f32 %v8139_v31, %v7982_v56  ;;  %v12241_v36 = vpop.f32.mrb[111].mxu0  ;;  %8243 = vrot.lane.b32.xlu1 %v14300_v12, %s12928_s12  ;;  %v8189_v42 = vmul.f32 %v8179_v27, %v13275_v9  ;;  %v12893_v11 = vld [vmem:[%s14856_s1 + $0x178] sm:$0xff]  }
 0x903   : > { %v8193_v40 = vmul.f32 %v8183_v17, %v13273_v8  ;;  %8245 = vrot.lane.b32.xlu0 %v14302_v30, %s12928_s12 }
 0x904   : > { %v8194_v44 = vmul.f32 %v8184_v33, %v13275_v9  ;;  %v8180_v48 = vmax.f32 %v8170_v34, 0.0  ;;  %v8175_v49 = vadd.f32 %v8164_v61, %v8152_v35 }
 0x905   : > { %v14312_v18 = vpack.c.bf16 %v8193_v40, %v8188_v39 }
 0x906   : > { %v14314_v51 = vpack.c.bf16 %v8194_v44, %v8189_v42  ;;  %v8185_v23 = vmax.f32 %v8175_v49, 0.0  ;;  %8241 = vrot.lane.b32.xlu1 %v12929_v43, %s12928_s12  ;;  %v8190_v52 = vmul.f32 %v8180_v48, %v13296_v38 }
 0x907   : > { %8247 = vrot.lane.b32.xlu0 %v14312_v18, %s12928_s12 }
 0x908   : > { %v8195_v19 = vmul.f32 %v8185_v23, %v13296_v38 }
 0x90a   : > { %v14322_v41 = vpack.c.bf16 %v8195_v19, %v8190_v52  ;;  %8249 = vrot.lane.b32.xlu1 %v14314_v51, %s12928_s12  ;;  %v12894_v52 = vld [vmem:[%s14856_s1 + $0x180] sm:$0xff]  }
 0x90c   : > { %8251 = vrot.lane.b32.xlu0 %v14322_v41, %s12928_s12  ;;  %s14912_s12 = smov 25  }
 0x90e   : > { %8400 = vrot.lane.b32.xlu1 %v14300_v12, %s12930_s13 }
 0x910   : > { %8402 = vrot.lane.b32.xlu0 %v14302_v30, %s12930_s13 }
 0x912   : > { %8398 = vrot.lane.b32.xlu1 %v12929_v43, %s12930_s13 }
 0x914   : > { %8404 = vrot.lane.b32.xlu0 %v14312_v18, %s12930_s13 }
 0x916   : > { %8406 = vrot.lane.b32.xlu1 %v14314_v51, %s12930_s13 }
 0x918   : > { %8560 = vrot.lane.b32.xlu0 %v14300_v12, %s12931_s14 }
 0x91a   : > { %8562 = vrot.lane.b32.xlu1 %v14302_v30, %s12931_s14 }
 0x91c   : > { %8558 = vrot.lane.b32.xlu0 %v12929_v43, %s12931_s14 }
 0x91e   : > { %8408 = vrot.lane.b32.xlu1 %v14322_v41, %s12930_s13  ;;  %s14913_s13 = smov 23  }
 0x920   : > { %8564 = vrot.lane.b32.xlu0 %v14312_v18, %s12931_s14 }
 0x922   : > { %8566 = vrot.lane.b32.xlu1 %v14314_v51, %s12931_s14 }
 0x924   : > { %8568 = vrot.lane.b32.xlu0 %v14322_v41, %s12931_s14  ;;  %s14915_s14 = smov 127  }
 0x926   : > { %8730 = vrot.lane.b32.xlu1 %v14300_v12, %s12932_s17 }
 0x928   : > { %8732 = vrot.lane.b32.xlu0 %v14302_v30, %s12932_s17 }
 0x92a   : > { %8728 = vrot.lane.b32.xlu1 %v12929_v43, %s12932_s17 }
 0x92c   : > { %8734 = vrot.lane.b32.xlu0 %v14312_v18, %s12932_s17 }
 0x92e   : > { %8736 = vrot.lane.b32.xlu1 %v14314_v51, %s12932_s17 }
 0x930   : > { %8738 = vrot.lane.b32.xlu0 %v14322_v41, %s12932_s17  ;;  %s14916_s17 = smov 105  }
 0x932   : > { %9072 = vrot.lane.b32.xlu1 %v14302_v30, %s12933_s18 }
 0x934   : > { %9074 = vrot.lane.b32.xlu0 %v14312_v18, %s12933_s18 }
 0x936   : > { %9070 = vrot.lane.b32.xlu1 %v14300_v12, %s12933_s18 }
 0x938   : > { %9076 = vrot.lane.b32.xlu0 %v14314_v51, %s12933_s18 }
 0x93a   : > { %9078 = vrot.lane.b32.xlu1 %v14322_v41, %s12933_s18 }
 0x93c   : > { %9242 = vrot.lane.b32.xlu0 %v14302_v30, %s12934_s19 }
 0x93e   : > { %9244 = vrot.lane.b32.xlu1 %v14312_v18, %s12934_s19 }
 0x940   : > { %9240 = vrot.lane.b32.xlu0 %v14300_v12, %s12934_s19 }
 0x942   : > { %9080 = vrot.lane.b32.xlu1 %v12929_v43, %s12933_s18  ;;  %s14917_s18 = smov 104  }
 0x944   : > { %9246 = vrot.lane.b32.xlu0 %v14314_v51, %s12934_s19 }
 0x946   : > { %9248 = vrot.lane.b32.xlu1 %v14322_v41, %s12934_s19 }
 0x948   : > { %9250 = vrot.lane.b32.xlu0 %v12929_v43, %s12934_s19  ;;  %s14918_s19 = smov 103  }
 0x94a   : > { %9412 = vrot.lane.b32.xlu1 %v14302_v30, %s12935_s29 }
 0x94c   : > { %9414 = vrot.lane.b32.xlu0 %v14312_v18, %s12935_s29 }
 0x94e   : > { %9410 = vrot.lane.b32.xlu1 %v14300_v12, %s12935_s29 }
 0x950   : > { %9416 = vrot.lane.b32.xlu0 %v14314_v51, %s12935_s29 }
 0x952   : > { %9418 = vrot.lane.b32.xlu1 %v14322_v41, %s12935_s29 }
 0x954   : > { %9582 = vrot.lane.b32.xlu0 %v14302_v30, %s12936_s30 }
 0x956   : > { %9584 = vrot.lane.b32.xlu1 %v14312_v18, %s12936_s30 }
 0x958   : > { %9580 = vrot.lane.b32.xlu0 %v14300_v12, %s12936_s30 }
 0x95a   : > { %9420 = vrot.lane.b32.xlu1 %v12929_v43, %s12935_s29 }
 0x95c   : > { %9586 = vrot.lane.b32.xlu0 %v14314_v51, %s12936_s30 }
 0x95e   : > { %9588 = vrot.lane.b32.xlu1 %v14322_v41, %s12936_s30 }
 0x960   : > { %9590 = vrot.lane.b32.xlu0 %v12929_v43, %s12936_s30 }
 0x962   : > { %9747 = vperm.xlu1 %12845, %v11786_v54  }
 0x964   : > { %9752 = vperm.xlu0 %12844, %v11787_v14  }
 0x974   : > { %v8244_v55 = vpop.permute.xlu1 %8243 }
 0x975   : > { %v8246_v47 = vpop.permute.xlu0 %8245 }
 0x976   : > { %v8254_v56 = vsel %vm1873_vm10, %v8244_v55, %v8246_v47 }
 0x977   : > { %8266 = vmatprep.subr.bf16.mxu1 %v8254_v56 }
 0x978   : > { %v8242_v57 = vpop.permute.xlu1 %8241 }
 0x979   : > { %v8253_v45 = vsel %vm1873_vm10, %v8242_v57, %v8244_v55  ;;  %v8248_v59 = vpop.permute.xlu0 %8247 }
 0x97a   : > { %8267 = vmatpush1.bf16.msra.mxu1 %v8253_v45  ;;  %v8255_v1 = vsel %vm1873_vm10, %v8246_v47, %v8248_v59 }
 0x97b   : > { %12242 = vmatprep.subr.bf16.mxu1 %v12926_v32 }
 0x97c   : > { %v8250_v61 = vpop.permute.xlu1 %8249 }
 0x97d   : > { %11737 = vmatmul.mubr.msk.bf16.vlgmr.msra.gmra.mrb[108].mxu1 %vm287_vm1, %v12891_v60  ;;  %v8256_v63 = vsel %vm1873_vm10, %v8248_v59, %v8250_v61 }
 0x97e   : > { %v8252_v2 = vpop.permute.xlu0 %8251  ;;  %8309 = vmatprep.subr.bf16.mxu0 %v8256_v63  ;;  %12244 = vmatprep.mubr.msk.bf16.mxu1 %vm12927_vm3, %v12926_v32 }
 0x97f   : > { %v8257_v3 = vsel %vm1873_vm10, %v8250_v61, %v8252_v2  ;;  %8310 = vmatpush1.bf16.msra.mxu0 %v8255_v1  ;;  %vm14895_vm10 = vmmov %vm14892_vm7  ;;  %v12896_v2 = vld [vmem:[%s14856_s1 + $0x190] sm:$0xff]  }
 0x980   : > { %12243 = vmatpush3.bf16.msra.mxu1 %v8257_v3  ;;  %v8401_v5 = vpop.permute.xlu1 %8400 }
 0x982   : > { %v8403_v6 = vpop.permute.xlu0 %8402  ;;  %11738 = vmatmul.mubr.msk.bf16.vlgmr.msra.gmra.mrb[112].mxu0 %vm287_vm1, %v12891_v60 }
 0x983   : > { %v8411_v7 = vsel %vm2031_vm11, %v8401_v5, %v8403_v6  ;;  %8498 = vmatprep.mubr.bf16.mxu0 %v12917_v0 }
 0x984   : > { %8423 = vmatprep.subr.bf16.mxu1 %v8411_v7  ;;  %v8399_v10 = vpop.permute.xlu1 %8398 }
 0x985   : > { %v8410_v15 = vsel %vm2031_vm11, %v8399_v10, %v8401_v5  ;;  %12245 = vmatmul.mubr.msk.bf16.vlgmr.msra.gmra.mrb[112].mxu1 %vm287_vm1, %v12891_v60 }
 0x986   : > { %v8405_v16 = vpop.permute.xlu0 %8404  ;;  %8424 = vmatpush1.bf16.msra.mxu1 %v8410_v15  ;;  %8455 = vmatprep.mubr.bf16.mxu1 %v12917_v0 }
 0x987   : > { %v8412_v22 = vsel %vm2031_vm11, %v8403_v6, %v8405_v16 }
 0x988   : > { %v8407_v21 = vpop.permute.xlu1 %8406 }
 0x989   : > { %v8413_v4 = vsel %vm2031_vm11, %v8405_v16, %v8407_v21 }
 0x98a   : > { %v8561_v53 = vpop.permute.xlu0 %8560  ;;  %8466 = vmatprep.subr.bf16.mxu0 %v8413_v4 }
 0x98b   : > { %8467 = vmatpush1.bf16.msra.mxu0 %v8412_v22 }
 0x98c   : > { %v8563_v24 = vpop.permute.xlu1 %8562  ;;  %12248 = vmatprep.subr.bf16.mxu0 %v12926_v32 }
 0x98d   : > { %11741 = vmatmul.mubr.msk.bf16.vlgmr.msra.gmra.mrb[108].mxu1 %vm287_vm1, %v12892_v46  ;;  %v8571_v50 = vsel %vm2192_vm12, %v8561_v53, %v8563_v24 }
 0x98e   : > { %v8559_v13 = vpop.permute.xlu0 %8558  ;;  %11742 = vmatmul.mubr.msk.bf16.vlgmr.msra.gmra.mrb[112].mxu0 %vm287_vm1, %v12892_v46  ;;  %8583 = vmatprep.subr.bf16.mxu1 %v8571_v50 }
 0x98f   : > { %v8570_v25 = vsel %vm2192_vm12, %v8559_v13, %v8561_v53  ;;  %12250 = vmatprep.mubr.msk.bf16.mxu0 %vm12927_vm3, %v12926_v32  ;;  %8615 = vmatprep.mubr.bf16.mxu1 %v12917_v0 }
 0x990   : > { %8584 = vmatpush1.bf16.msra.mxu1 %v8570_v25  ;;  %v8409_v37 = vpop.permute.xlu1 %8408 }
 0x991   : > { %v8414_v26 = vsel %vm2031_vm11, %v8407_v21, %v8409_v37  ;;  %12254 = vmatprep.subr.bf16.mxu1 %v12926_v32  ;;  %vm14896_vm11 = vcmask 670720   ;;  %v12897_v21 = vld [vmem:[%s14856_s1 + $0x198] sm:$0xff]  }
 0x992   : > { %v8565_v20 = vpop.permute.xlu0 %8564  ;;  %12249 = vmatpush3.bf16.msra.mxu0 %v8414_v26  ;;  %vm14899_vm14 = vmmov %vm14896_vm11 }
 0x993   : > { %v8572_v29 = vsel %vm2192_vm12, %v8563_v24, %v8565_v20  ;;  %vm14900_vm15 = vmmov %vm14896_vm11 }
 0x994   : > { %v8567_v27 = vpop.permute.xlu1 %8566 }
 0x995   : > { %v8573_v28 = vsel %vm2192_vm12, %v8565_v20, %v8567_v27 }
 0x996   : > { %v8569_v17 = vpop.permute.xlu0 %8568  ;;  %12251 = vmatmul.mubr.msk.bf16.vlgmr.msra.gmra.mrb[116].mxu0 %vm287_vm1, %v12892_v46  ;;  %8626 = vmatprep.subr.bf16.mxu0 %v8573_v28  ;;  %v12898_v28 = vld [vmem:[%s14856_s1 + $0x1a0] sm:$0xff]  }
 0x997   : > { %v8574_v31 = vsel %vm2192_vm12, %v8567_v27, %v8569_v17  ;;  %8627 = vmatpush1.bf16.msra.mxu0 %v8572_v29  ;;  %8658 = vmatprep.mubr.bf16.mxu0 %v12917_v0  ;;  %vm14897_vm12 = vmmov %vm14896_vm11 }
 0x998   : > { %v8731_v33 = vpop.permute.xlu1 %8730 }
 0x999   : > { %11747 = vmatmul.mubr.msk.bf16.vlgmr.msra.gmra.mrb[108].mxu1 %vm287_vm1, %v12893_v11 }
 0x99a   : > { %12255 = vmatpush3.bf16.msra.mxu1 %v8574_v31  ;;  %v8733_v34 = vpop.permute.xlu0 %8732  ;;  %12256 = vmatprep.mubr.msk.bf16.mxu1 %vm12927_vm3, %v12926_v32 }
 0x99b   : > { %v8741_v35 = vsel %vm14887_vm0, %v8731_v33, %v8733_v34  ;;  %vm14901_vm0 = vcmask 654336  }
 0x99c   : > { %8753 = vmatprep.subr.bf16.mxu1 %v8741_v35  ;;  %v8729_v36 = vpop.permute.xlu1 %8728 }
 0x99d   : > { %v8740_v42 = vsel %vm14888_vm2, %v8729_v36, %v8731_v33  ;;  %vm14902_vm2 = vmmov %vm14896_vm11 }
 0x99e   : > { %v8735_v39 = vpop.permute.xlu0 %8734  ;;  %11748 = vmatmul.mubr.msk.bf16.vlgmr.msra.gmra.mrb[112].mxu0 %vm287_vm1, %v12893_v11 }
 0x99f   : > { %8828 = vmatprep.mubr.bf16.mxu0 %v12917_v0  ;;  %v8742_v48 = vsel %vm14890_vm5, %v8733_v34, %v8735_v39  ;;  %vm14904_vm5 = vmmov %vm14901_vm0  ;;  %v12899_v34 = vld [vmem:[%s14856_s1 + $0x1a8] sm:$0xff]  }
 0x9a0   : > { %v8737_v40 = vpop.permute.xlu1 %8736 }
 0x9a1   : > { %12257 = vmatmul.mubr.msk.bf16.vlgmr.msra.gmra.mrb[116].mxu1 %vm287_vm1, %v12893_v11  ;;  %v8743_v44 = vsel %vm14889_vm4, %v8735_v39, %v8737_v40  ;;  %vm14903_vm4 = vmmov %vm14901_vm0 }
 0x9a2   : > { %8754 = vmatpush1.bf16.msra.mxu1 %v8740_v42  ;;  %v8739_v49 = vpop.permute.xlu0 %8738  ;;  %8796 = vmatprep.subr.bf16.mxu0 %v8743_v44 }
 0x9a3   : > { %8901 = vmatprep.subr.bf16.mxu1 %v14302_v30  ;;  %8797 = vmatpush1.bf16.msra.mxu0 %v8742_v48  ;;  %v8744_v14 = vsel %vm14891_vm6, %v8737_v40, %v8739_v49  ;;  %vm14905_vm6 = vmmov %vm14901_vm0 }
 0x9a4   : > { %v9073_v23 = vpop.permute.xlu1 %9072  ;;  %8785 = vmatprep.mubr.bf16.mxu1 %v12917_v0  ;;  %12260 = vmatprep.subr.bf16.mxu0 %v12926_v32 }
 0x9a6   : > { %v9075_v19 = vpop.permute.xlu0 %9074 }
 0x9a7   : > { %v9083_v59 = vsel %vm14893_vm8, %v9073_v23, %v9075_v19 }
 0x9a8   : > { %v9071_v54 = vpop.permute.xlu1 %9070 }
 0x9a9   : > { %11753 = vmatmul.mubr.msk.bf16.vlgmr.msra.gmra.mrb[108].mxu1 %vm287_vm1, %v12894_v52  ;;  %v9082_v63 = vsel %vm14895_vm10, %v9071_v54, %v9073_v23 }
 0x9aa   : > { %8902 = vmatpush1.bf16.msra.mxu1 %v14300_v12  ;;  %v9077_v55 = vpop.permute.xlu0 %9076  ;;  %11754 = vmatmul.mubr.msk.bf16.vlgmr.msra.gmra.mrb[112].mxu0 %vm287_vm1, %v12894_v52  ;;  %v12895_v12 = vld [vmem:[%s14856_s1 + $0x188] sm:$0xff]  }
 0x9ab   : > { %12261 = vmatpush3.bf16.msra.mxu0 %v8744_v14  ;;  %12262 = vmatprep.mubr.msk.bf16.mxu0 %vm12927_vm3, %v12926_v32  ;;  %v9084_v60 = vsel %vm14894_vm9, %v9075_v19, %v9077_v55  ;;  %vm14908_vm9 = vmmov %vm14901_vm0 }
 0x9ac   : > { %8944 = vmatprep.subr.bf16.mxu0 %v14314_v51  ;;  %v9079_v30 = vpop.permute.xlu1 %9078  ;;  %8933 = vmatprep.mubr.bf16.mxu1 %v12917_v0 }
 0x9ad   : > { %12266 = vmatprep.subr.bf16.mxu1 %v12926_v32  ;;  %v9085_v57 = vsel %vm14892_vm7, %v9077_v55, %v9079_v30  ;;  %vm14906_vm7 = vcmask 637952  }
 0x9ae   : > { %v9243_v47 = vpop.permute.xlu0 %9242  ;;  %vm14907_vm8 = vmmov %vm14906_vm7 }
 0x9af   : > { %vm14909_vm10 = vmmov %vm14906_vm7 }
 0x9b0   : > { %v9245_v56 = vpop.permute.xlu1 %9244 }
 0x9b2   : > { %12263 = vmatmul.mubr.msk.bf16.vlgmr.msra.gmra.mrb[120].mxu0 %vm287_vm1, %v12894_v52  ;;  %v9241_v45 = vpop.permute.xlu0 %9240 }
 0x9b3   : > { %8945 = vmatpush1.bf16.msra.mxu0 %v14312_v18  ;;  %8976 = vmatprep.mubr.bf16.mxu0 %v12917_v0  ;;  %v9252_v5 = vsel %vm14897_vm12, %v9241_v45, %v9243_v47  ;;  %vm14911_vm12 = vmmov %vm14906_vm7 }
 0x9b4   : > { %9138 = vmatprep.subr.bf16.mxu0 %v9085_v57  ;;  %v9081_v51 = vpop.permute.xlu1 %9080 }
 0x9b5   : > { %11759 = vmatmul.mubr.msk.bf16.vlgmr.msra.gmra.mrb[108].mxu1 %vm287_vm1, %v12895_v12  ;;  %v9086_v6 = vsel %vm14898_vm13, %v9079_v30, %v9081_v51  ;;  %vm14919_vm13 = vcmask 195584  }
 0x9b6   : > { %12267 = vmatpush3.bf16.msra.mxu1 %v14322_v41  ;;  %12268 = vmatprep.mubr.msk.bf16.mxu1 %vm12927_vm3, %v12926_v32  ;;  %v9247_v61 = vpop.permute.xlu0 %9246  ;;  %v9253_v41 = vsel %vm14896_vm11, %v9243_v47, %v9245_v56  ;;  %vm14910_vm11 = vmmov %vm14906_vm7 }
 0x9b7   : > { %9095 = vmatprep.subr.bf16.mxu1 %v9083_v59  ;;  %v9254_v4 = vsel %vm14900_vm15, %v9245_v56, %v9247_v61  ;;  %vm14921_vm15 = vmmov %vm14919_vm13 }
 0x9b8   : > { %v9249_v18 = vpop.permute.xlu1 %9248 }
 0x9b9   : > { %v9255_v10 = vsel %vm14899_vm14, %v9247_v61, %v9249_v18  ;;  %vm14920_vm14 = vmmov %vm14919_vm13 }
 0x9ba   : > { %11760 = vmatmul.mubr.msk.bf16.vlgmr.msra.gmra.mrb[112].mxu0 %vm287_vm1, %v12895_v12  ;;  %v9251_v3 = vpop.permute.xlu0 %9250 }
 0x9bb   : > { %9139 = vmatpush1.bf16.msra.mxu0 %v9084_v60  ;;  %9170 = vmatprep.mubr.bf16.mxu0 %v12917_v0  ;;  %v9256_v53 = vsel %vm14902_vm2, %v9249_v18, %v9251_v3 }
 0x9bc   : > { %12272 = vmatprep.subr.bf16.mxu0 %v12926_v32  ;;  %v9413_v1 = vpop.permute.xlu1 %9412 }
 0x9bd   : > { %12269 = vmatmul.mubr.msk.bf16.vlgmr.msra.gmra.mrb[120].mxu1 %vm287_vm1, %v12895_v12 }
 0x9be   : > { %9096 = vmatpush1.bf16.msra.mxu1 %v9082_v63  ;;  %9127 = vmatprep.mubr.bf16.mxu1 %v12917_v0  ;;  %v9415_v15 = vpop.permute.xlu0 %9414 }
 0x9bf   : > { %9265 = vmatprep.subr.bf16.mxu1 %v9253_v41  ;;  %v9423_v24 = vsel %vm14903_vm4, %v9413_v1, %v9415_v15  ;;  %vm14924_vm4 = vcmask 203776  }
 0x9c0   : > { %v9411_v7 = vpop.permute.xlu1 %9410 }
 0x9c1   : > { %v9422_v37 = vsel %vm14905_vm6, %v9411_v7, %v9413_v1  ;;  %vm14926_vm6 = vmmov %vm14924_vm4 }
 0x9c2   : > { %v9417_v46 = vpop.permute.xlu0 %9416 }
 0x9c3   : > { %v9424_v13 = vsel %vm14904_vm5, %v9415_v15, %v9417_v46  ;;  %vm14925_vm5 = vmmov %vm14924_vm4 }
 0x9c4   : > { %v9419_v16 = vpop.permute.xlu1 %9418 }
 0x9c5   : > { %11765 = vmatmul.mubr.msk.bf16.vlgmr.msra.gmra.mrb[108].mxu1 %vm287_vm1, %v12896_v2  ;;  %v9425_v22 = vsel %vm14901_vm0, %v9417_v46, %v9419_v16  ;;  %vm14922_vm0 = vmmov %vm14919_vm13 }
 0x9c6   : > { %9266 = vmatpush1.bf16.msra.mxu1 %v9252_v5  ;;  %11766 = vmatmul.mubr.msk.bf16.vlgmr.msra.gmra.mrb[112].mxu0 %vm287_vm1, %v12896_v2  ;;  %v9583_v25 = vpop.permute.xlu0 %9582  ;;  %vm14923_vm2 = vmmov %vm14922_vm0 }
 0x9c7   : > { %12273 = vmatpush3.bf16.msra.mxu0 %v9086_v6  ;;  %12274 = vmatprep.mubr.msk.bf16.mxu0 %vm12927_vm3, %v12926_v32 }
 0x9c8   : > { %9308 = vmatprep.subr.bf16.mxu0 %v9255_v10  ;;  %9297 = vmatprep.mubr.bf16.mxu1 %v12917_v0  ;;  %v9585_v50 = vpop.permute.xlu1 %9584 }
 0x9c9   : > { %12278 = vmatprep.subr.bf16.mxu1 %v12926_v32  ;;  %v9593_v20 = vsel %vm14906_vm7, %v9583_v25, %v9585_v50  ;;  %vm14927_vm7 = vmmov %vm14924_vm4 }
 0x9ca   : > { %v9581_v27 = vpop.permute.xlu0 %9580 }
 0x9cb   : > { %v9592_v29 = vsel %vm14907_vm8, %v9581_v27, %v9583_v25  ;;  %vm14928_vm8 = vcmask 187392  }
 0x9cc   : > { %v9421_v26 = vpop.permute.xlu1 %9420 }
 0x9cd   : > { %v9426_v17 = vsel %vm14908_vm9, %v9419_v16, %v9421_v26  ;;  %vm14929_vm9 = vmmov %vm14928_vm8 }
 0x9ce   : > { %12275 = vmatmul.mubr.msk.bf16.vlgmr.msra.gmra.mrb[124].mxu0 %vm287_vm1, %v12896_v2  ;;  %v9587_v31 = vpop.permute.xlu0 %9586 }
 0x9cf   : > { %9309 = vmatpush1.bf16.msra.mxu0 %v9254_v4  ;;  %9340 = vmatprep.mubr.bf16.mxu0 %v12917_v0  ;;  %v9594_v35 = vsel %vm14910_vm11, %v9585_v50, %v9587_v31  ;;  %vm14931_vm11 = vmmov %vm14928_vm8 }
 0x9d0   : > { %9478 = vmatprep.subr.bf16.mxu0 %v9425_v22  ;;  %v9589_v11 = vpop.permute.xlu1 %9588 }
 0x9d1   : > { %11771 = vmatmul.mubr.msk.bf16.vlgmr.msra.gmra.mrb[108].mxu1 %vm287_vm1, %v12897_v21  ;;  %v9595_v33 = vsel %vm14909_vm10, %v9587_v31, %v9589_v11  ;;  %vm14930_vm10 = vmmov %vm14924_vm4 }
 0x9d2   : > { %12279 = vmatpush3.bf16.msra.mxu1 %v9256_v53  ;;  %12280 = vmatprep.mubr.msk.bf16.mxu1 %vm12927_vm3, %v12926_v32  ;;  %v9591_v36 = vpop.permute.xlu0 %9590 }
 0x9d3   : > { %9435 = vmatprep.subr.bf16.mxu1 %v9423_v24  ;;  %v9596_v39 = vsel %vm14911_vm12, %v9589_v11, %v9591_v36  ;;  %vm14932_vm12 = vmmov %vm14928_vm8 }
 0x9d6   : > { %11772 = vmatmul.mubr.msk.bf16.vlgmr.msra.gmra.mrb[112].mxu0 %vm287_vm1, %v12897_v21 }
 0x9d7   : > { %9479 = vmatpush1.bf16.msra.mxu0 %v9424_v13  ;;  %9510 = vmatprep.mubr.bf16.mxu0 %v12917_v0 }
 0x9d8   : > { %12284 = vmatprep.subr.bf16.mxu0 %v12926_v32 }
 0x9d9   : > { %12281 = vmatmul.mubr.msk.bf16.vlgmr.msra.gmra.mrb[124].mxu1 %vm287_vm1, %v12897_v21 }
 0x9da   : > { %9436 = vmatpush1.bf16.msra.mxu1 %v9422_v37  ;;  %9467 = vmatprep.mubr.bf16.mxu1 %v12917_v0 }
 0x9db   : > { %9605 = vmatprep.subr.bf16.mxu1 %v9593_v20 }
 0x9e1   : > { %11777 = vmatmul.mubr.msk.bf16.vlgmr.msra.gmra.mrb[108].mxu1 %vm287_vm1, %v12898_v28  ;;  %v9748_v26 = vpop.permute.xlu1 %9747 }
 0x9e2   : > { %9606 = vmatpush1.bf16.msra.mxu1 %v9592_v29  ;;  %11778 = vmatmul.mubr.msk.bf16.vlgmr.msra.gmra.mrb[112].mxu0 %vm287_vm1, %v12898_v28 }
 0x9e3   : > { %12285 = vmatpush3.bf16.msra.mxu0 %v9426_v17  ;;  %12286 = vmatprep.mubr.msk.bf16.mxu0 %vm12927_vm3, %v12926_v32  ;;  %v9753_v31 = vpop.permute.xlu0 %9752 }
 0x9e4   : > { %9648 = vmatprep.subr.bf16.mxu0 %v9595_v33  ;;  %9637 = vmatprep.mubr.bf16.mxu1 %v12917_v0 }
 0x9e5   : > { %12290 = vmatprep.subr.bf16.mxu1 %v12926_v32 }
 0x9ea   : > { %12287 = vmatmul.mubr.msk.bf16.vlgmr.msra.gmra.mrb[128].mxu0 %vm287_vm1, %v12898_v28 }
 0x9eb   : > { %9649 = vmatpush1.bf16.msra.mxu0 %v9594_v35  ;;  %9680 = vmatprep.mubr.bf16.mxu0 %v12917_v0 }
 0x9ed   : > { %11783 = vmatmul.mubr.msk.bf16.vlgmr.msra.gmra.mrb[108].mxu1 %vm287_vm1, %v12899_v34 }
 0x9ee   : > { %12291 = vmatpush3.bf16.msra.mxu1 %v9596_v39  ;;  %12292 = vmatprep.mubr.msk.bf16.mxu1 %vm12927_vm3, %v12926_v32 }
 0x9f2   : > { %11784 = vmatmul.mubr.msk.bf16.vlgmr.msra.gmra.mrb[112].mxu0 %vm287_vm1, %v12899_v34 }
 0x9f3   : > { %9887 = vmatprep.mubr.bf16.mxu0 %v12917_v0 }
 0x9f5   : > { %12293 = vmatmul.mubr.msk.bf16.vlgmr.msra.gmra.mrb[128].mxu1 %vm287_vm1, %v12899_v34 }
 0x9f6   : > { %9930 = vmatprep.mubr.bf16.mxu1 %v12917_v0 }
 0xa58   : > { %v8386_v40 = vpop.f32.mrb[112].mxu1 }
 0xa59   : > { %v12246_v42 = vpop.f32.mrb[113].mxu1 }
 0xa5a   : > { %v8389_v44 = vpop.f32.mrb[114].mxu1 }
 0xa5b   : > { %v12247_v48 = vpop.f32.mrb[115].mxu1 }
 0xa69   : > { %v8543_v49 = vpop.f32.mrb[116].mxu0 }
 0xa6a   : > { %v8544_v23 = vadd.f32 %v8543_v49, %v8386_v40  ;;  %v12252_v52 = vpop.f32.mrb[117].mxu0 }
 0xa6b   : > { %v8546_v19 = vpop.f32.mrb[118].mxu0 }
 0xa6c   : > { %v8547_v54 = vadd.f32 %v8546_v19, %v8389_v44  ;;  %v12253_v14 = vpop.f32.mrb[119].mxu0 }
 0xa74   : > { %v8703_v55 = vpop.f32.mrb[116].mxu1 }
 0xa75   : > { %v8714_v30 = vadd.f32 %v8703_v55, %v8544_v23  ;;  %v12258_v47 = vpop.f32.mrb[117].mxu1 }
 0xa76   : > { %v8706_v56 = vpop.f32.mrb[118].mxu1 }
 0xa77   : > { %v8719_v12 = vadd.f32 %v8706_v56, %v8547_v54  ;;  %v12259_v57 = vpop.f32.mrb[119].mxu1 }
 0xa85   : > { %v8873_v51 = vpop.f32.mrb[120].mxu0 }
 0xa86   : > { %v8884_v45 = vadd.f32 %v8873_v51, %v8714_v30  ;;  %v12264_v59 = vpop.f32.mrb[121].mxu0 }
 0xa87   : > { %v8876_v60 = vpop.f32.mrb[122].mxu0 }
 0xa88   : > { %v8889_v18 = vadd.f32 %v8876_v60, %v8719_v12  ;;  %v12265_v61 = vpop.f32.mrb[123].mxu0 }
 0xa90   : > { %v9021_v63 = vpop.f32.mrb[120].mxu1 }
 0xa91   : > { %v9032_v41 = vadd.f32 %v9021_v63, %v8884_v45  ;;  %v12270_v1 = vpop.f32.mrb[121].mxu1 }
 0xa92   : > { %v9024_v2 = vpop.f32.mrb[122].mxu1 }
 0xa93   : > { %v9037_v3 = vadd.f32 %v9024_v2, %v8889_v18  ;;  %v12271_v5 = vpop.f32.mrb[123].mxu1 }
 0xaa1   : > { %v9215_v6 = vpop.f32.mrb[124].mxu0 }
 0xaa2   : > { %v9226_v7 = vadd.f32 %v9215_v6, %v9032_v41  ;;  %v12276_v10 = vpop.f32.mrb[125].mxu0 }
 0xaa3   : > { %v9218_v15 = vpop.f32.mrb[126].mxu0 }
 0xaa4   : > { %v9231_v16 = vadd.f32 %v9218_v15, %v9037_v3  ;;  %v12277_v21 = vpop.f32.mrb[127].mxu0 }
 0xaac   : > { %v9385_v4 = vpop.f32.mrb[124].mxu1 }
 0xaad   : > { %v9396_v46 = vadd.f32 %v9385_v4, %v9226_v7  ;;  %v12282_v22 = vpop.f32.mrb[125].mxu1 }
 0xaae   : > { %v9388_v53 = vpop.f32.mrb[126].mxu1 }
 0xaaf   : > { %v9401_v24 = vadd.f32 %v9388_v53, %v9231_v16  ;;  %v12283_v50 = vpop.f32.mrb[127].mxu1 }
 0xabd   : > { %v9555_v13 = vpop.f32.mrb[128].mxu0 }
 0xabe   : > { %v9566_v25 = vadd.f32 %v9555_v13, %v9396_v46  ;;  %v12288_v37 = vpop.f32.mrb[129].mxu0 }
 0xabf   : > { %v9558_v20 = vpop.f32.mrb[130].mxu0 }
 0xac0   : > { %v9571_v27 = vadd.f32 %v9558_v20, %v9401_v24  ;;  %v12289_v28 = vpop.f32.mrb[131].mxu0  ;;  %v9639_v11 = vpop.f32.mrb[108].mxu1  ;;  %v12900_v20 = vld [vmem:[%s14856_s1 + $0x1b8] sm:$0xff]  }
 0xac1   : > { %v9755_v29 = vadd.f32 %v9748_v26, %v9639_v11  ;;  %v9641_v17 = vpop.f32.mrb[109].mxu1 }
 0xac2   : > { %v9756_v33 = vadd.f32 %v9748_v26, %v9641_v17  ;;  %v9643_v34 = vpop.f32.mrb[110].mxu1 }
 0xac3   : > { %v9765_v35 = vmax.f32 %v9755_v29, 0.0  ;;  %v9760_v36 = vadd.f32 %v9753_v31, %v9643_v34  ;;  %v9645_v39 = vpop.f32.mrb[111].mxu1 }
 0xac4   : > { %v9766_v40 = vmax.f32 %v9756_v33, 0.0  ;;  %v9761_v42 = vadd.f32 %v9753_v31, %v9645_v39 }
 0xac5   : > { %v9770_v44 = vmax.f32 %v9760_v36, 0.0  ;;  %v9682_v48 = vpop.f32.mrb[112].mxu0  ;;  %v9775_v19 = vmul.f32 %v9765_v35, %v13269_v58 }
 0xac6   : > { %v9771_v49 = vmax.f32 %v9761_v42, 0.0  ;;  %v9757_v23 = vadd.f32 %v9748_v26, %v9682_v48  ;;  %v9684_v52 = vpop.f32.mrb[113].mxu0  ;;  %v9776_v30 = vmul.f32 %v9766_v40, %v13271_v62  ;;  %v12901_v42 = vld [vmem:[%s14856_s1 + $0x1b0] sm:$0xff]  }
 0xac7   : > { %v9780_v54 = vmul.f32 %v9770_v44, %v13269_v58  ;;  %v9758_v14 = vadd.f32 %v9748_v26, %v9684_v52  ;;  %v9686_v55 = vpop.f32.mrb[114].mxu0 }
 0xac8   : > { %v9781_v47 = vmul.f32 %v9771_v49, %v13271_v62  ;;  %v9767_v56 = vmax.f32 %v9757_v23, 0.0  ;;  %v9762_v12 = vadd.f32 %v9753_v31, %v9686_v55  ;;  %v9688_v57 = vpop.f32.mrb[115].mxu0  ;;  %v9725_v51 = vpop.f32.mrb[128].mxu1 }
 0xac9   : > { %v14566_v45 = vpack.c.bf16 %v9780_v54, %v9775_v19  ;;  %v9768_v59 = vmax.f32 %v9758_v14, 0.0  ;;  %v9763_v60 = vadd.f32 %v9753_v31, %v9688_v57  ;;  %v9736_v18 = vadd.f32 %v9725_v51, %v9566_v25  ;;  %v12294_v61 = vpop.f32.mrb[129].mxu1 }
 0xaca   : > { %v14568_v63 = vpack.c.bf16 %v9781_v47, %v9776_v30  ;;  %v9772_v41 = vmax.f32 %v9762_v12, 0.0  ;;  %v9728_v58 = vpop.f32.mrb[130].mxu1  ;;  %v9777_v62 = vmul.f32 %v9767_v56, %v13273_v8  ;;  %v12902_v56 = vld [vmem:[%s14856_s1 + $0x1c0] sm:$0xff]  }
 0xacb   : > { %v9773_v1 = vmax.f32 %v9763_v60, 0.0  ;;  %v9759_v2 = vadd.f32 %v9748_v26, %v9736_v18  ;;  %v9741_v3 = vadd.f32 %v9728_v58, %v9571_v27  ;;  %v12295_v5 = vpop.f32.mrb[131].mxu1  ;;  %9832 = vrot.lane.b32.xlu1 %v14566_v45, %s12918_s21  ;;  %v9778_v7 = vmul.f32 %v9768_v59, %v13275_v9 }
 0xacc   : > { %v9782_v6 = vmul.f32 %v9772_v41, %v13273_v8  ;;  %9834 = vrot.lane.b32.xlu0 %v14568_v63, %s12918_s21 }
 0xacd   : > { %v9783_v10 = vmul.f32 %v9773_v1, %v13275_v9  ;;  %v9769_v15 = vmax.f32 %v9759_v2, 0.0  ;;  %v9764_v16 = vadd.f32 %v9753_v31, %v9741_v3  ;;  %v11842_v9 = vld [vmem:[%s14857_s2 + $0x60] sm:$0xff] }
 0xace   : > { %v14578_v21 = vpack.c.bf16 %v9782_v6, %v9777_v62  ;;  %v12903_v6 = vld [vmem:[%s14856_s1 + $0x1c8] sm:$0xff]  }
 0xacf   : > { %v14580_v4 = vpack.c.bf16 %v9783_v10, %v9778_v7  ;;  %v9774_v46 = vmax.f32 %v9764_v16, 0.0  ;;  %9830 = vrot.lane.b32.xlu1 %v12929_v43, %s12918_s21  ;;  %v9779_v8 = vmul.f32 %v9769_v15, %v13296_v38 }
 0xad0   : > { %9836 = vrot.lane.b32.xlu0 %v14578_v21, %s12918_s21 }
 0xad1   : > { %v9784_v22 = vmul.f32 %v9774_v46, %v13296_v38  ;;  %v11843_v38 = vld [vmem:[%s14857_s2 + $0x68] sm:$0xff] }
 0xad3   : > { %v14588_v53 = vpack.c.bf16 %v9784_v22, %v9779_v8  ;;  %9838 = vrot.lane.b32.xlu1 %v14580_v4, %s12918_s21 }
 0xad5   : > { %9840 = vrot.lane.b32.xlu0 %v14588_v53, %s12918_s21  ;;  %s14914_s21 = smov 1  }
 0xad7   : > { %9989 = vrot.lane.b32.xlu1 %v14566_v45, %s14912_s12 }
 0xad9   : > { %9991 = vrot.lane.b32.xlu0 %v14568_v63, %s14912_s12 }
 0xadb   : > { %9987 = vrot.lane.b32.xlu1 %v12929_v43, %s14912_s12 }
 0xadd   : > { %9993 = vrot.lane.b32.xlu0 %v14578_v21, %s14912_s12 }
 0xadf   : > { %9995 = vrot.lane.b32.xlu1 %v14580_v4, %s14912_s12 }
 0xae1   : > { %10149 = vrot.lane.b32.xlu0 %v14566_v45, %s14913_s13 }
 0xae3   : > { %10151 = vrot.lane.b32.xlu1 %v14568_v63, %s14913_s13 }
 0xae5   : > { %10147 = vrot.lane.b32.xlu0 %v12929_v43, %s14913_s13 }
 0xae7   : > { %9997 = vrot.lane.b32.xlu1 %v14588_v53, %s14912_s12 }
 0xae9   : > { %10153 = vrot.lane.b32.xlu0 %v14578_v21, %s14913_s13 }
 0xaeb   : > { %10155 = vrot.lane.b32.xlu1 %v14580_v4, %s14913_s13 }
 0xaed   : > { %10157 = vrot.lane.b32.xlu0 %v14588_v53, %s14913_s13 }
 0xaef   : > { %10319 = vrot.lane.b32.xlu1 %v14566_v45, %s14914_s21 }
 0xaf1   : > { %10321 = vrot.lane.b32.xlu0 %v14568_v63, %s14914_s21 }
 0xaf3   : > { %10317 = vrot.lane.b32.xlu1 %v12929_v43, %s14914_s21 }
 0xaf5   : > { %10323 = vrot.lane.b32.xlu0 %v14578_v21, %s14914_s21 }
 0xaf7   : > { %10325 = vrot.lane.b32.xlu1 %v14580_v4, %s14914_s21 }
 0xaf9   : > { %10327 = vrot.lane.b32.xlu0 %v14588_v53, %s14914_s21 }
 0xafb   : > { %10661 = vrot.lane.b32.xlu1 %v14568_v63, %s14915_s14 }
 0xafd   : > { %10663 = vrot.lane.b32.xlu0 %v14578_v21, %s14915_s14 }
 0xaff   : > { %10659 = vrot.lane.b32.xlu1 %v14566_v45, %s14915_s14 }
 0xb01   : > { %10665 = vrot.lane.b32.xlu0 %v14580_v4, %s14915_s14 }
 0xb03   : > { %10667 = vrot.lane.b32.xlu1 %v14588_v53, %s14915_s14 }
 0xb05   : > { %10831 = vrot.lane.b32.xlu0 %v14568_v63, %s14916_s17 }
 0xb07   : > { %10833 = vrot.lane.b32.xlu1 %v14578_v21, %s14916_s17 }
 0xb09   : > { %10829 = vrot.lane.b32.xlu0 %v14566_v45, %s14916_s17 }
 0xb0b   : > { %10669 = vrot.lane.b32.xlu1 %v12929_v43, %s14915_s14 }
 0xb0d   : > { %10835 = vrot.lane.b32.xlu0 %v14580_v4, %s14916_s17 }
 0xb0f   : > { %10837 = vrot.lane.b32.xlu1 %v14588_v53, %s14916_s17 }
 0xb11   : > { %10839 = vrot.lane.b32.xlu0 %v12929_v43, %s14916_s17 }
 0xb13   : > { %11001 = vrot.lane.b32.xlu1 %v14568_v63, %s14917_s18 }
 0xb15   : > { %11003 = vrot.lane.b32.xlu0 %v14578_v21, %s14917_s18 }
 0xb17   : > { %10999 = vrot.lane.b32.xlu1 %v14566_v45, %s14917_s18 }
 0xb19   : > { %11005 = vrot.lane.b32.xlu0 %v14580_v4, %s14917_s18 }
 0xb1b   : > { %11007 = vrot.lane.b32.xlu1 %v14588_v53, %s14917_s18 }
 0xb1d   : > { %11171 = vrot.lane.b32.xlu0 %v14568_v63, %s14918_s19 }
 0xb1f   : > { %11173 = vrot.lane.b32.xlu1 %v14578_v21, %s14918_s19 }
 0xb21   : > { %11169 = vrot.lane.b32.xlu0 %v14566_v45, %s14918_s19 }
 0xb23   : > { %11009 = vrot.lane.b32.xlu1 %v12929_v43, %s14917_s18 }
 0xb25   : > { %11175 = vrot.lane.b32.xlu0 %v14580_v4, %s14918_s19 }
 0xb27   : > { %11177 = vrot.lane.b32.xlu1 %v14588_v53, %s14918_s19 }
 0xb29   : > { %11179 = vrot.lane.b32.xlu0 %v12929_v43, %s14918_s19  ;;  %s12799_s19 = smul.u32 80, %s14960_s16 }
 0xb2b   : > { %11336 = vperm.xlu1 %12845, %v11842_v9   ;;  %s14834_s16 = scalar_lea.vmem %s14859_s4, %s12799_s19 }
 0xb2d   : > { %11341 = vperm.xlu0 %12844, %v11843_v38  }
 0xb3d   : > { %v9833_v24 = vpop.permute.xlu1 %9832 }
 0xb3e   : > { %v9835_v50 = vpop.permute.xlu0 %9834 }
 0xb3f   : > { %v9843_v13 = vsel %vm14919_vm13, %v9833_v24, %v9835_v50  ;;  %vm14933_vm13 = vmmov %vm14928_vm8 }
 0xb40   : > { %9855 = vmatprep.subr.bf16.mxu0 %v9843_v13 }
 0xb41   : > { %v9831_v25 = vpop.permute.xlu1 %9830 }
 0xb42   : > { %v9842_v37 = vsel %vm14920_vm14, %v9831_v25, %v9833_v24  ;;  %v9837_v26 = vpop.permute.xlu0 %9836  ;;  %vm14934_vm14 = vcmask 7168  }
 0xb43   : > { %9856 = vmatpush1.bf16.msra.mxu0 %v9842_v37  ;;  %v9844_v28 = vsel %vm14922_vm0, %v9835_v50, %v9837_v26  ;;  %vm14936_vm0 = vmmov %vm14934_vm14  ;;  %v12905_v37 = vld [vmem:[%s14856_s1 + $0x1d8] sm:$0xff]  }
 0xb44   : > { %12296 = vmatprep.subr.bf16.mxu0 %v12926_v32 }
 0xb45   : > { %v9839_v43 = vpop.permute.xlu1 %9838 }
 0xb46   : > { %11793 = vmatmul.mubr.msk.bf16.vlgmr.msra.gmra.mrb[132].mxu0 %vm287_vm1, %v12900_v20  ;;  %v9845_v27 = vsel %vm14921_vm15, %v9837_v26, %v9839_v43  ;;  %vm14935_vm15 = vmmov %vm14934_vm14 }
 0xb47   : > { %v9841_v11 = vpop.permute.xlu0 %9840  ;;  %9898 = vmatprep.subr.bf16.mxu1 %v9845_v27  ;;  %12298 = vmatprep.mubr.msk.bf16.mxu0 %vm12927_vm3, %v12926_v32 }
 0xb48   : > { %v9846_v29 = vsel %vm14923_vm2, %v9839_v43, %v9841_v11  ;;  %9899 = vmatpush1.bf16.msra.mxu1 %v9844_v28  ;;  %vm14937_vm2 = vmmov %vm14936_vm0 }
 0xb49   : > { %12297 = vmatpush3.bf16.msra.mxu0 %v9846_v29  ;;  %v9990_v17 = vpop.permute.xlu1 %9989 }
 0xb4b   : > { %v9992_v31 = vpop.permute.xlu0 %9991  ;;  %11794 = vmatmul.mubr.msk.bf16.vlgmr.msra.gmra.mrb[132].mxu1 %vm287_vm1, %v12900_v20 }
 0xb4c   : > { %v10000_v33 = vsel %vm14924_vm4, %v9990_v17, %v9992_v31  ;;  %10087 = vmatprep.mubr.bf16.mxu1 %v12917_v0  ;;  %vm14938_vm4 = vmmov %vm14936_vm0 }
 0xb4d   : > { %10012 = vmatprep.subr.bf16.mxu0 %v10000_v33  ;;  %v9988_v34 = vpop.permute.xlu1 %9987 }
 0xb4e   : > { %v9999_v35 = vsel %vm14925_vm5, %v9988_v34, %v9990_v17  ;;  %12299 = vmatmul.mubr.msk.bf16.vlgmr.msra.gmra.mrb[136].mxu0 %vm287_vm1, %v12900_v20  ;;  %vm14939_vm5 = vcmask 1039360   ;;  %v12906_v17 = vld [vmem:[%s14856_s1 + $0x1e0] sm:$0xff]  }
 0xb4f   : > { %v9994_v36 = vpop.permute.xlu0 %9993  ;;  %10013 = vmatpush1.bf16.msra.mxu0 %v9999_v35  ;;  %10044 = vmatprep.mubr.bf16.mxu0 %v12917_v0 }
 0xb50   : > { %v10001_v44 = vsel %vm14927_vm7, %v9992_v31, %v9994_v36  ;;  %vm14941_vm7 = vmmov %vm14939_vm5 }
 0xb51   : > { %v9996_v39 = vpop.permute.xlu1 %9995 }
 0xb52   : > { %v10002_v40 = vsel %vm14926_vm6, %v9994_v36, %v9996_v39  ;;  %vm14940_vm6 = vmmov %vm14939_vm5 }
 0xb53   : > { %v10150_v48 = vpop.permute.xlu0 %10149  ;;  %10055 = vmatprep.subr.bf16.mxu1 %v10002_v40 }
 0xb54   : > { %10056 = vmatpush1.bf16.msra.mxu1 %v10001_v44 }
 0xb55   : > { %v10152_v49 = vpop.permute.xlu1 %10151  ;;  %12302 = vmatprep.subr.bf16.mxu1 %v12926_v32 }
 0xb56   : > { %11797 = vmatmul.mubr.msk.bf16.vlgmr.msra.gmra.mrb[132].mxu0 %vm287_vm1, %v12901_v42  ;;  %v10160_v23 = vsel %vm14928_vm8, %v10150_v48, %v10152_v49  ;;  %vm14942_vm8 = vmmov %vm14939_vm5 }
 0xb57   : > { %v10148_v52 = vpop.permute.xlu0 %10147  ;;  %11798 = vmatmul.mubr.msk.bf16.vlgmr.msra.gmra.mrb[132].mxu1 %vm287_vm1, %v12901_v42  ;;  %10172 = vmatprep.subr.bf16.mxu0 %v10160_v23 }
 0xb58   : > { %v10159_v19 = vsel %vm14929_vm9, %v10148_v52, %v10150_v48  ;;  %12304 = vmatprep.mubr.msk.bf16.mxu1 %vm12927_vm3, %v12926_v32  ;;  %10204 = vmatprep.mubr.bf16.mxu0 %v12917_v0  ;;  %vm14943_vm9 = vcmask 859136   ;;  %v12907_v52 = vld [vmem:[%s14856_s1 + $0x1e8] sm:$0xff]  }
 0xb59   : > { %10173 = vmatpush1.bf16.msra.mxu0 %v10159_v19  ;;  %v9998_v54 = vpop.permute.xlu1 %9997 }
 0xb5a   : > { %v10003_v14 = vsel %vm14930_vm10, %v9996_v39, %v9998_v54  ;;  %12308 = vmatprep.subr.bf16.mxu0 %v12926_v32  ;;  %vm14944_vm10 = vmmov %vm14943_vm9 }
 0xb5b   : > { %v10154_v55 = vpop.permute.xlu0 %10153  ;;  %12303 = vmatpush3.bf16.msra.mxu1 %v10003_v14 }
 0xb5c   : > { %v10161_v12 = vsel %vm14932_vm12, %v10152_v49, %v10154_v55  ;;  %vm14946_vm12 = vmmov %vm14943_vm9 }
 0xb5d   : > { %v10156_v30 = vpop.permute.xlu1 %10155 }
 0xb5e   : > { %v10162_v47 = vsel %vm14931_vm11, %v10154_v55, %v10156_v30  ;;  %vm14945_vm11 = vmmov %vm14939_vm5 }
 0xb5f   : > { %v10158_v57 = vpop.permute.xlu0 %10157  ;;  %12305 = vmatmul.mubr.msk.bf16.vlgmr.msra.gmra.mrb[136].mxu1 %vm287_vm1, %v12901_v42  ;;  %10215 = vmatprep.subr.bf16.mxu1 %v10162_v47  ;;  %v12908_v47 = vld [vmem:[%s14856_s1 + $0x1f0] sm:$0xff]  }
 0xb60   : > { %v10163_v51 = vsel %vm14933_vm13, %v10156_v30, %v10158_v57  ;;  %10216 = vmatpush1.bf16.msra.mxu1 %v10161_v12  ;;  %10247 = vmatprep.mubr.bf16.mxu1 %v12917_v0  ;;  %vm14947_vm13 = vmmov %vm14943_vm9 }
 0xb61   : > { %v10320_v59 = vpop.permute.xlu1 %10319 }
 0xb62   : > { %11803 = vmatmul.mubr.msk.bf16.vlgmr.msra.gmra.mrb[132].mxu0 %vm287_vm1, %v12902_v56 }
 0xb63   : > { %12309 = vmatpush3.bf16.msra.mxu0 %v10163_v51  ;;  %v10322_v60 = vpop.permute.xlu0 %10321  ;;  %12310 = vmatprep.mubr.msk.bf16.mxu0 %vm12927_vm3, %v12926_v32 }
 0xb64   : > { %v10330_v18 = vsel %vm14934_vm14, %v10320_v59, %v10322_v60  ;;  %vm14948_vm14 = vcmask 850944  }
 0xb65   : > { %10342 = vmatprep.subr.bf16.mxu0 %v10330_v18  ;;  %v10318_v61 = vpop.permute.xlu1 %10317 }
 0xb66   : > { %v10329_v1 = vsel %vm14935_vm15, %v10318_v61, %v10320_v59  ;;  %vm14949_vm15 = vmmov %vm14943_vm9 }
 0xb67   : > { %v10324_v41 = vpop.permute.xlu0 %10323  ;;  %11804 = vmatmul.mubr.msk.bf16.vlgmr.msra.gmra.mrb[132].mxu1 %vm287_vm1, %v12902_v56 }
 0xb68   : > { %10417 = vmatprep.mubr.bf16.mxu1 %v12917_v0  ;;  %v10331_v3 = vsel %vm14937_vm2, %v10322_v60, %v10324_v41 }
 0xb69   : > { %v10326_v58 = vpop.permute.xlu1 %10325 }
 0xb6a   : > { %12311 = vmatmul.mubr.msk.bf16.vlgmr.msra.gmra.mrb[140].mxu0 %vm287_vm1, %v12902_v56  ;;  %v10332_v2 = vsel %vm14936_vm0, %v10324_v41, %v10326_v58  ;;  %vm14950_vm0 = vmmov %vm14948_vm14 }
 0xb6b   : > { %10343 = vmatpush1.bf16.msra.mxu0 %v10329_v1  ;;  %v10328_v5 = vpop.permute.xlu0 %10327  ;;  %10385 = vmatprep.subr.bf16.mxu1 %v10332_v2  ;;  %vm14951_vm2 = vmmov %vm14950_vm0 }
 0xb6c   : > { %10490 = vmatprep.subr.bf16.mxu0 %v14568_v63  ;;  %10386 = vmatpush1.bf16.msra.mxu1 %v10331_v3  ;;  %v10333_v15 = vsel %vm14938_vm4, %v10326_v58, %v10328_v5  ;;  %vm14952_vm4 = vmmov %vm14950_vm0 }
 0xb6d   : > { %v10662_v62 = vpop.permute.xlu1 %10661  ;;  %10374 = vmatprep.mubr.bf16.mxu0 %v12917_v0  ;;  %12314 = vmatprep.subr.bf16.mxu1 %v12926_v32 }
 0xb6f   : > { %v10664_v7 = vpop.permute.xlu0 %10663 }
 0xb70   : > { %v10672_v38 = vsel %vm14940_vm6, %v10662_v62, %v10664_v7 }
 0xb71   : > { %v10660_v10 = vpop.permute.xlu1 %10659 }
 0xb72   : > { %11809 = vmatmul.mubr.msk.bf16.vlgmr.msra.gmra.mrb[132].mxu0 %vm287_vm1, %v12903_v6  ;;  %v10671_v13 = vsel %vm14942_vm8, %v10660_v10, %v10662_v62 }
 0xb73   : > { %10491 = vmatpush1.bf16.msra.mxu0 %v14566_v45  ;;  %v10666_v16 = vpop.permute.xlu0 %10665  ;;  %11810 = vmatmul.mubr.msk.bf16.vlgmr.msra.gmra.mrb[132].mxu1 %vm287_vm1, %v12903_v6  ;;  %v12904_v45 = vld [vmem:[%s14856_s1 + $0x1d0] sm:$0xff]  }
 0xb74   : > { %12315 = vmatpush3.bf16.msra.mxu1 %v10333_v15  ;;  %12316 = vmatprep.mubr.msk.bf16.mxu1 %vm12927_vm3, %v12926_v32  ;;  %v10673_v24 = vsel %vm14941_vm7, %v10664_v7, %v10666_v16  ;;  %vm14955_vm7 = vmmov %vm14950_vm0 }
 0xb75   : > { %10533 = vmatprep.subr.bf16.mxu1 %v14580_v4  ;;  %v10668_v63 = vpop.permute.xlu1 %10667  ;;  %10522 = vmatprep.mubr.bf16.mxu0 %v12917_v0 }
 0xb76   : > { %12320 = vmatprep.subr.bf16.mxu0 %v12926_v32  ;;  %v10674_v22 = vsel %vm14939_vm5, %v10666_v16, %v10668_v63  ;;  %vm14953_vm5 = vcmask 842752  }
 0xb77   : > { %v10832_v46 = vpop.permute.xlu0 %10831  ;;  %vm14954_vm6 = vmmov %vm14953_vm5 }
 0xb78   : > { %vm14956_vm8 = vmmov %vm14953_vm5 }
 0xb79   : > { %v10834_v8 = vpop.permute.xlu1 %10833 }
 0xb7b   : > { %12317 = vmatmul.mubr.msk.bf16.vlgmr.msra.gmra.mrb[140].mxu1 %vm287_vm1, %v12903_v6  ;;  %v10830_v9 = vpop.permute.xlu0 %10829 }
 0xb7c   : > { %10534 = vmatpush1.bf16.msra.mxu1 %v14578_v21  ;;  %10565 = vmatprep.mubr.bf16.mxu1 %v12917_v0  ;;  %v10841_v20 = vsel %vm14944_vm10, %v10830_v9, %v10832_v46  ;;  %vm14958_vm10 = vmmov %vm14953_vm5 }
 0xb7d   : > { %10727 = vmatprep.subr.bf16.mxu1 %v10674_v22  ;;  %v10670_v4 = vpop.permute.xlu1 %10669 }
 0xb7e   : > { %11815 = vmatmul.mubr.msk.bf16.vlgmr.msra.gmra.mrb[132].mxu0 %vm287_vm1, %v12904_v45  ;;  %v10675_v43 = vsel %vm14945_vm11, %v10668_v63, %v10670_v4 }
 0xb7f   : > { %12321 = vmatpush3.bf16.msra.mxu0 %v14588_v53  ;;  %12322 = vmatprep.mubr.msk.bf16.mxu0 %vm12927_vm3, %v12926_v32  ;;  %v10836_v50 = vpop.permute.xlu0 %10835  ;;  %v10842_v53 = vsel %vm14943_vm9, %v10832_v46, %v10834_v8  ;;  %vm14957_vm9 = vmmov %vm14953_vm5 }
 0xb80   : > { %10684 = vmatprep.subr.bf16.mxu0 %v10672_v38  ;;  %v10843_v31 = vsel %vm14947_vm13, %v10834_v8, %v10836_v50 }
 0xb81   : > { %v10838_v21 = vpop.permute.xlu1 %10837 }
 0xb82   : > { %v10844_v28 = vsel %vm14946_vm12, %v10836_v50, %v10838_v21 }
 0xb83   : > { %11816 = vmatmul.mubr.msk.bf16.vlgmr.msra.gmra.mrb[132].mxu1 %vm287_vm1, %v12904_v45  ;;  %v10840_v26 = vpop.permute.xlu0 %10839 }
 0xb84   : > { %10728 = vmatpush1.bf16.msra.mxu1 %v10673_v24  ;;  %10759 = vmatprep.mubr.bf16.mxu1 %v12917_v0  ;;  %v10845_v35 = vsel %vm14949_vm15, %v10838_v21, %v10840_v26 }
 0xb85   : > { %12326 = vmatprep.subr.bf16.mxu1 %v12926_v32  ;;  %v11002_v25 = vpop.permute.xlu1 %11001 }
 0xb86   : > { %12323 = vmatmul.mubr.msk.bf16.vlgmr.msra.gmra.mrb[144].mxu0 %vm287_vm1, %v12904_v45 }
 0xb87   : > { %10685 = vmatpush1.bf16.msra.mxu0 %v10671_v13  ;;  %10716 = vmatprep.mubr.bf16.mxu0 %v12917_v0  ;;  %v11004_v11 = vpop.permute.xlu0 %11003 }
 0xb88   : > { %10854 = vmatprep.subr.bf16.mxu0 %v10842_v53  ;;  %v11012_v36 = vsel %vm14950_vm0, %v11002_v25, %v11004_v11 }
 0xb89   : > { %v11000_v27 = vpop.permute.xlu1 %10999 }
 0xb8a   : > { %v11011_v44 = vsel %vm14952_vm4, %v11000_v27, %v11002_v25 }
 0xb8b   : > { %v11006_v33 = vpop.permute.xlu0 %11005 }
 0xb8c   : > { %v11013_v40 = vsel %vm14951_vm2, %v11004_v11, %v11006_v33 }
 0xb8d   : > { %v11008_v29 = vpop.permute.xlu1 %11007 }
 0xb8e   : > { %11821 = vmatmul.mubr.msk.bf16.vlgmr.msra.gmra.mrb[132].mxu0 %vm287_vm1, %v12905_v37  ;;  %v11014_v34 = vsel %vm14948_vm14, %v11006_v33, %v11008_v29 }
 0xb8f   : > { %10855 = vmatpush1.bf16.msra.mxu0 %v10841_v20  ;;  %11822 = vmatmul.mubr.msk.bf16.vlgmr.msra.gmra.mrb[132].mxu1 %vm287_vm1, %v12905_v37  ;;  %v11172_v42 = vpop.permute.xlu0 %11171 }
 0xb90   : > { %12327 = vmatpush3.bf16.msra.mxu1 %v10675_v43  ;;  %12328 = vmatprep.mubr.msk.bf16.mxu1 %vm12927_vm3, %v12926_v32 }
 0xb91   : > { %10897 = vmatprep.subr.bf16.mxu1 %v10844_v28  ;;  %10886 = vmatprep.mubr.bf16.mxu0 %v12917_v0  ;;  %v11174_v39 = vpop.permute.xlu1 %11173 }
 0xb92   : > { %12332 = vmatprep.subr.bf16.mxu0 %v12926_v32  ;;  %v11182_v49 = vsel %vm14953_vm5, %v11172_v42, %v11174_v39 }
 0xb93   : > { %v11170_v23 = vpop.permute.xlu0 %11169 }
 0xb94   : > { %v11181_v54 = vsel %vm14954_vm6, %v11170_v23, %v11172_v42 }
 0xb95   : > { %v11010_v48 = vpop.permute.xlu1 %11009 }
 0xb96   : > { %v11015_v14 = vsel %vm14955_vm7, %v11008_v29, %v11010_v48  ;;  %v11355_v48 = vld [vmem:[%s12992_s20 + $0x10] sm:$0xff] }
 0xb97   : > { %12329 = vmatmul.mubr.msk.bf16.vlgmr.msra.gmra.mrb[144].mxu1 %vm287_vm1, %v12905_v37  ;;  %v11176_v55 = vpop.permute.xlu0 %11175 }
 0xb98   : > { %10898 = vmatpush1.bf16.msra.mxu1 %v10843_v31  ;;  %10929 = vmatprep.mubr.bf16.mxu1 %v12917_v0  ;;  %v11183_v56 = vsel %vm14957_vm9, %v11174_v39, %v11176_v55  ;;  %v11354_v39 = vld [vmem:[%s12992_s20 + $0x8] sm:$0xff] }
 0xb99   : > { %11067 = vmatprep.subr.bf16.mxu1 %v11014_v34  ;;  %v11178_v19 = vpop.permute.xlu1 %11177 }
 0xb9a   : > { %11827 = vmatmul.mubr.msk.bf16.vlgmr.msra.gmra.mrb[132].mxu0 %vm287_vm1, %v12906_v17  ;;  %v11184_v30 = vsel %vm14956_vm8, %v11176_v55, %v11178_v19 }
 0xb9b   : > { %12333 = vmatpush3.bf16.msra.mxu0 %v10845_v35  ;;  %12334 = vmatprep.mubr.msk.bf16.mxu0 %vm12927_vm3, %v12926_v32  ;;  %v11180_v12 = vpop.permute.xlu0 %11179 }
 0xb9c   : > { %11024 = vmatprep.subr.bf16.mxu0 %v11012_v36  ;;  %v11185_v57 = vsel %vm14958_vm10, %v11178_v19, %v11180_v12  ;;  %v11359_v19 = vld [vmem:[%s12992_s20 + $0x40] sm:$0xff] }
 0xb9f   : > { %11828 = vmatmul.mubr.msk.bf16.vlgmr.msra.gmra.mrb[132].mxu1 %vm287_vm1, %v12906_v17 }
 0xba0   : > { %11068 = vmatpush1.bf16.msra.mxu1 %v11013_v40  ;;  %11099 = vmatprep.mubr.bf16.mxu1 %v12917_v0 }
 0xba1   : > { %12338 = vmatprep.subr.bf16.mxu1 %v12926_v32 }
 0xba2   : > { %12335 = vmatmul.mubr.msk.bf16.vlgmr.msra.gmra.mrb[148].mxu0 %vm287_vm1, %v12906_v17 }
 0xba3   : > { %11025 = vmatpush1.bf16.msra.mxu0 %v11011_v44  ;;  %11056 = vmatprep.mubr.bf16.mxu0 %v12917_v0 }
 0xba4   : > { %11194 = vmatprep.subr.bf16.mxu0 %v11182_v49 }
 0xbaa   : > { %11833 = vmatmul.mubr.msk.bf16.vlgmr.msra.gmra.mrb[132].mxu0 %vm287_vm1, %v12907_v52  ;;  %v11337_v33 = vpop.permute.xlu1 %11336 }
 0xbab   : > { %11195 = vmatpush1.bf16.msra.mxu0 %v11181_v54  ;;  %11834 = vmatmul.mubr.msk.bf16.vlgmr.msra.gmra.mrb[132].mxu1 %vm287_vm1, %v12907_v52 }
 0xbac   : > { %12339 = vmatpush3.bf16.msra.mxu1 %v11015_v14  ;;  %12340 = vmatprep.mubr.msk.bf16.mxu1 %vm12927_vm3, %v12926_v32  ;;  %v11342_v49 = vpop.permute.xlu0 %11341 }
 0xbad   : > { %11237 = vmatprep.subr.bf16.mxu1 %v11184_v30  ;;  %11226 = vmatprep.mubr.bf16.mxu0 %v12917_v0  ;;  %v11360_v30 = vld [vmem:[%s12992_s20 + $0x48] sm:$0xff] }
 0xbae   : > { %12344 = vmatprep.subr.bf16.mxu0 %v12926_v32 }
 0xbb3   : > { %12341 = vmatmul.mubr.msk.bf16.vlgmr.msra.gmra.mrb[148].mxu1 %vm287_vm1, %v12907_v52 }
 0xbb4   : > { %11238 = vmatpush1.bf16.msra.mxu1 %v11183_v56  ;;  %11269 = vmatprep.mubr.bf16.mxu1 %v12917_v0 }
 0xbb6   : > { %11839 = vmatmul.mubr.msk.bf16.vlgmr.msra.gmra.mrb[132].mxu0 %vm287_vm1, %v12908_v47 }
 0xbb7   : > { %12345 = vmatpush3.bf16.msra.mxu0 %v11185_v57  ;;  %12346 = vmatprep.mubr.msk.bf16.mxu0 %vm12927_vm3, %v12926_v32 }
 0xbbb   : > { %11840 = vmatmul.mubr.msk.bf16.vlgmr.msra.gmra.mrb[132].mxu1 %vm287_vm1, %v12908_v47 }
 0xbbe   : > { %12347 = vmatmul.mubr.msk.bf16.vlgmr.msra.gmra.mrb[152].mxu0 %vm287_vm1, %v12908_v47 }
 0xc21   : > { %v9975_v51 = vpop.f32.mrb[136].mxu0 }
 0xc22   : > { %v12300_v59 = vpop.f32.mrb[137].mxu0 }
 0xc23   : > { %v9978_v60 = vpop.f32.mrb[138].mxu0  ;;  %v11356_v59 = vld [vmem:[%s12992_s20 + $0x18] sm:$0xff] }
 0xc24   : > { %v12301_v18 = vpop.f32.mrb[139].mxu0 }
 0xc32   : > { %v10132_v61 = vpop.f32.mrb[136].mxu1 }
 0xc33   : > { %v10133_v41 = vadd.f32 %v10132_v61, %v9975_v51  ;;  %v12306_v58 = vpop.f32.mrb[137].mxu1 }
 0xc34   : > { %v10135_v0 = vpop.f32.mrb[138].mxu1  ;;  %v11357_v58 = vld [vmem:[%s12992_s20 + $0x20] sm:$0xff] }
 0xc35   : > { %v10136_v1 = vadd.f32 %v10135_v0, %v9978_v60  ;;  %v12307_v2 = vpop.f32.mrb[139].mxu1 }
 0xc3d   : > { %v10292_v3 = vpop.f32.mrb[140].mxu0 }
 0xc3e   : > { %v10303_v5 = vadd.f32 %v10292_v3, %v10133_v41  ;;  %v12312_v62 = vpop.f32.mrb[141].mxu0  ;;  %v11361_v3 = vld [vmem:[%s12992_s20 + $0x50] sm:$0xff] }
 0xc3f   : > { %v10295_v6 = vpop.f32.mrb[142].mxu0 }
 0xc40   : > { %v10308_v7 = vadd.f32 %v10295_v6, %v10136_v1  ;;  %v12313_v32 = vpop.f32.mrb[143].mxu0 }
 0xc41   : > { %v11362_v32 = vld [vmem:[%s12992_s20 + $0x58] sm:$0xff] }
 0xc4e   : > { %v10462_v10 = vpop.f32.mrb[140].mxu1 }
 0xc4f   : > { %v10473_v15 = vadd.f32 %v10462_v10, %v10303_v5  ;;  %v12318_v16 = vpop.f32.mrb[141].mxu1 }
 0xc50   : > { %v10465_v63 = vpop.f32.mrb[142].mxu1 }
 0xc51   : > { %v10478_v46 = vadd.f32 %v10465_v63, %v10308_v7  ;;  %v12319_v8 = vpop.f32.mrb[143].mxu1 }
 0xc59   : > { %v10610_v45 = vpop.f32.mrb[144].mxu0 }
 0xc5a   : > { %v10621_v22 = vadd.f32 %v10610_v45, %v10473_v15  ;;  %v12324_v4 = vpop.f32.mrb[145].mxu0 }
 0xc5b   : > { %v10613_v9 = vpop.f32.mrb[146].mxu0 }
 0xc5c   : > { %v10626_v38 = vadd.f32 %v10613_v9, %v10478_v46  ;;  %v12325_v24 = vpop.f32.mrb[147].mxu0 }
 0xc6a   : > { %v10804_v21 = vpop.f32.mrb[144].mxu1 }
 0xc6b   : > { %v10815_v50 = vadd.f32 %v10804_v21, %v10621_v22  ;;  %v12330_v13 = vpop.f32.mrb[145].mxu1  ;;  %v11358_v22 = vld [vmem:[%s12992_s20 + $0x28] sm:$0xff] }
 0xc6c   : > { %v10807_v53 = vpop.f32.mrb[146].mxu1 }
 0xc6d   : > { %v10820_v25 = vadd.f32 %v10807_v53, %v10626_v38  ;;  %v12331_v37 = vpop.f32.mrb[147].mxu1  ;;  %v11363_v53 = vld [vmem:[%s12992_s20 + $0x60] sm:$0xff] }
 0xc75   : > { %v10974_v26 = vpop.f32.mrb[148].mxu0 }
 0xc76   : > { %v10985_v20 = vadd.f32 %v10974_v26, %v10815_v50  ;;  %v12336_v43 = vpop.f32.mrb[149].mxu0 }
 0xc77   : > { %v10977_v27 = vpop.f32.mrb[150].mxu0 }
 0xc78   : > { %v10990_v28 = vadd.f32 %v10977_v27, %v10820_v25  ;;  %v12337_v11 = vpop.f32.mrb[151].mxu0 }
 0xc86   : > { %v11144_v29 = vpop.f32.mrb[148].mxu1 }
 0xc87   : > { %v11155_v17 = vadd.f32 %v11144_v29, %v10985_v20  ;;  %v12342_v31 = vpop.f32.mrb[149].mxu1 }
 0xc88   : > { %v11147_v34 = vpop.f32.mrb[150].mxu1 }
 0xc89   : > { %v11160_v35 = vadd.f32 %v11147_v34, %v10990_v28  ;;  %v11228_v36 = vpop.f32.mrb[132].mxu0  ;;  %v12343_v40 = vpop.f32.mrb[151].mxu1 }
 0xc8a   : > { %v11344_v42 = vadd.f32 %v11337_v33, %v11228_v36  ;;  %v11230_v44 = vpop.f32.mrb[133].mxu0 }
 0xc8b   : > { %v11345_v23 = vadd.f32 %v11337_v33, %v11230_v44  ;;  %v11232_v52 = vpop.f32.mrb[134].mxu0 }
 0xc8c   : > { %v11364_v54 = vsub.f32 %v11354_v39, %v11344_v42  ;;  %v11349_v14 = vadd.f32 %v11342_v49, %v11232_v52  ;;  %v11234_v55 = vpop.f32.mrb[135].mxu0 }
 0xc8d   : > { %v11365_v47 = vsub.f32 %v11355_v48, %v11345_v23  ;;  %v11350_v56 = vadd.f32 %v11342_v49, %v11234_v55 }
 0xc8e   : > { %v11374_v12 = vmul.f32 %v11364_v54, %v11354_v39  ;;  %v11369_v57 = vsub.f32 %v11359_v19, %v11349_v14  ;;  %v11271_v51 = vpop.f32.mrb[132].mxu1 }
 0xc8f   : > { %v11375_v60 = vmul.f32 %v11365_v47, %v11355_v48  ;;  %v11370_v18 = vsub.f32 %v11360_v30, %v11350_v56  ;;  %v11346_v61 = vadd.f32 %v11337_v33, %v11271_v51  ;;  %v11273_v41 = vpop.f32.mrb[133].mxu1 }
 0xc90   : > { %11384 = vst [vmem:[%s14834_s16] sm:$0xff] %v11374_v12  ;;  %v11379_v0 = vmul.f32 %v11369_v57, %v11359_v19  ;;  %v11347_v1 = vadd.f32 %v11337_v33, %v11273_v41  ;;  %v11275_v2 = vpop.f32.mrb[134].mxu1 }
 0xc91   : > { %11385 = vst [vmem:[%s14834_s16 + $0x8] sm:$0xff] %v11375_v60  ;;  %v11380_v5 = vmul.f32 %v11370_v18, %v11360_v30  ;;  %v11366_v62 = vsub.f32 %v11356_v59, %v11346_v61  ;;  %v11351_v6 = vadd.f32 %v11342_v49, %v11275_v2  ;;  %v11277_v7 = vpop.f32.mrb[135].mxu1  ;;  %v11314_v10 = vpop.f32.mrb[152].mxu0 }
 0xc92   : > { %11389 = vst [vmem:[%s14834_s16 + $0x28] sm:$0xff] %v11379_v0  ;;  %v11367_v15 = vsub.f32 %v11357_v58, %v11347_v1  ;;  %v11352_v16 = vadd.f32 %v11342_v49, %v11277_v7  ;;  %v11325_v63 = vadd.f32 %v11314_v10, %v11155_v17  ;;  %v12348_v46 = vpop.f32.mrb[153].mxu0 }
 0xc93   : > { %11390 = vst [vmem:[%s14834_s16 + $0x30] sm:$0xff] %v11380_v5  ;;  %v11376_v8 = vmul.f32 %v11366_v62, %v11356_v59  ;;  %v11371_v45 = vsub.f32 %v11361_v3, %v11351_v6  ;;  %v11317_v4 = vpop.f32.mrb[154].mxu0 }
 0xc94   : > { %v11377_v9 = vmul.f32 %v11367_v15, %v11357_v58  ;;  %v11372_v38 = vsub.f32 %v11362_v32, %v11352_v16  ;;  %v11348_v24 = vadd.f32 %v11337_v33, %v11325_v63  ;;  %v11330_v21 = vadd.f32 %v11317_v4, %v11160_v35  ;;  %v12349_v50 = vpop.f32.mrb[155].mxu0 }
 0xc95   : > { %11386 = vst [vmem:[%s14834_s16 + $0x10] sm:$0xff] %v11376_v8  ;;  %v11381_v13 = vmul.f32 %v11371_v45, %v11361_v3 }
 0xc96   : > { %11387 = vst [vmem:[%s14834_s16 + $0x18] sm:$0xff] %v11377_v9  ;;  %v11382_v25 = vmul.f32 %v11372_v38, %v11362_v32  ;;  %v11368_v37 = vsub.f32 %v11358_v22, %v11348_v24  ;;  %v11353_v26 = vadd.f32 %v11342_v49, %v11330_v21 }
 0xc97   : > { %11391 = vst [vmem:[%s14834_s16 + $0x38] sm:$0xff] %v11381_v13 }
 0xc98   : > { %11392 = vst [vmem:[%s14834_s16 + $0x40] sm:$0xff] %v11382_v25  ;;  %v11378_v20 = vmul.f32 %v11368_v37, %v11358_v22  ;;  %v11373_v43 = vsub.f32 %v11363_v53, %v11353_v26 }
 0xc9a   : > { %11388 = vst [vmem:[%s14834_s16 + $0x20] sm:$0xff] %v11378_v20  ;;  %v11383_v27 = vmul.f32 %v11373_v43, %v11363_v53 }
 0xc9c   : > { %11393 = vst [vmem:[%s14834_s16 + $0x48] sm:$0xff] %v11383_v27 }
 0xc9d PF: > { %s14_s15 = sadd.s32 1, %s12915_s15  }
 0xc9e   : > { %p11_p4 = scmp.ge.s32.totalorder %s14_s15, 4  }
 0xca0   :  { %13 = sbr.rel (!%p11_p4) target bundleno = 1 (0x1), region = 134 }

</bundles_post_ra>
